<compile_context>
chip_gen: v7x
topology: tpu7x:2x2x1
jax: 0.10.0
libtpu: 0.0.40
codegen_flags: <defaults>
</compile_context>

<pallas_src>
import functools

import jax
import jax.numpy as jnp
from jax.experimental import pallas as pl
from jax.experimental.pallas import tpu as pltpu

LANES = 128
CHUNK_ROWS = 128           # rows handled per inner-loop iteration
NEG_RATIO = 3.0            # BalanceCrossEntropyLoss negative_ratio
EPS = 1e-6
LOG_FLOOR = -100.0         # matches PyTorch F.binary_cross_entropy's log clamp
NSTATS = 8                 # 7 used + 1 spare (keeps sublane dim = 8)


@functools.lru_cache(maxsize=None)
def _tpu_flavor():
    try:
        kind = jax.devices()[0].device_kind.lower()
    except Exception:
        return 'other'
    if 'v7' in kind:
        return 'v7x'
    if 'v6' in kind:
        return 'v6e'
    if 'v5e' in kind or 'v5 lite' in kind or 'v5litepod' in kind:
        return 'v5e'
    return 'other'


@functools.lru_cache(maxsize=None)
def _flavor_config():
    """Per-generation kernel knobs (see module docstring)."""
    flavor = _tpu_flavor()
    if flavor == 'v7x':
        return dict(flavor=flavor, nbins=32, hist_dtype=jnp.bfloat16, hist_slab=16,
                    block_rows=2048, core_split=True, vmem_limit=40 * 1024 * 1024)
    if flavor == 'v6e':
        return dict(flavor=flavor, nbins=32, hist_dtype=jnp.bfloat16, hist_slab=16,
                    block_rows=2048, core_split=False, vmem_limit=40 * 1024 * 1024)
    if flavor == 'v5e':
        # No bf16 VALU: halve the histogram work via fewer (coarser) bins instead.
        return dict(flavor=flavor, nbins=16, hist_dtype=jnp.float32, hist_slab=8,
                    block_rows=1024, core_split=False, vmem_limit=None)
    # Unknown chip: previously-validated conservative settings.
    return dict(flavor=flavor, nbins=32, hist_dtype=jnp.float32, hist_slab=8,
                block_rows=1024, core_split=False, vmem_limit=None)


def _bin_edges(nbins):
    """Ascending histogram edges for the negative-pixel BCE values.

    edges[0] is a tiny catch-all; edges[1:] are geometric between 1e-3 and 100
    (100 == -LOG_FLOOR is the largest attainable per-pixel BCE)."""
    lo, hi = 1e-3, -LOG_FLOOR
    ratio = (hi / lo) ** (1.0 / (nbins - 2))
    return tuple([1e-12] + [lo * ratio ** j for j in range(nbins - 1)])


def _db_loss_stats_kernel(pb_ref, ptb_ref, pt_ref, gt_ref, mask_ref, tmap_ref, tmask_ref,
                          stat_ref, cnt_ref, sum_ref,
                          *, inner_steps, block_rows, n_chunks, nb, rows_valid, ragged,
                          edges, nbins, hist_dtype, hist_slab):
    c = pl.program_id(0)      # core-split axis (CORE_PARALLEL on v7x, size 1 elsewhere)
    i = pl.program_id(1)      # reduction axis ("arbitrary")

    @pl.when(i == 0)
    def _init():
        stat_ref[...] = jnp.zeros_like(stat_ref)
        cnt_ref[...] = jnp.zeros_like(cnt_ref)
        sum_ref[...] = jnp.zeros_like(sum_ref)

    gblock = c * inner_steps + i    # un-clamped global block id (for tail gating)

    if ragged:
        # Hoisted out of the per-chunk loop; only the tail block ever uses them.
        row_iota = jax.lax.broadcasted_iota(jnp.int32, (CHUNK_ROWS, LANES), 0)
        block_base = gblock * block_rows

    def red_s(x):
        # (CHUNK_ROWS, 128) f32 -> (8, 128) lane-wise partial sums (whole-vreg adds).
        return jnp.sum(x.reshape(CHUNK_ROWS // 8, 8, LANES), axis=0)

    def red_h(x):
        # Histogram reduction in hist_dtype; slab = native vreg tile of that dtype
        # (16 rows for bf16, 8 for f32) so the axis-0 reduce is whole-vreg adds.
        return jnp.sum(x.reshape(CHUNK_ROWS // hist_slab, hist_slab, LANES), axis=0)

    hist_one = jnp.ones((), hist_dtype)
    hist_zero = jnp.zeros((), hist_dtype)

    def accumulate(pb, ptb, pt, gt, mask, tmap, tmask):
        # elementwise BCE, matching F.binary_cross_entropy(reduction='none') incl. clamp
        logp = jnp.maximum(jnp.log(pb), LOG_FLOOR)
        log1mp = jnp.maximum(jnp.log(1.0 - pb), LOG_FLOOR)
        bce = -(gt * logp + (1.0 - gt) * log1mp)

        pos = gt * mask
        neg = (1.0 - gt) * mask
        v = bce * neg                            # per-pixel negative BCE (OHEM candidates)

        stat_ref[0, 0] = stat_ref[0, 0] + red_s(pos)                          # pos count
        stat_ref[0, 1] = stat_ref[0, 1] + red_s(neg)                          # neg count
        stat_ref[0, 2] = stat_ref[0, 2] + red_s(bce * pos)                    # pos BCE sum
        stat_ref[0, 3] = stat_ref[0, 3] + red_s(ptb * pos)                    # dice inter
        stat_ref[0, 4] = stat_ref[0, 4] + red_s(ptb * mask)                   # dice union
        stat_ref[0, 5] = stat_ref[0, 5] + red_s(jnp.abs(pt - tmap) * tmask)   # masked L1
        stat_ref[0, 6] = stat_ref[0, 6] + red_s(tmask)                        # tmask sum
        # stat_ref[0, 7] stays zero (spare)

        # OHEM cumulative histogram (the dominant VALU work): bf16 on v6e/v7x.
        # Counts per slab element stay <= CHUNK_ROWS//hist_slab, exact in bf16; they are
        # accumulated into f32 slabs, so the final counts (and hence k) remain exact.
        vh = v.astype(hist_dtype)
        for b in range(nbins):
            ge = vh >= edges[b]
            cnt_ref[0, b] = cnt_ref[0, b] + red_h(jnp.where(ge, hist_one, hist_zero))
            sum_ref[0, b] = sum_ref[0, b] + red_h(jnp.where(ge, vh, hist_zero))

    @pl.loop(0, n_chunks)
    def _chunk(ci):
        r0 = pl.multiple_of(ci * CHUNK_ROWS, CHUNK_ROWS)
        rd = pl.ds(r0, CHUNK_ROWS)
        pb = pb_ref[rd, :].astype(jnp.float32)       # pred 'binary'
        ptb = ptb_ref[rd, :].astype(jnp.float32)     # pred 'thresh_binary'
        pt = pt_ref[rd, :].astype(jnp.float32)       # pred 'thresh'[:, 0]
        gt = gt_ref[rd, :].astype(jnp.float32)       # gt shrink map
        mask = mask_ref[rd, :].astype(jnp.float32)   # shrink mask
        tmap = tmap_ref[rd, :].astype(jnp.float32)   # gt thresh map
        tmask = tmask_ref[rd, :].astype(jnp.float32)  # thresh mask

        if not ragged:
            accumulate(pb, ptb, pt, gt, mask, tmap, tmask)
        else:
            def masked_accumulate():
                # Rows past the logical end hold undefined VMEM data: zero every gate and
                # sanitize every value so NaN/Inf garbage cannot leak in.
                valid = (block_base + r0 + row_iota) < rows_valid
                accumulate(jnp.where(valid, pb, 0.5),
                           jnp.where(valid, ptb, 0.0),
                           jnp.where(valid, pt, 0.0),
                           jnp.where(valid, gt, 0.0),
                           jnp.where(valid, mask, 0.0),
                           jnp.where(valid, tmap, 0.0),
                           jnp.where(valid, tmask, 0.0))

            if nb == 1:
                # Whole input lives in one (partially valid) block.
                masked_accumulate()
            else:
                # Only the tail block (and any clamped padded duplicates) pays masking.
                is_tail = gblock >= (nb - 1)

                @pl.when(jnp.logical_not(is_tail))
                def _clean():
                    accumulate(pb, ptb, pt, gt, mask, tmap, tmask)

                @pl.when(is_tail)
                def _masked():
                    masked_accumulate()


def _flat2d(x):
    """Flatten to (rows, 128). Metadata-only when numel % 128 == 0 (typical DB inputs);
    otherwise a single small zero-pad of the flat tail (mask/tmask pad with 0 so padded
    elements contribute nothing)."""
    flat = x.reshape(-1)
    rem = flat.shape[0] % LANES
    if rem:
        flat = jnp.pad(flat, (0, LANES - rem))
    return flat.reshape(-1, LANES)


def _round_up(x, m):
    return ((x + m - 1) // m) * m


def db_loss(pre_batch, gt_batch, l1_scale=10.0, bce_scale=5.0, max_block_rows=None):
    cfg = _flavor_config()
    if max_block_rows is None:
        max_block_rows = cfg['block_rows']
    assert max_block_rows % CHUNK_ROWS == 0 and max_block_rows >= CHUNK_ROWS

    # mirror ptocr DBLoss field access (dtypes are taken as-is and upcast in-kernel)
    pb = _flat2d(pre_batch['binary'])               # (N,1,H,W)
    ptb = _flat2d(pre_batch['thresh_binary'])       # (N,1,H,W)
    pt = _flat2d(pre_batch['thresh'][:, 0])         # MaskL1Loss uses pred[:, 0]
    gtf = _flat2d(gt_batch['gt'])                   # (N,1,H,W)
    maskf = _flat2d(gt_batch['mask'])               # (N,1,H,W)
    tmapf = _flat2d(gt_batch['thresh_map'])         # (N,H,W)
    tmaskf = _flat2d(gt_batch['thresh_mask'])       # (N,H,W)

    rows = pb.shape[0]
    block_rows = min(max_block_rows, _round_up(rows, CHUNK_ROWS))
    nb = _round_up(rows, block_rows) // block_rows           # number of real blocks
    num_cores = 2 if (cfg['core_split'] and nb >= 2) else 1  # 2 only on v7x
    inner = _round_up(nb, num_cores) // num_cores            # blocks per core
    ragged = (num_cores * inner * block_rows) != rows

    nbins = cfg['nbins']
    hist_dtype = cfg['hist_dtype']
    hist_slab = cfg['hist_slab']
    edges = _bin_edges(nbins)

    kernel = functools.partial(
        _db_loss_stats_kernel,
        inner_steps=inner, block_rows=block_rows,
        n_chunks=block_rows // CHUNK_ROWS, nb=nb, rows_valid=rows,
        ragged=ragged, edges=edges, nbins=nbins,
        hist_dtype=hist_dtype, hist_slab=hist_slab)

    in_spec = pl.BlockSpec(
        (block_rows, LANES),
        # clamp so a padded trailing grid step re-reads a valid block; its contribution
        # is zeroed by the in-kernel tail masking.
        lambda c, i: (jnp.minimum(c * inner + i, nb - 1), 0))

    if num_cores == 2:
        # v7x only: guarantee the two-TensorCore split.
        dims = (getattr(pltpu, 'CORE_PARALLEL', 'parallel'),
                getattr(pltpu, 'ARBITRARY', 'arbitrary'))
    else:
        dims = ('arbitrary', 'arbitrary')
    cp_kwargs = dict(dimension_semantics=dims)
    if cfg['vmem_limit'] is not None:
        cp_kwargs['vmem_limit_bytes'] = cfg['vmem_limit']

    stat_out, cnt_out, sum_out = pl.pallas_call(
        kernel,
        out_shape=(
            jax.ShapeDtypeStruct((num_cores, NSTATS, 8, LANES), jnp.float32),
            jax.ShapeDtypeStruct((num_cores, nbins, hist_slab, LANES), jnp.float32),
            jax.ShapeDtypeStruct((num_cores, nbins, hist_slab, LANES), jnp.float32),
        ),
        grid_spec=pltpu.PrefetchScalarGridSpec(
            num_scalar_prefetch=0,
            grid=(num_cores, inner),
            in_specs=[in_spec] * 7,
            out_specs=(
                pl.BlockSpec((1, NSTATS, 8, LANES), lambda c, i: (c, 0, 0, 0)),
                pl.BlockSpec((1, nbins, hist_slab, LANES), lambda c, i: (c, 0, 0, 0)),
                pl.BlockSpec((1, nbins, hist_slab, LANES), lambda c, i: (c, 0, 0, 0)),
            ),
        ),
        compiler_params=pltpu.CompilerParams(**cp_kwargs),
    )(pb, ptb, pt, gtf, maskf, tmapf, tmaskf)

    # tiny final reductions of the lane-wise partial sums (done in plain XLA)
    stats = jnp.sum(stat_out, axis=(0, 2, 3))        # (NSTATS,)
    cnt_ge = jnp.sum(cnt_out, axis=(0, 2, 3))        # (nbins,)  #{v >= edge_b}
    sum_ge = jnp.sum(sum_out, axis=(0, 2, 3))        # (nbins,)  sum of v where v >= edge_b

    pos_sum = stats[0]
    neg_sum = stats[1]
    pos_bce_sum = stats[2]
    inter = stats[3]
    union_pred = stats[4]
    l1_sum = stats[5]
    tmask_sum = stats[6]

    # --- BalanceCrossEntropyLoss (OHEM): top-k sum from the cumulative histogram ---
    pos_count = jnp.floor(pos_sum)
    k = jnp.minimum(jnp.floor(neg_sum), jnp.floor(pos_count * NEG_RATIO))
    has = cnt_ge >= k                                 # cnt_ge non-increasing -> prefix of Trues
    num = jnp.sum(has.astype(jnp.int32))
    take_all = num == 0                               # k exceeds every bin's tail count
    jstar = jnp.maximum(num - 1, 0)
    cnt_ext = jnp.concatenate([cnt_ge, jnp.zeros((1,), jnp.float32)])
    sum_ext = jnp.concatenate([sum_ge, jnp.zeros((1,), jnp.float32)])
    cnt_hi = cnt_ext[jstar + 1]                       # count strictly above boundary bin
    sum_hi = sum_ext[jstar + 1]                       # sum strictly above boundary bin
    bin_cnt = cnt_ext[jstar] - cnt_hi
    bin_sum = sum_ext[jstar] - sum_hi
    need = k - cnt_hi
    corr = need * bin_sum / jnp.maximum(bin_cnt, 1.0)  # boundary-bin mean correction
    neg_topk_sum = jnp.where(take_all, sum_ext[0], sum_hi + corr)
    balance_bce = (pos_bce_sum + neg_topk_sum) / (pos_count + k + EPS)

    # --- DiceLoss on thresh_binary vs gt ---
    dice = 1.0 - 2.0 * inter / (union_pred + pos_sum + EPS)

    # --- MaskL1Loss on thresh vs thresh_map ---
    safe_den = jnp.where(tmask_sum == 0.0, 1.0, tmask_sum)
    l1 = jnp.where(tmask_sum == 0.0, 0.0, l1_sum / safe_den)

    loss_total = bce_scale * balance_bce + dice + l1_scale * l1
    return {'loss_total': loss_total, 'loss_bce': balance_bce,
            'loss_dice': dice, 'loss_l1': l1}


class DetLoss:
    """JAX/Pallas port of the ptocr DetLoss dispatcher. Only the 'DB' algorithm is implemented."""

    def __init__(self, config):
        self.algorithm = config['base']['algorithm']
        if self.algorithm == 'DB':
            self.loss = functools.partial(
                db_loss,
                l1_scale=float(config['loss']['l1_scale']),
                bce_scale=float(config['loss']['bce_scale']))
        else:
            # TODO(synk): PAN / PSE / SAST loss branches not implemented (DB only).
            raise AssertionError('not support this algorithm !!!')

    def __call__(self, pre_batch, gt_batch):
        return self.loss(pre_batch, gt_batch)


def db_loss_reference(pre_batch, gt_batch, l1_scale=10.0, bce_scale=5.0):
    """Pure-JAX reference (exact sort-based OHEM) used only for self-checking."""
    f32 = jnp.float32
    pb = pre_batch['binary'].astype(f32).reshape(-1)
    ptb = pre_batch['thresh_binary'].astype(f32).reshape(-1)
    pt = pre_batch['thresh'][:, 0].astype(f32).reshape(-1)
    gt = gt_batch['gt'].astype(f32).reshape(-1)
    mask = gt_batch['mask'].astype(f32).reshape(-1)
    tmap = gt_batch['thresh_map'].astype(f32).reshape(-1)
    tmask = gt_batch['thresh_mask'].astype(f32).reshape(-1)

    logp = jnp.maximum(jnp.log(pb), LOG_FLOOR)
    log1mp = jnp.maximum(jnp.log(1.0 - pb), LOG_FLOOR)
    bce = -(gt * logp + (1.0 - gt) * log1mp)
    pos = gt * mask
    neg = (1.0 - gt) * mask
    pos_sum = jnp.sum(pos)
    pos_count = jnp.floor(pos_sum)
    k = jnp.minimum(jnp.floor(jnp.sum(neg)), jnp.floor(pos_count * NEG_RATIO))
    srt = -jnp.sort(-(bce * neg))
    idx = jnp.arange(srt.shape[0], dtype=jnp.int32)
    neg_topk = jnp.sum(jnp.where(idx < k.astype(jnp.int32), srt, 0.0))
    balance_bce = (jnp.sum(bce * pos) + neg_topk) / (pos_count + k + EPS)
    dice = 1.0 - 2.0 * jnp.sum(ptb * pos) / (jnp.sum(ptb * mask) + pos_sum + EPS)
    ts = jnp.sum(tmask)
    l1 = jnp.where(ts == 0.0, 0.0,
                   jnp.sum(jnp.abs(pt - tmap) * tmask) / jnp.where(ts == 0.0, 1.0, ts))
    return {'loss_total': bce_scale * balance_bce + dice + l1_scale * l1,
            'loss_bce': balance_bce, 'loss_dice': dice, 'loss_l1': l1}


def _make_batch(key, n, h, w, gt_density):
    ks = jax.random.split(key, 7)
    pre_batch = {
        'binary': jax.nn.sigmoid(jax.random.normal(ks[0], (n, 1, h, w), jnp.float32)),
        'thresh': jax.nn.sigmoid(jax.random.normal(ks[1], (n, 1, h, w), jnp.float32)),
        'thresh_binary': jax.nn.sigmoid(jax.random.normal(ks[2], (n, 1, h, w), jnp.float32)),
    }
    gt_batch = {
        'gt': jax.random.bernoulli(ks[3], gt_density, (n, 1, h, w)).astype(jnp.float32),
        'mask': jax.random.bernoulli(ks[4], 0.9, (n, 1, h, w)).astype(jnp.float32),
        'thresh_map': jax.random.uniform(ks[5], (n, h, w), jnp.float32, 0.3, 0.7),
        'thresh_mask': jax.random.bernoulli(ks[6], 0.5, (n, h, w)).astype(jnp.float32),
    }
    return pre_batch, gt_batch


def _check(got, ref, nbins):
    # bce uses the documented histogram OHEM approximation; tolerance scales with the
    # bin coarseness (32-bin paths ~1-2% observed, 16-bin v5e path ~3%).
    bce_tol = 5e-2 if nbins >= 32 else 8e-2
    tol = {'loss_dice': 3e-3, 'loss_l1': 3e-3, 'loss_bce': bce_tol, 'loss_total': bce_tol}
    for name, t in tol.items():
        g, r = float(got[name]), float(ref[name])
        assert abs(g - r) <= t * max(1.0, abs(r)), (name, g, r)


if __name__ == "__main__":
    key = jax.random.PRNGKey(0)
    k1, k2, k3 = jax.random.split(key, 3)

    config = {
        'base': {'algorithm': 'DB'},
        'loss': {'function': 'ptocr.model.loss.db_loss,DBLoss',
                 'l1_scale': 10, 'bce_scale': 5},
    }
    det_loss = DetLoss(config)
    cfg = _flavor_config()
    nbins = cfg['nbins']

    # 1) small case: single partial block -> tail-masked path only
    pre_batch, gt_batch = _make_batch(k1, 2, 32, 32, gt_density=0.3)
    losses = det_loss(pre_batch, gt_batch)
    losses = jax.tree_util.tree_map(jax.block_until_ready, losses)
    _check(losses, db_loss_reference(pre_batch, gt_batch), nbins)

    # 2) multi-block grid: clean blocks + gated masked tail block, genuinely partial
    #    OHEM top-k (and the v7x 2-core split if running on v7x)
    pre2, gt2 = _make_batch(k2, 2, 160, 128, gt_density=0.12)
    losses2 = db_loss(pre2, gt2, max_block_rows=128)
    losses2 = jax.tree_util.tree_map(jax.block_until_ready, losses2)
    _check(losses2, db_loss_reference(pre2, gt2), nbins)

    # 3) exactly-tiled case (rows == block_rows): exercises the non-ragged kernel path
    pre3, gt3 = _make_batch(k3, 2, 256, 256, gt_density=0.15)
    losses3 = db_loss(pre3, gt3)
    losses3 = jax.tree_util.tree_map(jax.block_until_ready, losses3)
    _check(losses3, db_loss_reference(pre3, gt3), nbins)

    print("KERNEL_OK")
</pallas_src>

<mosaic_0001>
module attributes {stable_mosaic.version = 11 : i64} {
  func.func @_db_loss_stats_kernel(%arg0: i32, %arg1: i32, %arg2: memref<128x128xf32, #tpu.memory_space<vmem>>, %arg3: memref<128x128xf32, #tpu.memory_space<vmem>>, %arg4: memref<128x128xf32, #tpu.memory_space<vmem>>, %arg5: memref<128x128xf32, #tpu.memory_space<vmem>>, %arg6: memref<128x128xf32, #tpu.memory_space<vmem>>, %arg7: memref<128x128xf32, #tpu.memory_space<vmem>>, %arg8: memref<128x128xf32, #tpu.memory_space<vmem>>, %arg9: memref<1x8x8x128xf32, #tpu.memory_space<vmem>>, %arg10: memref<1x32x8x128xf32, #tpu.memory_space<vmem>>, %arg11: memref<1x32x8x128xf32, #tpu.memory_space<vmem>>) attributes {dimension_semantics = [#tpu.dimension_semantics<arbitrary>, #tpu.dimension_semantics<arbitrary>], iteration_bounds = array<i64: 1, 1>, scalar_prefetch = 0 : i64, scratch_operands = 0 : i64, tpu.core_type = #tpu.core_type<tc>, window_params = [{transform_indices = @transform_0, window_bounds = array<i64: 128, 128>}, {transform_indices = @transform_1, window_bounds = array<i64: 128, 128>}, {transform_indices = @transform_2, window_bounds = array<i64: 128, 128>}, {transform_indices = @transform_3, window_bounds = array<i64: 128, 128>}, {transform_indices = @transform_4, window_bounds = array<i64: 128, 128>}, {transform_indices = @transform_5, window_bounds = array<i64: 128, 128>}, {transform_indices = @transform_6, window_bounds = array<i64: 128, 128>}, {transform_indices = @transform_7, window_bounds = array<i64: 1, 8, 8, 128>}, {transform_indices = @transform_8, window_bounds = array<i64: 1, 32, 8, 128>}, {transform_indices = @transform_9, window_bounds = array<i64: 1, 32, 8, 128>}]} {
    %c0_i32 = arith.constant 0 : i32
    %0 = arith.cmpi eq, %arg1, %c0_i32 : i32
    %1 = arith.extui %0 : i1 to i32
    %c0_i32_0 = arith.constant 0 : i32
    %2 = arith.cmpi ne, %1, %c0_i32_0 : i32
    scf.if %2 {
      %cst_666 = arith.constant 0.000000e+00 : f32
      %862 = vector.broadcast %cst_666 : f32 to vector<1x8x8x128xf32>
      %c0_667 = arith.constant 0 : index
      %c0_668 = arith.constant 0 : index
      %c0_669 = arith.constant 0 : index
      %c0_670 = arith.constant 0 : index
      %863 = vector.load %arg9[%c0_667, %c0_668, %c0_669, %c0_670] : memref<1x8x8x128xf32, #tpu.memory_space<vmem>>, vector<1x8x8x128xf32>
      tpu.vector_store %arg9[%c0_667, %c0_668, %c0_669, %c0_670], %862 {strides = array<i32>} : memref<1x8x8x128xf32, #tpu.memory_space<vmem>>, vector<1x8x8x128xf32>,
      %cst_671 = arith.constant 0.000000e+00 : f32
      %864 = vector.broadcast %cst_671 : f32 to vector<1x32x8x128xf32>
      %c0_672 = arith.constant 0 : index
      %c0_673 = arith.constant 0 : index
      %c0_674 = arith.constant 0 : index
      %c0_675 = arith.constant 0 : index
      %865 = vector.load %arg10[%c0_672, %c0_673, %c0_674, %c0_675] : memref<1x32x8x128xf32, #tpu.memory_space<vmem>>, vector<1x32x8x128xf32>
      tpu.vector_store %arg10[%c0_672, %c0_673, %c0_674, %c0_675], %864 {strides = array<i32>} : memref<1x32x8x128xf32, #tpu.memory_space<vmem>>, vector<1x32x8x128xf32>,
      %cst_676 = arith.constant 0.000000e+00 : f32
      %866 = vector.broadcast %cst_676 : f32 to vector<1x32x8x128xf32>
      %c0_677 = arith.constant 0 : index
      %c0_678 = arith.constant 0 : index
      %c0_679 = arith.constant 0 : index
      %c0_680 = arith.constant 0 : index
      %867 = vector.load %arg11[%c0_677, %c0_678, %c0_679, %c0_680] : memref<1x32x8x128xf32, #tpu.memory_space<vmem>>, vector<1x32x8x128xf32>
      tpu.vector_store %arg11[%c0_677, %c0_678, %c0_679, %c0_680], %866 {strides = array<i32>} : memref<1x32x8x128xf32, #tpu.memory_space<vmem>>, vector<1x32x8x128xf32>,
    } else {
    }
    %c1_i32 = arith.constant 1 : i32
    %3 = arith.muli %arg0, %c1_i32 : i32
    %4 = arith.addi %3, %arg1 : i32
    %5 = tpu.iota {dimensions = array<i32: 0>} : vector<128x128xi32>
    %c128_i32 = arith.constant 128 : i32
    %6 = arith.muli %4, %c128_i32 : i32
    %cst = arith.constant 1.000000e+00 : f32
    %cst_1 = arith.constant 0.000000e+00 : f32
    %c0_i32_2 = arith.constant 0 : i32
    %c1_i32_3 = arith.constant 1 : i32
    %7 = arith.muli %c0_i32_2, %c1_i32_3 : i32
    %c0_i32_4 = arith.constant 0 : i32
    %8 = arith.addi %c0_i32_4, %7 : i32
    %c128_i32_5 = arith.constant 128 : i32
    %9 = arith.muli %8, %c128_i32_5 : i32
    %10 = tpu.assume_multiple %9, 128 : i32
    %11 = arith.index_cast %10 : i32 to index
    %c0 = arith.constant 0 : index
    %12 = vector.load %arg2[%11, %c0] : memref<128x128xf32, #tpu.memory_space<vmem>>, vector<128x128xf32>
    %13 = arith.index_cast %10 : i32 to index
    %c0_6 = arith.constant 0 : index
    %14 = vector.load %arg3[%13, %c0_6] : memref<128x128xf32, #tpu.memory_space<vmem>>, vector<128x128xf32>
    %15 = arith.index_cast %10 : i32 to index
    %c0_7 = arith.constant 0 : index
    %16 = vector.load %arg4[%15, %c0_7] : memref<128x128xf32, #tpu.memory_space<vmem>>, vector<128x128xf32>
    %17 = arith.index_cast %10 : i32 to index
    %c0_8 = arith.constant 0 : index
    %18 = vector.load %arg5[%17, %c0_8] : memref<128x128xf32, #tpu.memory_space<vmem>>, vector<128x128xf32>
    %19 = arith.index_cast %10 : i32 to index
    %c0_9 = arith.constant 0 : index
    %20 = vector.load %arg6[%19, %c0_9] : memref<128x128xf32, #tpu.memory_space<vmem>>, vector<128x128xf32>
    %21 = arith.index_cast %10 : i32 to index
    %c0_10 = arith.constant 0 : index
    %22 = vector.load %arg7[%21, %c0_10] : memref<128x128xf32, #tpu.memory_space<vmem>>, vector<128x128xf32>
    %23 = arith.index_cast %10 : i32 to index
    %c0_11 = arith.constant 0 : index
    %24 = vector.load %arg8[%23, %c0_11] : memref<128x128xf32, #tpu.memory_space<vmem>>, vector<128x128xf32>
    %25 = arith.addi %6, %10 : i32
    %26 = vector.broadcast %25 : i32 to vector<128x128xi32>
    %27 = arith.addi %26, %5 : vector<128x128xi32>
    %c16_i32 = arith.constant 16 : i32
    %28 = vector.broadcast %c16_i32 : i32 to vector<128x128xi32>
    %29 = arith.cmpi slt, %27, %28 : vector<128x128xi32>
    %cst_12 = arith.constant 5.000000e-01 : f32
    %30 = vector.broadcast %cst_12 : f32 to vector<128x128xf32>
    %31 = arith.select %29, %12, %30 : vector<128x128xi1>, vector<128x128xf32>
    %cst_13 = arith.constant 0.000000e+00 : f32
    %32 = vector.broadcast %cst_13 : f32 to vector<128x128xf32>
    %33 = arith.select %29, %14, %32 : vector<128x128xi1>, vector<128x128xf32>
    %cst_14 = arith.constant 0.000000e+00 : f32
    %34 = vector.broadcast %cst_14 : f32 to vector<128x128xf32>
    %35 = arith.select %29, %16, %34 : vector<128x128xi1>, vector<128x128xf32>
    %cst_15 = arith.constant 0.000000e+00 : f32
    %36 = vector.broadcast %cst_15 : f32 to vector<128x128xf32>
    %37 = arith.select %29, %18, %36 : vector<128x128xi1>, vector<128x128xf32>
    %cst_16 = arith.constant 0.000000e+00 : f32
    %38 = vector.broadcast %cst_16 : f32 to vector<128x128xf32>
    %39 = arith.select %29, %20, %38 : vector<128x128xi1>, vector<128x128xf32>
    %cst_17 = arith.constant 0.000000e+00 : f32
    %40 = vector.broadcast %cst_17 : f32 to vector<128x128xf32>
    %41 = arith.select %29, %22, %40 : vector<128x128xi1>, vector<128x128xf32>
    %cst_18 = arith.constant 0.000000e+00 : f32
    %42 = vector.broadcast %cst_18 : f32 to vector<128x128xf32>
    %43 = arith.select %29, %24, %42 : vector<128x128xi1>, vector<128x128xf32>
    %44 = math.log %31 : vector<128x128xf32>
    %cst_19 = arith.constant -1.000000e+02 : f32
    %45 = vector.broadcast %cst_19 : f32 to vector<128x128xf32>
    %46 = arith.maximumf %44, %45 : vector<128x128xf32>
    %cst_20 = arith.constant 1.000000e+00 : f32
    %47 = vector.broadcast %cst_20 : f32 to vector<128x128xf32>
    %48 = arith.subf %47, %31 : vector<128x128xf32>
    %49 = math.log %48 : vector<128x128xf32>
    %cst_21 = arith.constant -1.000000e+02 : f32
    %50 = vector.broadcast %cst_21 : f32 to vector<128x128xf32>
    %51 = arith.maximumf %49, %50 : vector<128x128xf32>
    %52 = arith.mulf %37, %46 : vector<128x128xf32>
    %cst_22 = arith.constant 1.000000e+00 : f32
    %53 = vector.broadcast %cst_22 : f32 to vector<128x128xf32>
    %54 = arith.subf %53, %37 : vector<128x128xf32>
    %55 = arith.mulf %54, %51 : vector<128x128xf32>
    %56 = arith.addf %52, %55 : vector<128x128xf32>
    %cst_23 = arith.constant 0.000000e+00 : f32
    %57 = vector.broadcast %cst_23 : f32 to vector<128x128xf32>
    %58 = arith.subf %57, %56 : vector<128x128xf32>
    %59 = arith.mulf %37, %39 : vector<128x128xf32>
    %cst_24 = arith.constant 1.000000e+00 : f32
    %60 = vector.broadcast %cst_24 : f32 to vector<128x128xf32>
    %61 = arith.subf %60, %37 : vector<128x128xf32>
    %62 = arith.mulf %61, %39 : vector<128x128xf32>
    %63 = arith.mulf %58, %62 : vector<128x128xf32>
    %c0_25 = arith.constant 0 : index
    %c0_26 = arith.constant 0 : index
    %c0_27 = arith.constant 0 : index
    %c0_28 = arith.constant 0 : index
    %64 = vector.load %arg9[%c0_25, %c0_26, %c0_27, %c0_28] : memref<1x8x8x128xf32, #tpu.memory_space<vmem>>, vector<1x1x8x128xf32>
    %65 = vector.shape_cast %64 : vector<1x1x8x128xf32> to vector<8x128xf32>
    %66 = vector.shape_cast %59 : vector<128x128xf32> to vector<16x8x128xf32>
    %cst_29 = arith.constant dense<0.000000e+00> : vector<8x128xf32>
    %67 = vector.multi_reduction <add>, %66, %cst_29 [0] : vector<16x8x128xf32> to vector<8x128xf32>
    %68 = arith.addf %65, %67 : vector<8x128xf32>
    %c0_30 = arith.constant 0 : index
    %c0_31 = arith.constant 0 : index
    %c0_32 = arith.constant 0 : index
    %c0_33 = arith.constant 0 : index
    %69 = vector.load %arg9[%c0_30, %c0_31, %c0_32, %c0_33] : memref<1x8x8x128xf32, #tpu.memory_space<vmem>>, vector<1x1x8x128xf32>
    %70 = vector.shape_cast %69 : vector<1x1x8x128xf32> to vector<8x128xf32>
    %71 = vector.shape_cast %68 : vector<8x128xf32> to vector<1x1x8x128xf32>
    tpu.vector_store %arg9[%c0_30, %c0_31, %c0_32, %c0_33], %71 {strides = array<i32>} : memref<1x8x8x128xf32, #tpu.memory_space<vmem>>, vector<1x1x8x128xf32>,
    %c0_34 = arith.constant 0 : index
    %c1 = arith.constant 1 : index
    %c0_35 = arith.constant 0 : index
    %c0_36 = arith.constant 0 : index
    %72 = vector.load %arg9[%c0_34, %c1, %c0_35, %c0_36] : memref<1x8x8x128xf32, #tpu.memory_space<vmem>>, vector<1x1x8x128xf32>
    %73 = vector.shape_cast %72 : vector<1x1x8x128xf32> to vector<8x128xf32>
    %74 = vector.shape_cast %62 : vector<128x128xf32> to vector<16x8x128xf32>
    %cst_37 = arith.constant dense<0.000000e+00> : vector<8x128xf32>
    %75 = vector.multi_reduction <add>, %74, %cst_37 [0] : vector<16x8x128xf32> to vector<8x128xf32>
    %76 = arith.addf %73, %75 : vector<8x128xf32>
    %c0_38 = arith.constant 0 : index
    %c1_39 = arith.constant 1 : index
    %c0_40 = arith.constant 0 : index
    %c0_41 = arith.constant 0 : index
    %77 = vector.load %arg9[%c0_38, %c1_39, %c0_40, %c0_41] : memref<1x8x8x128xf32, #tpu.memory_space<vmem>>, vector<1x1x8x128xf32>
    %78 = vector.shape_cast %77 : vector<1x1x8x128xf32> to vector<8x128xf32>
    %79 = vector.shape_cast %76 : vector<8x128xf32> to vector<1x1x8x128xf32>
    tpu.vector_store %arg9[%c0_38, %c1_39, %c0_40, %c0_41], %79 {strides = array<i32>} : memref<1x8x8x128xf32, #tpu.memory_space<vmem>>, vector<1x1x8x128xf32>,
    %c0_42 = arith.constant 0 : index
    %c2 = arith.constant 2 : index
    %c0_43 = arith.constant 0 : index
    %c0_44 = arith.constant 0 : index
    %80 = vector.load %arg9[%c0_42, %c2, %c0_43, %c0_44] : memref<1x8x8x128xf32, #tpu.memory_space<vmem>>, vector<1x1x8x128xf32>
    %81 = vector.shape_cast %80 : vector<1x1x8x128xf32> to vector<8x128xf32>
    %82 = arith.mulf %58, %59 : vector<128x128xf32>
    %83 = vector.shape_cast %82 : vector<128x128xf32> to vector<16x8x128xf32>
    %cst_45 = arith.constant dense<0.000000e+00> : vector<8x128xf32>
    %84 = vector.multi_reduction <add>, %83, %cst_45 [0] : vector<16x8x128xf32> to vector<8x128xf32>
    %85 = arith.addf %81, %84 : vector<8x128xf32>
    %c0_46 = arith.constant 0 : index
    %c2_47 = arith.constant 2 : index
    %c0_48 = arith.constant 0 : index
    %c0_49 = arith.constant 0 : index
    %86 = vector.load %arg9[%c0_46, %c2_47, %c0_48, %c0_49] : memref<1x8x8x128xf32, #tpu.memory_space<vmem>>, vector<1x1x8x128xf32>
    %87 = vector.shape_cast %86 : vector<1x1x8x128xf32> to vector<8x128xf32>
    %88 = vector.shape_cast %85 : vector<8x128xf32> to vector<1x1x8x128xf32>
    tpu.vector_store %arg9[%c0_46, %c2_47, %c0_48, %c0_49], %88 {strides = array<i32>} : memref<1x8x8x128xf32, #tpu.memory_space<vmem>>, vector<1x1x8x128xf32>,
    %c0_50 = arith.constant 0 : index
    %c3 = arith.constant 3 : index
    %c0_51 = arith.constant 0 : index
    %c0_52 = arith.constant 0 : index
    %89 = vector.load %arg9[%c0_50, %c3, %c0_51, %c0_52] : memref<1x8x8x128xf32, #tpu.memory_space<vmem>>, vector<1x1x8x128xf32>
    %90 = vector.shape_cast %89 : vector<1x1x8x128xf32> to vector<8x128xf32>
    %91 = arith.mulf %33, %59 : vector<128x128xf32>
    %92 = vector.shape_cast %91 : vector<128x128xf32> to vector<16x8x128xf32>
    %cst_53 = arith.constant dense<0.000000e+00> : vector<8x128xf32>
    %93 = vector.multi_reduction <add>, %92, %cst_53 [0] : vector<16x8x128xf32> to vector<8x128xf32>
    %94 = arith.addf %90, %93 : vector<8x128xf32>
    %c0_54 = arith.constant 0 : index
    %c3_55 = arith.constant 3 : index
    %c0_56 = arith.constant 0 : index
    %c0_57 = arith.constant 0 : index
    %95 = vector.load %arg9[%c0_54, %c3_55, %c0_56, %c0_57] : memref<1x8x8x128xf32, #tpu.memory_space<vmem>>, vector<1x1x8x128xf32>
    %96 = vector.shape_cast %95 : vector<1x1x8x128xf32> to vector<8x128xf32>
    %97 = vector.shape_cast %94 : vector<8x128xf32> to vector<1x1x8x128xf32>
    tpu.vector_store %arg9[%c0_54, %c3_55, %c0_56, %c0_57], %97 {strides = array<i32>} : memref<1x8x8x128xf32, #tpu.memory_space<vmem>>, vector<1x1x8x128xf32>,
    %c0_58 = arith.constant 0 : index
    %c4 = arith.constant 4 : index
    %c0_59 = arith.constant 0 : index
    %c0_60 = arith.constant 0 : index
    %98 = vector.load %arg9[%c0_58, %c4, %c0_59, %c0_60] : memref<1x8x8x128xf32, #tpu.memory_space<vmem>>, vector<1x1x8x128xf32>
    %99 = vector.shape_cast %98 : vector<1x1x8x128xf32> to vector<8x128xf32>
    %100 = arith.mulf %33, %39 : vector<128x128xf32>
    %101 = vector.shape_cast %100 : vector<128x128xf32> to vector<16x8x128xf32>
    %cst_61 = arith.constant dense<0.000000e+00> : vector<8x128xf32>
    %102 = vector.multi_reduction <add>, %101, %cst_61 [0] : vector<16x8x128xf32> to vector<8x128xf32>
    %103 = arith.addf %99, %102 : vector<8x128xf32>
    %c0_62 = arith.constant 0 : index
    %c4_63 = arith.constant 4 : index
    %c0_64 = arith.constant 0 : index
    %c0_65 = arith.constant 0 : index
    %104 = vector.load %arg9[%c0_62, %c4_63, %c0_64, %c0_65] : memref<1x8x8x128xf32, #tpu.memory_space<vmem>>, vector<1x1x8x128xf32>
    %105 = vector.shape_cast %104 : vector<1x1x8x128xf32> to vector<8x128xf32>
    %106 = vector.shape_cast %103 : vector<8x128xf32> to vector<1x1x8x128xf32>
    tpu.vector_store %arg9[%c0_62, %c4_63, %c0_64, %c0_65], %106 {strides = array<i32>} : memref<1x8x8x128xf32, #tpu.memory_space<vmem>>, vector<1x1x8x128xf32>,
    %c0_66 = arith.constant 0 : index
    %c5 = arith.constant 5 : index
    %c0_67 = arith.constant 0 : index
    %c0_68 = arith.constant 0 : index
    %107 = vector.load %arg9[%c0_66, %c5, %c0_67, %c0_68] : memref<1x8x8x128xf32, #tpu.memory_space<vmem>>, vector<1x1x8x128xf32>
    %108 = vector.shape_cast %107 : vector<1x1x8x128xf32> to vector<8x128xf32>
    %109 = arith.subf %35, %41 : vector<128x128xf32>
    %110 = math.absf %109 : vector<128x128xf32>
    %111 = arith.mulf %110, %43 : vector<128x128xf32>
    %112 = vector.shape_cast %111 : vector<128x128xf32> to vector<16x8x128xf32>
    %cst_69 = arith.constant dense<0.000000e+00> : vector<8x128xf32>
    %113 = vector.multi_reduction <add>, %112, %cst_69 [0] : vector<16x8x128xf32> to vector<8x128xf32>
    %114 = arith.addf %108, %113 : vector<8x128xf32>
    %c0_70 = arith.constant 0 : index
    %c5_71 = arith.constant 5 : index
    %c0_72 = arith.constant 0 : index
    %c0_73 = arith.constant 0 : index
    %115 = vector.load %arg9[%c0_70, %c5_71, %c0_72, %c0_73] : memref<1x8x8x128xf32, #tpu.memory_space<vmem>>, vector<1x1x8x128xf32>
    %116 = vector.shape_cast %115 : vector<1x1x8x128xf32> to vector<8x128xf32>
    %117 = vector.shape_cast %114 : vector<8x128xf32> to vector<1x1x8x128xf32>
    tpu.vector_store %arg9[%c0_70, %c5_71, %c0_72, %c0_73], %117 {strides = array<i32>} : memref<1x8x8x128xf32, #tpu.memory_space<vmem>>, vector<1x1x8x128xf32>,
    %c0_74 = arith.constant 0 : index
    %c6 = arith.constant 6 : index
    %c0_75 = arith.constant 0 : index
    %c0_76 = arith.constant 0 : index
    %118 = vector.load %arg9[%c0_74, %c6, %c0_75, %c0_76] : memref<1x8x8x128xf32, #tpu.memory_space<vmem>>, vector<1x1x8x128xf32>
    %119 = vector.shape_cast %118 : vector<1x1x8x128xf32> to vector<8x128xf32>
    %120 = vector.shape_cast %43 : vector<128x128xf32> to vector<16x8x128xf32>
    %cst_77 = arith.constant dense<0.000000e+00> : vector<8x128xf32>
    %121 = vector.multi_reduction <add>, %120, %cst_77 [0] : vector<16x8x128xf32> to vector<8x128xf32>
    %122 = arith.addf %119, %121 : vector<8x128xf32>
    %c0_78 = arith.constant 0 : index
    %c6_79 = arith.constant 6 : index
    %c0_80 = arith.constant 0 : index
    %c0_81 = arith.constant 0 : index
    %123 = vector.load %arg9[%c0_78, %c6_79, %c0_80, %c0_81] : memref<1x8x8x128xf32, #tpu.memory_space<vmem>>, vector<1x1x8x128xf32>
    %124 = vector.shape_cast %123 : vector<1x1x8x128xf32> to vector<8x128xf32>
    %125 = vector.shape_cast %122 : vector<8x128xf32> to vector<1x1x8x128xf32>
    tpu.vector_store %arg9[%c0_78, %c6_79, %c0_80, %c0_81], %125 {strides = array<i32>} : memref<1x8x8x128xf32, #tpu.memory_space<vmem>>, vector<1x1x8x128xf32>,
    %cst_82 = arith.constant 9.99999996E-13 : f32
    %126 = vector.broadcast %cst_82 : f32 to vector<128x128xf32>
    %127 = arith.cmpf oge, %63, %126 : vector<128x128xf32>
    %c0_83 = arith.constant 0 : index
    %c0_84 = arith.constant 0 : index
    %c0_85 = arith.constant 0 : index
    %c0_86 = arith.constant 0 : index
    %128 = vector.load %arg10[%c0_83, %c0_84, %c0_85, %c0_86] : memref<1x32x8x128xf32, #tpu.memory_space<vmem>>, vector<1x1x8x128xf32>
    %129 = vector.shape_cast %128 : vector<1x1x8x128xf32> to vector<8x128xf32>
    %130 = vector.broadcast %cst : f32 to vector<128x128xf32>
    %131 = vector.broadcast %cst_1 : f32 to vector<128x128xf32>
    %132 = arith.select %127, %130, %131 : vector<128x128xi1>, vector<128x128xf32>
    %133 = vector.shape_cast %132 : vector<128x128xf32> to vector<16x8x128xf32>
    %cst_87 = arith.constant dense<0.000000e+00> : vector<8x128xf32>
    %134 = vector.multi_reduction <add>, %133, %cst_87 [0] : vector<16x8x128xf32> to vector<8x128xf32>
    %135 = arith.addf %129, %134 : vector<8x128xf32>
    %c0_88 = arith.constant 0 : index
    %c0_89 = arith.constant 0 : index
    %c0_90 = arith.constant 0 : index
    %c0_91 = arith.constant 0 : index
    %136 = vector.load %arg10[%c0_88, %c0_89, %c0_90, %c0_91] : memref<1x32x8x128xf32, #tpu.memory_space<vmem>>, vector<1x1x8x128xf32>
    %137 = vector.shape_cast %136 : vector<1x1x8x128xf32> to vector<8x128xf32>
    %138 = vector.shape_cast %135 : vector<8x128xf32> to vector<1x1x8x128xf32>
    tpu.vector_store %arg10[%c0_88, %c0_89, %c0_90, %c0_91], %138 {strides = array<i32>} : memref<1x32x8x128xf32, #tpu.memory_space<vmem>>, vector<1x1x8x128xf32>,
    %c0_92 = arith.constant 0 : index
    %c0_93 = arith.constant 0 : index
    %c0_94 = arith.constant 0 : index
    %c0_95 = arith.constant 0 : index
    %139 = vector.load %arg11[%c0_92, %c0_93, %c0_94, %c0_95] : memref<1x32x8x128xf32, #tpu.memory_space<vmem>>, vector<1x1x8x128xf32>
    %140 = vector.shape_cast %139 : vector<1x1x8x128xf32> to vector<8x128xf32>
    %141 = vector.broadcast %cst_1 : f32 to vector<128x128xf32>
    %142 = arith.select %127, %63, %141 : vector<128x128xi1>, vector<128x128xf32>
    %143 = vector.shape_cast %142 : vector<128x128xf32> to vector<16x8x128xf32>
    %cst_96 = arith.constant dense<0.000000e+00> : vector<8x128xf32>
    %144 = vector.multi_reduction <add>, %143, %cst_96 [0] : vector<16x8x128xf32> to vector<8x128xf32>
    %145 = arith.addf %140, %144 : vector<8x128xf32>
    %c0_97 = arith.constant 0 : index
    %c0_98 = arith.constant 0 : index
    %c0_99 = arith.constant 0 : index
    %c0_100 = arith.constant 0 : index
    %146 = vector.load %arg11[%c0_97, %c0_98, %c0_99, %c0_100] : memref<1x32x8x128xf32, #tpu.memory_space<vmem>>, vector<1x1x8x128xf32>
    %147 = vector.shape_cast %146 : vector<1x1x8x128xf32> to vector<8x128xf32>
    %148 = vector.shape_cast %145 : vector<8x128xf32> to vector<1x1x8x128xf32>
    tpu.vector_store %arg11[%c0_97, %c0_98, %c0_99, %c0_100], %148 {strides = array<i32>} : memref<1x32x8x128xf32, #tpu.memory_space<vmem>>, vector<1x1x8x128xf32>,
    %cst_101 = arith.constant 1.000000e-03 : f32
    %149 = vector.broadcast %cst_101 : f32 to vector<128x128xf32>
    %150 = arith.cmpf oge, %63, %149 : vector<128x128xf32>
    %c0_102 = arith.constant 0 : index
    %c1_103 = arith.constant 1 : index
    %c0_104 = arith.constant 0 : index
    %c0_105 = arith.constant 0 : index
    %151 = vector.load %arg10[%c0_102, %c1_103, %c0_104, %c0_105] : memref<1x32x8x128xf32, #tpu.memory_space<vmem>>, vector<1x1x8x128xf32>
    %152 = vector.shape_cast %151 : vector<1x1x8x128xf32> to vector<8x128xf32>
    %153 = vector.broadcast %cst : f32 to vector<128x128xf32>
    %154 = vector.broadcast %cst_1 : f32 to vector<128x128xf32>
    %155 = arith.select %150, %153, %154 : vector<128x128xi1>, vector<128x128xf32>
    %156 = vector.shape_cast %155 : vector<128x128xf32> to vector<16x8x128xf32>
    %cst_106 = arith.constant dense<0.000000e+00> : vector<8x128xf32>
    %157 = vector.multi_reduction <add>, %156, %cst_106 [0] : vector<16x8x128xf32> to vector<8x128xf32>
    %158 = arith.addf %152, %157 : vector<8x128xf32>
    %c0_107 = arith.constant 0 : index
    %c1_108 = arith.constant 1 : index
    %c0_109 = arith.constant 0 : index
    %c0_110 = arith.constant 0 : index
    %159 = vector.load %arg10[%c0_107, %c1_108, %c0_109, %c0_110] : memref<1x32x8x128xf32, #tpu.memory_space<vmem>>, vector<1x1x8x128xf32>
    %160 = vector.shape_cast %159 : vector<1x1x8x128xf32> to vector<8x128xf32>
    %161 = vector.shape_cast %158 : vector<8x128xf32> to vector<1x1x8x128xf32>
    tpu.vector_store %arg10[%c0_107, %c1_108, %c0_109, %c0_110], %161 {strides = array<i32>} : memref<1x32x8x128xf32, #tpu.memory_space<vmem>>, vector<1x1x8x128xf32>,
    %c0_111 = arith.constant 0 : index
    %c1_112 = arith.constant 1 : index
    %c0_113 = arith.constant 0 : index
    %c0_114 = arith.constant 0 : index
    %162 = vector.load %arg11[%c0_111, %c1_112, %c0_113, %c0_114] : memref<1x32x8x128xf32, #tpu.memory_space<vmem>>, vector<1x1x8x128xf32>
    %163 = vector.shape_cast %162 : vector<1x1x8x128xf32> to vector<8x128xf32>
    %164 = vector.broadcast %cst_1 : f32 to vector<128x128xf32>
    %165 = arith.select %150, %63, %164 : vector<128x128xi1>, vector<128x128xf32>
    %166 = vector.shape_cast %165 : vector<128x128xf32> to vector<16x8x128xf32>
    %cst_115 = arith.constant dense<0.000000e+00> : vector<8x128xf32>
    %167 = vector.multi_reduction <add>, %166, %cst_115 [0] : vector<16x8x128xf32> to vector<8x128xf32>
    %168 = arith.addf %163, %167 : vector<8x128xf32>
    %c0_116 = arith.constant 0 : index
    %c1_117 = arith.constant 1 : index
    %c0_118 = arith.constant 0 : index
    %c0_119 = arith.constant 0 : index
    %169 = vector.load %arg11[%c0_116, %c1_117, %c0_118, %c0_119] : memref<1x32x8x128xf32, #tpu.memory_space<vmem>>, vector<1x1x8x128xf32>
    %170 = vector.shape_cast %169 : vector<1x1x8x128xf32> to vector<8x128xf32>
    %171 = vector.shape_cast %168 : vector<8x128xf32> to vector<1x1x8x128xf32>
    tpu.vector_store %arg11[%c0_116, %c1_117, %c0_118, %c0_119], %171 {strides = array<i32>} : memref<1x32x8x128xf32, #tpu.memory_space<vmem>>, vector<1x1x8x128xf32>,
    %cst_120 = arith.constant 0.0014677993 : f32
    %172 = vector.broadcast %cst_120 : f32 to vector<128x128xf32>
    %173 = arith.cmpf oge, %63, %172 : vector<128x128xf32>
    %c0_121 = arith.constant 0 : index
    %c2_122 = arith.constant 2 : index
    %c0_123 = arith.constant 0 : index
    %c0_124 = arith.constant 0 : index
    %174 = vector.load %arg10[%c0_121, %c2_122, %c0_123, %c0_124] : memref<1x32x8x128xf32, #tpu.memory_space<vmem>>, vector<1x1x8x128xf32>
    %175 = vector.shape_cast %174 : vector<1x1x8x128xf32> to vector<8x128xf32>
    %176 = vector.broadcast %cst : f32 to vector<128x128xf32>
    %177 = vector.broadcast %cst_1 : f32 to vector<128x128xf32>
    %178 = arith.select %173, %176, %177 : vector<128x128xi1>, vector<128x128xf32>
    %179 = vector.shape_cast %178 : vector<128x128xf32> to vector<16x8x128xf32>
    %cst_125 = arith.constant dense<0.000000e+00> : vector<8x128xf32>
    %180 = vector.multi_reduction <add>, %179, %cst_125 [0] : vector<16x8x128xf32> to vector<8x128xf32>
    %181 = arith.addf %175, %180 : vector<8x128xf32>
    %c0_126 = arith.constant 0 : index
    %c2_127 = arith.constant 2 : index
    %c0_128 = arith.constant 0 : index
    %c0_129 = arith.constant 0 : index
    %182 = vector.load %arg10[%c0_126, %c2_127, %c0_128, %c0_129] : memref<1x32x8x128xf32, #tpu.memory_space<vmem>>, vector<1x1x8x128xf32>
    %183 = vector.shape_cast %182 : vector<1x1x8x128xf32> to vector<8x128xf32>
    %184 = vector.shape_cast %181 : vector<8x128xf32> to vector<1x1x8x128xf32>
    tpu.vector_store %arg10[%c0_126, %c2_127, %c0_128, %c0_129], %184 {strides = array<i32>} : memref<1x32x8x128xf32, #tpu.memory_space<vmem>>, vector<1x1x8x128xf32>,
    %c0_130 = arith.constant 0 : index
    %c2_131 = arith.constant 2 : index
    %c0_132 = arith.constant 0 : index
    %c0_133 = arith.constant 0 : index
    %185 = vector.load %arg11[%c0_130, %c2_131, %c0_132, %c0_133] : memref<1x32x8x128xf32, #tpu.memory_space<vmem>>, vector<1x1x8x128xf32>
    %186 = vector.shape_cast %185 : vector<1x1x8x128xf32> to vector<8x128xf32>
    %187 = vector.broadcast %cst_1 : f32 to vector<128x128xf32>
    %188 = arith.select %173, %63, %187 : vector<128x128xi1>, vector<128x128xf32>
    %189 = vector.shape_cast %188 : vector<128x128xf32> to vector<16x8x128xf32>
    %cst_134 = arith.constant dense<0.000000e+00> : vector<8x128xf32>
    %190 = vector.multi_reduction <add>, %189, %cst_134 [0] : vector<16x8x128xf32> to vector<8x128xf32>
    %191 = arith.addf %186, %190 : vector<8x128xf32>
    %c0_135 = arith.constant 0 : index
    %c2_136 = arith.constant 2 : index
    %c0_137 = arith.constant 0 : index
    %c0_138 = arith.constant 0 : index
    %192 = vector.load %arg11[%c0_135, %c2_136, %c0_137, %c0_138] : memref<1x32x8x128xf32, #tpu.memory_space<vmem>>, vector<1x1x8x128xf32>
    %193 = vector.shape_cast %192 : vector<1x1x8x128xf32> to vector<8x128xf32>
    %194 = vector.shape_cast %191 : vector<8x128xf32> to vector<1x1x8x128xf32>
    tpu.vector_store %arg11[%c0_135, %c2_136, %c0_137, %c0_138], %194 {strides = array<i32>} : memref<1x32x8x128xf32, #tpu.memory_space<vmem>>, vector<1x1x8x128xf32>,
    %cst_139 = arith.constant 0.0021544348 : f32
    %195 = vector.broadcast %cst_139 : f32 to vector<128x128xf32>
    %196 = arith.cmpf oge, %63, %195 : vector<128x128xf32>
    %c0_140 = arith.constant 0 : index
    %c3_141 = arith.constant 3 : index
    %c0_142 = arith.constant 0 : index
    %c0_143 = arith.constant 0 : index
    %197 = vector.load %arg10[%c0_140, %c3_141, %c0_142, %c0_143] : memref<1x32x8x128xf32, #tpu.memory_space<vmem>>, vector<1x1x8x128xf32>
    %198 = vector.shape_cast %197 : vector<1x1x8x128xf32> to vector<8x128xf32>
    %199 = vector.broadcast %cst : f32 to vector<128x128xf32>
    %200 = vector.broadcast %cst_1 : f32 to vector<128x128xf32>
    %201 = arith.select %196, %199, %200 : vector<128x128xi1>, vector<128x128xf32>
    %202 = vector.shape_cast %201 : vector<128x128xf32> to vector<16x8x128xf32>
    %cst_144 = arith.constant dense<0.000000e+00> : vector<8x128xf32>
    %203 = vector.multi_reduction <add>, %202, %cst_144 [0] : vector<16x8x128xf32> to vector<8x128xf32>
    %204 = arith.addf %198, %203 : vector<8x128xf32>
    %c0_145 = arith.constant 0 : index
    %c3_146 = arith.constant 3 : index
    %c0_147 = arith.constant 0 : index
    %c0_148 = arith.constant 0 : index
    %205 = vector.load %arg10[%c0_145, %c3_146, %c0_147, %c0_148] : memref<1x32x8x128xf32, #tpu.memory_space<vmem>>, vector<1x1x8x128xf32>
    %206 = vector.shape_cast %205 : vector<1x1x8x128xf32> to vector<8x128xf32>
    %207 = vector.shape_cast %204 : vector<8x128xf32> to vector<1x1x8x128xf32>
    tpu.vector_store %arg10[%c0_145, %c3_146, %c0_147, %c0_148], %207 {strides = array<i32>} : memref<1x32x8x128xf32, #tpu.memory_space<vmem>>, vector<1x1x8x128xf32>,
    %c0_149 = arith.constant 0 : index
    %c3_150 = arith.constant 3 : index
    %c0_151 = arith.constant 0 : index
    %c0_152 = arith.constant 0 : index
    %208 = vector.load %arg11[%c0_149, %c3_150, %c0_151, %c0_152] : memref<1x32x8x128xf32, #tpu.memory_space<vmem>>, vector<1x1x8x128xf32>
    %209 = vector.shape_cast %208 : vector<1x1x8x128xf32> to vector<8x128xf32>
    %210 = vector.broadcast %cst_1 : f32 to vector<128x128xf32>
    %211 = arith.select %196, %63, %210 : vector<128x128xi1>, vector<128x128xf32>
    %212 = vector.shape_cast %211 : vector<128x128xf32> to vector<16x8x128xf32>
    %cst_153 = arith.constant dense<0.000000e+00> : vector<8x128xf32>
    %213 = vector.multi_reduction <add>, %212, %cst_153 [0] : vector<16x8x128xf32> to vector<8x128xf32>
    %214 = arith.addf %209, %213 : vector<8x128xf32>
    %c0_154 = arith.constant 0 : index
    %c3_155 = arith.constant 3 : index
    %c0_156 = arith.constant 0 : index
    %c0_157 = arith.constant 0 : index
    %215 = vector.load %arg11[%c0_154, %c3_155, %c0_156, %c0_157] : memref<1x32x8x128xf32, #tpu.memory_space<vmem>>, vector<1x1x8x128xf32>
    %216 = vector.shape_cast %215 : vector<1x1x8x128xf32> to vector<8x128xf32>
    %217 = vector.shape_cast %214 : vector<8x128xf32> to vector<1x1x8x128xf32>
    tpu.vector_store %arg11[%c0_154, %c3_155, %c0_156, %c0_157], %217 {strides = array<i32>} : memref<1x32x8x128xf32, #tpu.memory_space<vmem>>, vector<1x1x8x128xf32>,
    %cst_158 = arith.constant 0.00316227763 : f32
    %218 = vector.broadcast %cst_158 : f32 to vector<128x128xf32>
    %219 = arith.cmpf oge, %63, %218 : vector<128x128xf32>
    %c0_159 = arith.constant 0 : index
    %c4_160 = arith.constant 4 : index
    %c0_161 = arith.constant 0 : index
    %c0_162 = arith.constant 0 : index
    %220 = vector.load %arg10[%c0_159, %c4_160, %c0_161, %c0_162] : memref<1x32x8x128xf32, #tpu.memory_space<vmem>>, vector<1x1x8x128xf32>
    %221 = vector.shape_cast %220 : vector<1x1x8x128xf32> to vector<8x128xf32>
    %222 = vector.broadcast %cst : f32 to vector<128x128xf32>
    %223 = vector.broadcast %cst_1 : f32 to vector<128x128xf32>
    %224 = arith.select %219, %222, %223 : vector<128x128xi1>, vector<128x128xf32>
    %225 = vector.shape_cast %224 : vector<128x128xf32> to vector<16x8x128xf32>
    %cst_163 = arith.constant dense<0.000000e+00> : vector<8x128xf32>
    %226 = vector.multi_reduction <add>, %225, %cst_163 [0] : vector<16x8x128xf32> to vector<8x128xf32>
    %227 = arith.addf %221, %226 : vector<8x128xf32>
    %c0_164 = arith.constant 0 : index
    %c4_165 = arith.constant 4 : index
    %c0_166 = arith.constant 0 : index
    %c0_167 = arith.constant 0 : index
    %228 = vector.load %arg10[%c0_164, %c4_165, %c0_166, %c0_167] : memref<1x32x8x128xf32, #tpu.memory_space<vmem>>, vector<1x1x8x128xf32>
    %229 = vector.shape_cast %228 : vector<1x1x8x128xf32> to vector<8x128xf32>
    %230 = vector.shape_cast %227 : vector<8x128xf32> to vector<1x1x8x128xf32>
    tpu.vector_store %arg10[%c0_164, %c4_165, %c0_166, %c0_167], %230 {strides = array<i32>} : memref<1x32x8x128xf32, #tpu.memory_space<vmem>>, vector<1x1x8x128xf32>,
    %c0_168 = arith.constant 0 : index
    %c4_169 = arith.constant 4 : index
    %c0_170 = arith.constant 0 : index
    %c0_171 = arith.constant 0 : index
    %231 = vector.load %arg11[%c0_168, %c4_169, %c0_170, %c0_171] : memref<1x32x8x128xf32, #tpu.memory_space<vmem>>, vector<1x1x8x128xf32>
    %232 = vector.shape_cast %231 : vector<1x1x8x128xf32> to vector<8x128xf32>
    %233 = vector.broadcast %cst_1 : f32 to vector<128x128xf32>
    %234 = arith.select %219, %63, %233 : vector<128x128xi1>, vector<128x128xf32>
    %235 = vector.shape_cast %234 : vector<128x128xf32> to vector<16x8x128xf32>
    %cst_172 = arith.constant dense<0.000000e+00> : vector<8x128xf32>
    %236 = vector.multi_reduction <add>, %235, %cst_172 [0] : vector<16x8x128xf32> to vector<8x128xf32>
    %237 = arith.addf %232, %236 : vector<8x128xf32>
    %c0_173 = arith.constant 0 : index
    %c4_174 = arith.constant 4 : index
    %c0_175 = arith.constant 0 : index
    %c0_176 = arith.constant 0 : index
    %238 = vector.load %arg11[%c0_173, %c4_174, %c0_175, %c0_176] : memref<1x32x8x128xf32, #tpu.memory_space<vmem>>, vector<1x1x8x128xf32>
    %239 = vector.shape_cast %238 : vector<1x1x8x128xf32> to vector<8x128xf32>
    %240 = vector.shape_cast %237 : vector<8x128xf32> to vector<1x1x8x128xf32>
    tpu.vector_store %arg11[%c0_173, %c4_174, %c0_175, %c0_176], %240 {strides = array<i32>} : memref<1x32x8x128xf32, #tpu.memory_space<vmem>>, vector<1x1x8x128xf32>,
    %cst_177 = arith.constant 0.00464158878 : f32
    %241 = vector.broadcast %cst_177 : f32 to vector<128x128xf32>
    %242 = arith.cmpf oge, %63, %241 : vector<128x128xf32>
    %c0_178 = arith.constant 0 : index
    %c5_179 = arith.constant 5 : index
    %c0_180 = arith.constant 0 : index
    %c0_181 = arith.constant 0 : index
    %243 = vector.load %arg10[%c0_178, %c5_179, %c0_180, %c0_181] : memref<1x32x8x128xf32, #tpu.memory_space<vmem>>, vector<1x1x8x128xf32>
    %244 = vector.shape_cast %243 : vector<1x1x8x128xf32> to vector<8x128xf32>
    %245 = vector.broadcast %cst : f32 to vector<128x128xf32>
    %246 = vector.broadcast %cst_1 : f32 to vector<128x128xf32>
    %247 = arith.select %242, %245, %246 : vector<128x128xi1>, vector<128x128xf32>
    %248 = vector.shape_cast %247 : vector<128x128xf32> to vector<16x8x128xf32>
    %cst_182 = arith.constant dense<0.000000e+00> : vector<8x128xf32>
    %249 = vector.multi_reduction <add>, %248, %cst_182 [0] : vector<16x8x128xf32> to vector<8x128xf32>
    %250 = arith.addf %244, %249 : vector<8x128xf32>
    %c0_183 = arith.constant 0 : index
    %c5_184 = arith.constant 5 : index
    %c0_185 = arith.constant 0 : index
    %c0_186 = arith.constant 0 : index
    %251 = vector.load %arg10[%c0_183, %c5_184, %c0_185, %c0_186] : memref<1x32x8x128xf32, #tpu.memory_space<vmem>>, vector<1x1x8x128xf32>
    %252 = vector.shape_cast %251 : vector<1x1x8x128xf32> to vector<8x128xf32>
    %253 = vector.shape_cast %250 : vector<8x128xf32> to vector<1x1x8x128xf32>
    tpu.vector_store %arg10[%c0_183, %c5_184, %c0_185, %c0_186], %253 {strides = array<i32>} : memref<1x32x8x128xf32, #tpu.memory_space<vmem>>, vector<1x1x8x128xf32>,
    %c0_187 = arith.constant 0 : index
    %c5_188 = arith.constant 5 : index
    %c0_189 = arith.constant 0 : index
    %c0_190 = arith.constant 0 : index
    %254 = vector.load %arg11[%c0_187, %c5_188, %c0_189, %c0_190] : memref<1x32x8x128xf32, #tpu.memory_space<vmem>>, vector<1x1x8x128xf32>
    %255 = vector.shape_cast %254 : vector<1x1x8x128xf32> to vector<8x128xf32>
    %256 = vector.broadcast %cst_1 : f32 to vector<128x128xf32>
    %257 = arith.select %242, %63, %256 : vector<128x128xi1>, vector<128x128xf32>
    %258 = vector.shape_cast %257 : vector<128x128xf32> to vector<16x8x128xf32>
    %cst_191 = arith.constant dense<0.000000e+00> : vector<8x128xf32>
    %259 = vector.multi_reduction <add>, %258, %cst_191 [0] : vector<16x8x128xf32> to vector<8x128xf32>
    %260 = arith.addf %255, %259 : vector<8x128xf32>
    %c0_192 = arith.constant 0 : index
    %c5_193 = arith.constant 5 : index
    %c0_194 = arith.constant 0 : index
    %c0_195 = arith.constant 0 : index
    %261 = vector.load %arg11[%c0_192, %c5_193, %c0_194, %c0_195] : memref<1x32x8x128xf32, #tpu.memory_space<vmem>>, vector<1x1x8x128xf32>
    %262 = vector.shape_cast %261 : vector<1x1x8x128xf32> to vector<8x128xf32>
    %263 = vector.shape_cast %260 : vector<8x128xf32> to vector<1x1x8x128xf32>
    tpu.vector_store %arg11[%c0_192, %c5_193, %c0_194, %c0_195], %263 {strides = array<i32>} : memref<1x32x8x128xf32, #tpu.memory_space<vmem>>, vector<1x1x8x128xf32>,
    %cst_196 = arith.constant 0.00681292079 : f32
    %264 = vector.broadcast %cst_196 : f32 to vector<128x128xf32>
    %265 = arith.cmpf oge, %63, %264 : vector<128x128xf32>
    %c0_197 = arith.constant 0 : index
    %c6_198 = arith.constant 6 : index
    %c0_199 = arith.constant 0 : index
    %c0_200 = arith.constant 0 : index
    %266 = vector.load %arg10[%c0_197, %c6_198, %c0_199, %c0_200] : memref<1x32x8x128xf32, #tpu.memory_space<vmem>>, vector<1x1x8x128xf32>
    %267 = vector.shape_cast %266 : vector<1x1x8x128xf32> to vector<8x128xf32>
    %268 = vector.broadcast %cst : f32 to vector<128x128xf32>
    %269 = vector.broadcast %cst_1 : f32 to vector<128x128xf32>
    %270 = arith.select %265, %268, %269 : vector<128x128xi1>, vector<128x128xf32>
    %271 = vector.shape_cast %270 : vector<128x128xf32> to vector<16x8x128xf32>
    %cst_201 = arith.constant dense<0.000000e+00> : vector<8x128xf32>
    %272 = vector.multi_reduction <add>, %271, %cst_201 [0] : vector<16x8x128xf32> to vector<8x128xf32>
    %273 = arith.addf %267, %272 : vector<8x128xf32>
    %c0_202 = arith.constant 0 : index
    %c6_203 = arith.constant 6 : index
    %c0_204 = arith.constant 0 : index
    %c0_205 = arith.constant 0 : index
    %274 = vector.load %arg10[%c0_202, %c6_203, %c0_204, %c0_205] : memref<1x32x8x128xf32, #tpu.memory_space<vmem>>, vector<1x1x8x128xf32>
    %275 = vector.shape_cast %274 : vector<1x1x8x128xf32> to vector<8x128xf32>
    %276 = vector.shape_cast %273 : vector<8x128xf32> to vector<1x1x8x128xf32>
    tpu.vector_store %arg10[%c0_202, %c6_203, %c0_204, %c0_205], %276 {strides = array<i32>} : memref<1x32x8x128xf32, #tpu.memory_space<vmem>>, vector<1x1x8x128xf32>,
    %c0_206 = arith.constant 0 : index
    %c6_207 = arith.constant 6 : index
    %c0_208 = arith.constant 0 : index
    %c0_209 = arith.constant 0 : index
    %277 = vector.load %arg11[%c0_206, %c6_207, %c0_208, %c0_209] : memref<1x32x8x128xf32, #tpu.memory_space<vmem>>, vector<1x1x8x128xf32>
    %278 = vector.shape_cast %277 : vector<1x1x8x128xf32> to vector<8x128xf32>
    %279 = vector.broadcast %cst_1 : f32 to vector<128x128xf32>
    %280 = arith.select %265, %63, %279 : vector<128x128xi1>, vector<128x128xf32>
    %281 = vector.shape_cast %280 : vector<128x128xf32> to vector<16x8x128xf32>
    %cst_210 = arith.constant dense<0.000000e+00> : vector<8x128xf32>
    %282 = vector.multi_reduction <add>, %281, %cst_210 [0] : vector<16x8x128xf32> to vector<8x128xf32>
    %283 = arith.addf %278, %282 : vector<8x128xf32>
    %c0_211 = arith.constant 0 : index
    %c6_212 = arith.constant 6 : index
    %c0_213 = arith.constant 0 : index
    %c0_214 = arith.constant 0 : index
    %284 = vector.load %arg11[%c0_211, %c6_212, %c0_213, %c0_214] : memref<1x32x8x128xf32, #tpu.memory_space<vmem>>, vector<1x1x8x128xf32>
    %285 = vector.shape_cast %284 : vector<1x1x8x128xf32> to vector<8x128xf32>
    %286 = vector.shape_cast %283 : vector<8x128xf32> to vector<1x1x8x128xf32>
    tpu.vector_store %arg11[%c0_211, %c6_212, %c0_213, %c0_214], %286 {strides = array<i32>} : memref<1x32x8x128xf32, #tpu.memory_space<vmem>>, vector<1x1x8x128xf32>,
    %cst_215 = arith.constant 0.00999999977 : f32
    %287 = vector.broadcast %cst_215 : f32 to vector<128x128xf32>
    %288 = arith.cmpf oge, %63, %287 : vector<128x128xf32>
    %c0_216 = arith.constant 0 : index
    %c7 = arith.constant 7 : index
    %c0_217 = arith.constant 0 : index
    %c0_218 = arith.constant 0 : index
    %289 = vector.load %arg10[%c0_216, %c7, %c0_217, %c0_218] : memref<1x32x8x128xf32, #tpu.memory_space<vmem>>, vector<1x1x8x128xf32>
    %290 = vector.shape_cast %289 : vector<1x1x8x128xf32> to vector<8x128xf32>
    %291 = vector.broadcast %cst : f32 to vector<128x128xf32>
    %292 = vector.broadcast %cst_1 : f32 to vector<128x128xf32>
    %293 = arith.select %288, %291, %292 : vector<128x128xi1>, vector<128x128xf32>
    %294 = vector.shape_cast %293 : vector<128x128xf32> to vector<16x8x128xf32>
    %cst_219 = arith.constant dense<0.000000e+00> : vector<8x128xf32>
    %295 = vector.multi_reduction <add>, %294, %cst_219 [0] : vector<16x8x128xf32> to vector<8x128xf32>
    %296 = arith.addf %290, %295 : vector<8x128xf32>
    %c0_220 = arith.constant 0 : index
    %c7_221 = arith.constant 7 : index
    %c0_222 = arith.constant 0 : index
    %c0_223 = arith.constant 0 : index
    %297 = vector.load %arg10[%c0_220, %c7_221, %c0_222, %c0_223] : memref<1x32x8x128xf32, #tpu.memory_space<vmem>>, vector<1x1x8x128xf32>
    %298 = vector.shape_cast %297 : vector<1x1x8x128xf32> to vector<8x128xf32>
    %299 = vector.shape_cast %296 : vector<8x128xf32> to vector<1x1x8x128xf32>
    tpu.vector_store %arg10[%c0_220, %c7_221, %c0_222, %c0_223], %299 {strides = array<i32>} : memref<1x32x8x128xf32, #tpu.memory_space<vmem>>, vector<1x1x8x128xf32>,
    %c0_224 = arith.constant 0 : index
    %c7_225 = arith.constant 7 : index
    %c0_226 = arith.constant 0 : index
    %c0_227 = arith.constant 0 : index
    %300 = vector.load %arg11[%c0_224, %c7_225, %c0_226, %c0_227] : memref<1x32x8x128xf32, #tpu.memory_space<vmem>>, vector<1x1x8x128xf32>
    %301 = vector.shape_cast %300 : vector<1x1x8x128xf32> to vector<8x128xf32>
    %302 = vector.broadcast %cst_1 : f32 to vector<128x128xf32>
    %303 = arith.select %288, %63, %302 : vector<128x128xi1>, vector<128x128xf32>
    %304 = vector.shape_cast %303 : vector<128x128xf32> to vector<16x8x128xf32>
    %cst_228 = arith.constant dense<0.000000e+00> : vector<8x128xf32>
    %305 = vector.multi_reduction <add>, %304, %cst_228 [0] : vector<16x8x128xf32> to vector<8x128xf32>
    %306 = arith.addf %301, %305 : vector<8x128xf32>
    %c0_229 = arith.constant 0 : index
    %c7_230 = arith.constant 7 : index
    %c0_231 = arith.constant 0 : index
    %c0_232 = arith.constant 0 : index
    %307 = vector.load %arg11[%c0_229, %c7_230, %c0_231, %c0_232] : memref<1x32x8x128xf32, #tpu.memory_space<vmem>>, vector<1x1x8x128xf32>
    %308 = vector.shape_cast %307 : vector<1x1x8x128xf32> to vector<8x128xf32>
    %309 = vector.shape_cast %306 : vector<8x128xf32> to vector<1x1x8x128xf32>
    tpu.vector_store %arg11[%c0_229, %c7_230, %c0_231, %c0_232], %309 {strides = array<i32>} : memref<1x32x8x128xf32, #tpu.memory_space<vmem>>, vector<1x1x8x128xf32>,
    %cst_233 = arith.constant 0.014677993 : f32
    %310 = vector.broadcast %cst_233 : f32 to vector<128x128xf32>
    %311 = arith.cmpf oge, %63, %310 : vector<128x128xf32>
    %c0_234 = arith.constant 0 : index
    %c8 = arith.constant 8 : index
    %c0_235 = arith.constant 0 : index
    %c0_236 = arith.constant 0 : index
    %312 = vector.load %arg10[%c0_234, %c8, %c0_235, %c0_236] : memref<1x32x8x128xf32, #tpu.memory_space<vmem>>, vector<1x1x8x128xf32>
    %313 = vector.shape_cast %312 : vector<1x1x8x128xf32> to vector<8x128xf32>
    %314 = vector.broadcast %cst : f32 to vector<128x128xf32>
    %315 = vector.broadcast %cst_1 : f32 to vector<128x128xf32>
    %316 = arith.select %311, %314, %315 : vector<128x128xi1>, vector<128x128xf32>
    %317 = vector.shape_cast %316 : vector<128x128xf32> to vector<16x8x128xf32>
    %cst_237 = arith.constant dense<0.000000e+00> : vector<8x128xf32>
    %318 = vector.multi_reduction <add>, %317, %cst_237 [0] : vector<16x8x128xf32> to vector<8x128xf32>
    %319 = arith.addf %313, %318 : vector<8x128xf32>
    %c0_238 = arith.constant 0 : index
    %c8_239 = arith.constant 8 : index
    %c0_240 = arith.constant 0 : index
    %c0_241 = arith.constant 0 : index
    %320 = vector.load %arg10[%c0_238, %c8_239, %c0_240, %c0_241] : memref<1x32x8x128xf32, #tpu.memory_space<vmem>>, vector<1x1x8x128xf32>
    %321 = vector.shape_cast %320 : vector<1x1x8x128xf32> to vector<8x128xf32>
    %322 = vector.shape_cast %319 : vector<8x128xf32> to vector<1x1x8x128xf32>
    tpu.vector_store %arg10[%c0_238, %c8_239, %c0_240, %c0_241], %322 {strides = array<i32>} : memref<1x32x8x128xf32, #tpu.memory_space<vmem>>, vector<1x1x8x128xf32>,
    %c0_242 = arith.constant 0 : index
    %c8_243 = arith.constant 8 : index
    %c0_244 = arith.constant 0 : index
    %c0_245 = arith.constant 0 : index
    %323 = vector.load %arg11[%c0_242, %c8_243, %c0_244, %c0_245] : memref<1x32x8x128xf32, #tpu.memory_space<vmem>>, vector<1x1x8x128xf32>
    %324 = vector.shape_cast %323 : vector<1x1x8x128xf32> to vector<8x128xf32>
    %325 = vector.broadcast %cst_1 : f32 to vector<128x128xf32>
    %326 = arith.select %311, %63, %325 : vector<128x128xi1>, vector<128x128xf32>
    %327 = vector.shape_cast %326 : vector<128x128xf32> to vector<16x8x128xf32>
    %cst_246 = arith.constant dense<0.000000e+00> : vector<8x128xf32>
    %328 = vector.multi_reduction <add>, %327, %cst_246 [0] : vector<16x8x128xf32> to vector<8x128xf32>
    %329 = arith.addf %324, %328 : vector<8x128xf32>
    %c0_247 = arith.constant 0 : index
    %c8_248 = arith.constant 8 : index
    %c0_249 = arith.constant 0 : index
    %c0_250 = arith.constant 0 : index
    %330 = vector.load %arg11[%c0_247, %c8_248, %c0_249, %c0_250] : memref<1x32x8x128xf32, #tpu.memory_space<vmem>>, vector<1x1x8x128xf32>
    %331 = vector.shape_cast %330 : vector<1x1x8x128xf32> to vector<8x128xf32>
    %332 = vector.shape_cast %329 : vector<8x128xf32> to vector<1x1x8x128xf32>
    tpu.vector_store %arg11[%c0_247, %c8_248, %c0_249, %c0_250], %332 {strides = array<i32>} : memref<1x32x8x128xf32, #tpu.memory_space<vmem>>, vector<1x1x8x128xf32>,
    %cst_251 = arith.constant 0.0215443466 : f32
    %333 = vector.broadcast %cst_251 : f32 to vector<128x128xf32>
    %334 = arith.cmpf oge, %63, %333 : vector<128x128xf32>
    %c0_252 = arith.constant 0 : index
    %c9 = arith.constant 9 : index
    %c0_253 = arith.constant 0 : index
    %c0_254 = arith.constant 0 : index
    %335 = vector.load %arg10[%c0_252, %c9, %c0_253, %c0_254] : memref<1x32x8x128xf32, #tpu.memory_space<vmem>>, vector<1x1x8x128xf32>
    %336 = vector.shape_cast %335 : vector<1x1x8x128xf32> to vector<8x128xf32>
    %337 = vector.broadcast %cst : f32 to vector<128x128xf32>
    %338 = vector.broadcast %cst_1 : f32 to vector<128x128xf32>
    %339 = arith.select %334, %337, %338 : vector<128x128xi1>, vector<128x128xf32>
    %340 = vector.shape_cast %339 : vector<128x128xf32> to vector<16x8x128xf32>
    %cst_255 = arith.constant dense<0.000000e+00> : vector<8x128xf32>
    %341 = vector.multi_reduction <add>, %340, %cst_255 [0] : vector<16x8x128xf32> to vector<8x128xf32>
    %342 = arith.addf %336, %341 : vector<8x128xf32>
    %c0_256 = arith.constant 0 : index
    %c9_257 = arith.constant 9 : index
    %c0_258 = arith.constant 0 : index
    %c0_259 = arith.constant 0 : index
    %343 = vector.load %arg10[%c0_256, %c9_257, %c0_258, %c0_259] : memref<1x32x8x128xf32, #tpu.memory_space<vmem>>, vector<1x1x8x128xf32>
    %344 = vector.shape_cast %343 : vector<1x1x8x128xf32> to vector<8x128xf32>
    %345 = vector.shape_cast %342 : vector<8x128xf32> to vector<1x1x8x128xf32>
    tpu.vector_store %arg10[%c0_256, %c9_257, %c0_258, %c0_259], %345 {strides = array<i32>} : memref<1x32x8x128xf32, #tpu.memory_space<vmem>>, vector<1x1x8x128xf32>,
    %c0_260 = arith.constant 0 : index
    %c9_261 = arith.constant 9 : index
    %c0_262 = arith.constant 0 : index
    %c0_263 = arith.constant 0 : index
    %346 = vector.load %arg11[%c0_260, %c9_261, %c0_262, %c0_263] : memref<1x32x8x128xf32, #tpu.memory_space<vmem>>, vector<1x1x8x128xf32>
    %347 = vector.shape_cast %346 : vector<1x1x8x128xf32> to vector<8x128xf32>
    %348 = vector.broadcast %cst_1 : f32 to vector<128x128xf32>
    %349 = arith.select %334, %63, %348 : vector<128x128xi1>, vector<128x128xf32>
    %350 = vector.shape_cast %349 : vector<128x128xf32> to vector<16x8x128xf32>
    %cst_264 = arith.constant dense<0.000000e+00> : vector<8x128xf32>
    %351 = vector.multi_reduction <add>, %350, %cst_264 [0] : vector<16x8x128xf32> to vector<8x128xf32>
    %352 = arith.addf %347, %351 : vector<8x128xf32>
    %c0_265 = arith.constant 0 : index
    %c9_266 = arith.constant 9 : index
    %c0_267 = arith.constant 0 : index
    %c0_268 = arith.constant 0 : index
    %353 = vector.load %arg11[%c0_265, %c9_266, %c0_267, %c0_268] : memref<1x32x8x128xf32, #tpu.memory_space<vmem>>, vector<1x1x8x128xf32>
    %354 = vector.shape_cast %353 : vector<1x1x8x128xf32> to vector<8x128xf32>
    %355 = vector.shape_cast %352 : vector<8x128xf32> to vector<1x1x8x128xf32>
    tpu.vector_store %arg11[%c0_265, %c9_266, %c0_267, %c0_268], %355 {strides = array<i32>} : memref<1x32x8x128xf32, #tpu.memory_space<vmem>>, vector<1x1x8x128xf32>,
    %cst_269 = arith.constant 0.0316227749 : f32
    %356 = vector.broadcast %cst_269 : f32 to vector<128x128xf32>
    %357 = arith.cmpf oge, %63, %356 : vector<128x128xf32>
    %c0_270 = arith.constant 0 : index
    %c10 = arith.constant 10 : index
    %c0_271 = arith.constant 0 : index
    %c0_272 = arith.constant 0 : index
    %358 = vector.load %arg10[%c0_270, %c10, %c0_271, %c0_272] : memref<1x32x8x128xf32, #tpu.memory_space<vmem>>, vector<1x1x8x128xf32>
    %359 = vector.shape_cast %358 : vector<1x1x8x128xf32> to vector<8x128xf32>
    %360 = vector.broadcast %cst : f32 to vector<128x128xf32>
    %361 = vector.broadcast %cst_1 : f32 to vector<128x128xf32>
    %362 = arith.select %357, %360, %361 : vector<128x128xi1>, vector<128x128xf32>
    %363 = vector.shape_cast %362 : vector<128x128xf32> to vector<16x8x128xf32>
    %cst_273 = arith.constant dense<0.000000e+00> : vector<8x128xf32>
    %364 = vector.multi_reduction <add>, %363, %cst_273 [0] : vector<16x8x128xf32> to vector<8x128xf32>
    %365 = arith.addf %359, %364 : vector<8x128xf32>
    %c0_274 = arith.constant 0 : index
    %c10_275 = arith.constant 10 : index
    %c0_276 = arith.constant 0 : index
    %c0_277 = arith.constant 0 : index
    %366 = vector.load %arg10[%c0_274, %c10_275, %c0_276, %c0_277] : memref<1x32x8x128xf32, #tpu.memory_space<vmem>>, vector<1x1x8x128xf32>
    %367 = vector.shape_cast %366 : vector<1x1x8x128xf32> to vector<8x128xf32>
    %368 = vector.shape_cast %365 : vector<8x128xf32> to vector<1x1x8x128xf32>
    tpu.vector_store %arg10[%c0_274, %c10_275, %c0_276, %c0_277], %368 {strides = array<i32>} : memref<1x32x8x128xf32, #tpu.memory_space<vmem>>, vector<1x1x8x128xf32>,
    %c0_278 = arith.constant 0 : index
    %c10_279 = arith.constant 10 : index
    %c0_280 = arith.constant 0 : index
    %c0_281 = arith.constant 0 : index
    %369 = vector.load %arg11[%c0_278, %c10_279, %c0_280, %c0_281] : memref<1x32x8x128xf32, #tpu.memory_space<vmem>>, vector<1x1x8x128xf32>
    %370 = vector.shape_cast %369 : vector<1x1x8x128xf32> to vector<8x128xf32>
    %371 = vector.broadcast %cst_1 : f32 to vector<128x128xf32>
    %372 = arith.select %357, %63, %371 : vector<128x128xi1>, vector<128x128xf32>
    %373 = vector.shape_cast %372 : vector<128x128xf32> to vector<16x8x128xf32>
    %cst_282 = arith.constant dense<0.000000e+00> : vector<8x128xf32>
    %374 = vector.multi_reduction <add>, %373, %cst_282 [0] : vector<16x8x128xf32> to vector<8x128xf32>
    %375 = arith.addf %370, %374 : vector<8x128xf32>
    %c0_283 = arith.constant 0 : index
    %c10_284 = arith.constant 10 : index
    %c0_285 = arith.constant 0 : index
    %c0_286 = arith.constant 0 : index
    %376 = vector.load %arg11[%c0_283, %c10_284, %c0_285, %c0_286] : memref<1x32x8x128xf32, #tpu.memory_space<vmem>>, vector<1x1x8x128xf32>
    %377 = vector.shape_cast %376 : vector<1x1x8x128xf32> to vector<8x128xf32>
    %378 = vector.shape_cast %375 : vector<8x128xf32> to vector<1x1x8x128xf32>
    tpu.vector_store %arg11[%c0_283, %c10_284, %c0_285, %c0_286], %378 {strides = array<i32>} : memref<1x32x8x128xf32, #tpu.memory_space<vmem>>, vector<1x1x8x128xf32>,
    %cst_287 = arith.constant 0.0464158878 : f32
    %379 = vector.broadcast %cst_287 : f32 to vector<128x128xf32>
    %380 = arith.cmpf oge, %63, %379 : vector<128x128xf32>
    %c0_288 = arith.constant 0 : index
    %c11 = arith.constant 11 : index
    %c0_289 = arith.constant 0 : index
    %c0_290 = arith.constant 0 : index
    %381 = vector.load %arg10[%c0_288, %c11, %c0_289, %c0_290] : memref<1x32x8x128xf32, #tpu.memory_space<vmem>>, vector<1x1x8x128xf32>
    %382 = vector.shape_cast %381 : vector<1x1x8x128xf32> to vector<8x128xf32>
    %383 = vector.broadcast %cst : f32 to vector<128x128xf32>
    %384 = vector.broadcast %cst_1 : f32 to vector<128x128xf32>
    %385 = arith.select %380, %383, %384 : vector<128x128xi1>, vector<128x128xf32>
    %386 = vector.shape_cast %385 : vector<128x128xf32> to vector<16x8x128xf32>
    %cst_291 = arith.constant dense<0.000000e+00> : vector<8x128xf32>
    %387 = vector.multi_reduction <add>, %386, %cst_291 [0] : vector<16x8x128xf32> to vector<8x128xf32>
    %388 = arith.addf %382, %387 : vector<8x128xf32>
    %c0_292 = arith.constant 0 : index
    %c11_293 = arith.constant 11 : index
    %c0_294 = arith.constant 0 : index
    %c0_295 = arith.constant 0 : index
    %389 = vector.load %arg10[%c0_292, %c11_293, %c0_294, %c0_295] : memref<1x32x8x128xf32, #tpu.memory_space<vmem>>, vector<1x1x8x128xf32>
    %390 = vector.shape_cast %389 : vector<1x1x8x128xf32> to vector<8x128xf32>
    %391 = vector.shape_cast %388 : vector<8x128xf32> to vector<1x1x8x128xf32>
    tpu.vector_store %arg10[%c0_292, %c11_293, %c0_294, %c0_295], %391 {strides = array<i32>} : memref<1x32x8x128xf32, #tpu.memory_space<vmem>>, vector<1x1x8x128xf32>,
    %c0_296 = arith.constant 0 : index
    %c11_297 = arith.constant 11 : index
    %c0_298 = arith.constant 0 : index
    %c0_299 = arith.constant 0 : index
    %392 = vector.load %arg11[%c0_296, %c11_297, %c0_298, %c0_299] : memref<1x32x8x128xf32, #tpu.memory_space<vmem>>, vector<1x1x8x128xf32>
    %393 = vector.shape_cast %392 : vector<1x1x8x128xf32> to vector<8x128xf32>
    %394 = vector.broadcast %cst_1 : f32 to vector<128x128xf32>
    %395 = arith.select %380, %63, %394 : vector<128x128xi1>, vector<128x128xf32>
    %396 = vector.shape_cast %395 : vector<128x128xf32> to vector<16x8x128xf32>
    %cst_300 = arith.constant dense<0.000000e+00> : vector<8x128xf32>
    %397 = vector.multi_reduction <add>, %396, %cst_300 [0] : vector<16x8x128xf32> to vector<8x128xf32>
    %398 = arith.addf %393, %397 : vector<8x128xf32>
    %c0_301 = arith.constant 0 : index
    %c11_302 = arith.constant 11 : index
    %c0_303 = arith.constant 0 : index
    %c0_304 = arith.constant 0 : index
    %399 = vector.load %arg11[%c0_301, %c11_302, %c0_303, %c0_304] : memref<1x32x8x128xf32, #tpu.memory_space<vmem>>, vector<1x1x8x128xf32>
    %400 = vector.shape_cast %399 : vector<1x1x8x128xf32> to vector<8x128xf32>
    %401 = vector.shape_cast %398 : vector<8x128xf32> to vector<1x1x8x128xf32>
    tpu.vector_store %arg11[%c0_301, %c11_302, %c0_303, %c0_304], %401 {strides = array<i32>} : memref<1x32x8x128xf32, #tpu.memory_space<vmem>>, vector<1x1x8x128xf32>,
    %cst_305 = arith.constant 0.0681292042 : f32
    %402 = vector.broadcast %cst_305 : f32 to vector<128x128xf32>
    %403 = arith.cmpf oge, %63, %402 : vector<128x128xf32>
    %c0_306 = arith.constant 0 : index
    %c12 = arith.constant 12 : index
    %c0_307 = arith.constant 0 : index
    %c0_308 = arith.constant 0 : index
    %404 = vector.load %arg10[%c0_306, %c12, %c0_307, %c0_308] : memref<1x32x8x128xf32, #tpu.memory_space<vmem>>, vector<1x1x8x128xf32>
    %405 = vector.shape_cast %404 : vector<1x1x8x128xf32> to vector<8x128xf32>
    %406 = vector.broadcast %cst : f32 to vector<128x128xf32>
    %407 = vector.broadcast %cst_1 : f32 to vector<128x128xf32>
    %408 = arith.select %403, %406, %407 : vector<128x128xi1>, vector<128x128xf32>
    %409 = vector.shape_cast %408 : vector<128x128xf32> to vector<16x8x128xf32>
    %cst_309 = arith.constant dense<0.000000e+00> : vector<8x128xf32>
    %410 = vector.multi_reduction <add>, %409, %cst_309 [0] : vector<16x8x128xf32> to vector<8x128xf32>
    %411 = arith.addf %405, %410 : vector<8x128xf32>
    %c0_310 = arith.constant 0 : index
    %c12_311 = arith.constant 12 : index
    %c0_312 = arith.constant 0 : index
    %c0_313 = arith.constant 0 : index
    %412 = vector.load %arg10[%c0_310, %c12_311, %c0_312, %c0_313] : memref<1x32x8x128xf32, #tpu.memory_space<vmem>>, vector<1x1x8x128xf32>
    %413 = vector.shape_cast %412 : vector<1x1x8x128xf32> to vector<8x128xf32>
    %414 = vector.shape_cast %411 : vector<8x128xf32> to vector<1x1x8x128xf32>
    tpu.vector_store %arg10[%c0_310, %c12_311, %c0_312, %c0_313], %414 {strides = array<i32>} : memref<1x32x8x128xf32, #tpu.memory_space<vmem>>, vector<1x1x8x128xf32>,
    %c0_314 = arith.constant 0 : index
    %c12_315 = arith.constant 12 : index
    %c0_316 = arith.constant 0 : index
    %c0_317 = arith.constant 0 : index
    %415 = vector.load %arg11[%c0_314, %c12_315, %c0_316, %c0_317] : memref<1x32x8x128xf32, #tpu.memory_space<vmem>>, vector<1x1x8x128xf32>
    %416 = vector.shape_cast %415 : vector<1x1x8x128xf32> to vector<8x128xf32>
    %417 = vector.broadcast %cst_1 : f32 to vector<128x128xf32>
    %418 = arith.select %403, %63, %417 : vector<128x128xi1>, vector<128x128xf32>
    %419 = vector.shape_cast %418 : vector<128x128xf32> to vector<16x8x128xf32>
    %cst_318 = arith.constant dense<0.000000e+00> : vector<8x128xf32>
    %420 = vector.multi_reduction <add>, %419, %cst_318 [0] : vector<16x8x128xf32> to vector<8x128xf32>
    %421 = arith.addf %416, %420 : vector<8x128xf32>
    %c0_319 = arith.constant 0 : index
    %c12_320 = arith.constant 12 : index
    %c0_321 = arith.constant 0 : index
    %c0_322 = arith.constant 0 : index
    %422 = vector.load %arg11[%c0_319, %c12_320, %c0_321, %c0_322] : memref<1x32x8x128xf32, #tpu.memory_space<vmem>>, vector<1x1x8x128xf32>
    %423 = vector.shape_cast %422 : vector<1x1x8x128xf32> to vector<8x128xf32>
    %424 = vector.shape_cast %421 : vector<8x128xf32> to vector<1x1x8x128xf32>
    tpu.vector_store %arg11[%c0_319, %c12_320, %c0_321, %c0_322], %424 {strides = array<i32>} : memref<1x32x8x128xf32, #tpu.memory_space<vmem>>, vector<1x1x8x128xf32>,
    %cst_323 = arith.constant 1.000000e-01 : f32
    %425 = vector.broadcast %cst_323 : f32 to vector<128x128xf32>
    %426 = arith.cmpf oge, %63, %425 : vector<128x128xf32>
    %c0_324 = arith.constant 0 : index
    %c13 = arith.constant 13 : index
    %c0_325 = arith.constant 0 : index
    %c0_326 = arith.constant 0 : index
    %427 = vector.load %arg10[%c0_324, %c13, %c0_325, %c0_326] : memref<1x32x8x128xf32, #tpu.memory_space<vmem>>, vector<1x1x8x128xf32>
    %428 = vector.shape_cast %427 : vector<1x1x8x128xf32> to vector<8x128xf32>
    %429 = vector.broadcast %cst : f32 to vector<128x128xf32>
    %430 = vector.broadcast %cst_1 : f32 to vector<128x128xf32>
    %431 = arith.select %426, %429, %430 : vector<128x128xi1>, vector<128x128xf32>
    %432 = vector.shape_cast %431 : vector<128x128xf32> to vector<16x8x128xf32>
    %cst_327 = arith.constant dense<0.000000e+00> : vector<8x128xf32>
    %433 = vector.multi_reduction <add>, %432, %cst_327 [0] : vector<16x8x128xf32> to vector<8x128xf32>
    %434 = arith.addf %428, %433 : vector<8x128xf32>
    %c0_328 = arith.constant 0 : index
    %c13_329 = arith.constant 13 : index
    %c0_330 = arith.constant 0 : index
    %c0_331 = arith.constant 0 : index
    %435 = vector.load %arg10[%c0_328, %c13_329, %c0_330, %c0_331] : memref<1x32x8x128xf32, #tpu.memory_space<vmem>>, vector<1x1x8x128xf32>
    %436 = vector.shape_cast %435 : vector<1x1x8x128xf32> to vector<8x128xf32>
    %437 = vector.shape_cast %434 : vector<8x128xf32> to vector<1x1x8x128xf32>
    tpu.vector_store %arg10[%c0_328, %c13_329, %c0_330, %c0_331], %437 {strides = array<i32>} : memref<1x32x8x128xf32, #tpu.memory_space<vmem>>, vector<1x1x8x128xf32>,
    %c0_332 = arith.constant 0 : index
    %c13_333 = arith.constant 13 : index
    %c0_334 = arith.constant 0 : index
    %c0_335 = arith.constant 0 : index
    %438 = vector.load %arg11[%c0_332, %c13_333, %c0_334, %c0_335] : memref<1x32x8x128xf32, #tpu.memory_space<vmem>>, vector<1x1x8x128xf32>
    %439 = vector.shape_cast %438 : vector<1x1x8x128xf32> to vector<8x128xf32>
    %440 = vector.broadcast %cst_1 : f32 to vector<128x128xf32>
    %441 = arith.select %426, %63, %440 : vector<128x128xi1>, vector<128x128xf32>
    %442 = vector.shape_cast %441 : vector<128x128xf32> to vector<16x8x128xf32>
    %cst_336 = arith.constant dense<0.000000e+00> : vector<8x128xf32>
    %443 = vector.multi_reduction <add>, %442, %cst_336 [0] : vector<16x8x128xf32> to vector<8x128xf32>
    %444 = arith.addf %439, %443 : vector<8x128xf32>
    %c0_337 = arith.constant 0 : index
    %c13_338 = arith.constant 13 : index
    %c0_339 = arith.constant 0 : index
    %c0_340 = arith.constant 0 : index
    %445 = vector.load %arg11[%c0_337, %c13_338, %c0_339, %c0_340] : memref<1x32x8x128xf32, #tpu.memory_space<vmem>>, vector<1x1x8x128xf32>
    %446 = vector.shape_cast %445 : vector<1x1x8x128xf32> to vector<8x128xf32>
    %447 = vector.shape_cast %444 : vector<8x128xf32> to vector<1x1x8x128xf32>
    tpu.vector_store %arg11[%c0_337, %c13_338, %c0_339, %c0_340], %447 {strides = array<i32>} : memref<1x32x8x128xf32, #tpu.memory_space<vmem>>, vector<1x1x8x128xf32>,
    %cst_341 = arith.constant 0.146779925 : f32
    %448 = vector.broadcast %cst_341 : f32 to vector<128x128xf32>
    %449 = arith.cmpf oge, %63, %448 : vector<128x128xf32>
    %c0_342 = arith.constant 0 : index
    %c14 = arith.constant 14 : index
    %c0_343 = arith.constant 0 : index
    %c0_344 = arith.constant 0 : index
    %450 = vector.load %arg10[%c0_342, %c14, %c0_343, %c0_344] : memref<1x32x8x128xf32, #tpu.memory_space<vmem>>, vector<1x1x8x128xf32>
    %451 = vector.shape_cast %450 : vector<1x1x8x128xf32> to vector<8x128xf32>
    %452 = vector.broadcast %cst : f32 to vector<128x128xf32>
    %453 = vector.broadcast %cst_1 : f32 to vector<128x128xf32>
    %454 = arith.select %449, %452, %453 : vector<128x128xi1>, vector<128x128xf32>
    %455 = vector.shape_cast %454 : vector<128x128xf32> to vector<16x8x128xf32>
    %cst_345 = arith.constant dense<0.000000e+00> : vector<8x128xf32>
    %456 = vector.multi_reduction <add>, %455, %cst_345 [0] : vector<16x8x128xf32> to vector<8x128xf32>
    %457 = arith.addf %451, %456 : vector<8x128xf32>
    %c0_346 = arith.constant 0 : index
    %c14_347 = arith.constant 14 : index
    %c0_348 = arith.constant 0 : index
    %c0_349 = arith.constant 0 : index
    %458 = vector.load %arg10[%c0_346, %c14_347, %c0_348, %c0_349] : memref<1x32x8x128xf32, #tpu.memory_space<vmem>>, vector<1x1x8x128xf32>
    %459 = vector.shape_cast %458 : vector<1x1x8x128xf32> to vector<8x128xf32>
    %460 = vector.shape_cast %457 : vector<8x128xf32> to vector<1x1x8x128xf32>
    tpu.vector_store %arg10[%c0_346, %c14_347, %c0_348, %c0_349], %460 {strides = array<i32>} : memref<1x32x8x128xf32, #tpu.memory_space<vmem>>, vector<1x1x8x128xf32>,
    %c0_350 = arith.constant 0 : index
    %c14_351 = arith.constant 14 : index
    %c0_352 = arith.constant 0 : index
    %c0_353 = arith.constant 0 : index
    %461 = vector.load %arg11[%c0_350, %c14_351, %c0_352, %c0_353] : memref<1x32x8x128xf32, #tpu.memory_space<vmem>>, vector<1x1x8x128xf32>
    %462 = vector.shape_cast %461 : vector<1x1x8x128xf32> to vector<8x128xf32>
    %463 = vector.broadcast %cst_1 : f32 to vector<128x128xf32>
    %464 = arith.select %449, %63, %463 : vector<128x128xi1>, vector<128x128xf32>
    %465 = vector.shape_cast %464 : vector<128x128xf32> to vector<16x8x128xf32>
    %cst_354 = arith.constant dense<0.000000e+00> : vector<8x128xf32>
    %466 = vector.multi_reduction <add>, %465, %cst_354 [0] : vector<16x8x128xf32> to vector<8x128xf32>
    %467 = arith.addf %462, %466 : vector<8x128xf32>
    %c0_355 = arith.constant 0 : index
    %c14_356 = arith.constant 14 : index
    %c0_357 = arith.constant 0 : index
    %c0_358 = arith.constant 0 : index
    %468 = vector.load %arg11[%c0_355, %c14_356, %c0_357, %c0_358] : memref<1x32x8x128xf32, #tpu.memory_space<vmem>>, vector<1x1x8x128xf32>
    %469 = vector.shape_cast %468 : vector<1x1x8x128xf32> to vector<8x128xf32>
    %470 = vector.shape_cast %467 : vector<8x128xf32> to vector<1x1x8x128xf32>
    tpu.vector_store %arg11[%c0_355, %c14_356, %c0_357, %c0_358], %470 {strides = array<i32>} : memref<1x32x8x128xf32, #tpu.memory_space<vmem>>, vector<1x1x8x128xf32>,
    %cst_359 = arith.constant 0.215443462 : f32
    %471 = vector.broadcast %cst_359 : f32 to vector<128x128xf32>
    %472 = arith.cmpf oge, %63, %471 : vector<128x128xf32>
    %c0_360 = arith.constant 0 : index
    %c15 = arith.constant 15 : index
    %c0_361 = arith.constant 0 : index
    %c0_362 = arith.constant 0 : index
    %473 = vector.load %arg10[%c0_360, %c15, %c0_361, %c0_362] : memref<1x32x8x128xf32, #tpu.memory_space<vmem>>, vector<1x1x8x128xf32>
    %474 = vector.shape_cast %473 : vector<1x1x8x128xf32> to vector<8x128xf32>
    %475 = vector.broadcast %cst : f32 to vector<128x128xf32>
    %476 = vector.broadcast %cst_1 : f32 to vector<128x128xf32>
    %477 = arith.select %472, %475, %476 : vector<128x128xi1>, vector<128x128xf32>
    %478 = vector.shape_cast %477 : vector<128x128xf32> to vector<16x8x128xf32>
    %cst_363 = arith.constant dense<0.000000e+00> : vector<8x128xf32>
    %479 = vector.multi_reduction <add>, %478, %cst_363 [0] : vector<16x8x128xf32> to vector<8x128xf32>
    %480 = arith.addf %474, %479 : vector<8x128xf32>
    %c0_364 = arith.constant 0 : index
    %c15_365 = arith.constant 15 : index
    %c0_366 = arith.constant 0 : index
    %c0_367 = arith.constant 0 : index
    %481 = vector.load %arg10[%c0_364, %c15_365, %c0_366, %c0_367] : memref<1x32x8x128xf32, #tpu.memory_space<vmem>>, vector<1x1x8x128xf32>
    %482 = vector.shape_cast %481 : vector<1x1x8x128xf32> to vector<8x128xf32>
    %483 = vector.shape_cast %480 : vector<8x128xf32> to vector<1x1x8x128xf32>
    tpu.vector_store %arg10[%c0_364, %c15_365, %c0_366, %c0_367], %483 {strides = array<i32>} : memref<1x32x8x128xf32, #tpu.memory_space<vmem>>, vector<1x1x8x128xf32>,
    %c0_368 = arith.constant 0 : index
    %c15_369 = arith.constant 15 : index
    %c0_370 = arith.constant 0 : index
    %c0_371 = arith.constant 0 : index
    %484 = vector.load %arg11[%c0_368, %c15_369, %c0_370, %c0_371] : memref<1x32x8x128xf32, #tpu.memory_space<vmem>>, vector<1x1x8x128xf32>
    %485 = vector.shape_cast %484 : vector<1x1x8x128xf32> to vector<8x128xf32>
    %486 = vector.broadcast %cst_1 : f32 to vector<128x128xf32>
    %487 = arith.select %472, %63, %486 : vector<128x128xi1>, vector<128x128xf32>
    %488 = vector.shape_cast %487 : vector<128x128xf32> to vector<16x8x128xf32>
    %cst_372 = arith.constant dense<0.000000e+00> : vector<8x128xf32>
    %489 = vector.multi_reduction <add>, %488, %cst_372 [0] : vector<16x8x128xf32> to vector<8x128xf32>
    %490 = arith.addf %485, %489 : vector<8x128xf32>
    %c0_373 = arith.constant 0 : index
    %c15_374 = arith.constant 15 : index
    %c0_375 = arith.constant 0 : index
    %c0_376 = arith.constant 0 : index
    %491 = vector.load %arg11[%c0_373, %c15_374, %c0_375, %c0_376] : memref<1x32x8x128xf32, #tpu.memory_space<vmem>>, vector<1x1x8x128xf32>
    %492 = vector.shape_cast %491 : vector<1x1x8x128xf32> to vector<8x128xf32>
    %493 = vector.shape_cast %490 : vector<8x128xf32> to vector<1x1x8x128xf32>
    tpu.vector_store %arg11[%c0_373, %c15_374, %c0_375, %c0_376], %493 {strides = array<i32>} : memref<1x32x8x128xf32, #tpu.memory_space<vmem>>, vector<1x1x8x128xf32>,
    %cst_377 = arith.constant 0.316227764 : f32
    %494 = vector.broadcast %cst_377 : f32 to vector<128x128xf32>
    %495 = arith.cmpf oge, %63, %494 : vector<128x128xf32>
    %c0_378 = arith.constant 0 : index
    %c16 = arith.constant 16 : index
    %c0_379 = arith.constant 0 : index
    %c0_380 = arith.constant 0 : index
    %496 = vector.load %arg10[%c0_378, %c16, %c0_379, %c0_380] : memref<1x32x8x128xf32, #tpu.memory_space<vmem>>, vector<1x1x8x128xf32>
    %497 = vector.shape_cast %496 : vector<1x1x8x128xf32> to vector<8x128xf32>
    %498 = vector.broadcast %cst : f32 to vector<128x128xf32>
    %499 = vector.broadcast %cst_1 : f32 to vector<128x128xf32>
    %500 = arith.select %495, %498, %499 : vector<128x128xi1>, vector<128x128xf32>
    %501 = vector.shape_cast %500 : vector<128x128xf32> to vector<16x8x128xf32>
    %cst_381 = arith.constant dense<0.000000e+00> : vector<8x128xf32>
    %502 = vector.multi_reduction <add>, %501, %cst_381 [0] : vector<16x8x128xf32> to vector<8x128xf32>
    %503 = arith.addf %497, %502 : vector<8x128xf32>
    %c0_382 = arith.constant 0 : index
    %c16_383 = arith.constant 16 : index
    %c0_384 = arith.constant 0 : index
    %c0_385 = arith.constant 0 : index
    %504 = vector.load %arg10[%c0_382, %c16_383, %c0_384, %c0_385] : memref<1x32x8x128xf32, #tpu.memory_space<vmem>>, vector<1x1x8x128xf32>
    %505 = vector.shape_cast %504 : vector<1x1x8x128xf32> to vector<8x128xf32>
    %506 = vector.shape_cast %503 : vector<8x128xf32> to vector<1x1x8x128xf32>
    tpu.vector_store %arg10[%c0_382, %c16_383, %c0_384, %c0_385], %506 {strides = array<i32>} : memref<1x32x8x128xf32, #tpu.memory_space<vmem>>, vector<1x1x8x128xf32>,
    %c0_386 = arith.constant 0 : index
    %c16_387 = arith.constant 16 : index
    %c0_388 = arith.constant 0 : index
    %c0_389 = arith.constant 0 : index
    %507 = vector.load %arg11[%c0_386, %c16_387, %c0_388, %c0_389] : memref<1x32x8x128xf32, #tpu.memory_space<vmem>>, vector<1x1x8x128xf32>
    %508 = vector.shape_cast %507 : vector<1x1x8x128xf32> to vector<8x128xf32>
    %509 = vector.broadcast %cst_1 : f32 to vector<128x128xf32>
    %510 = arith.select %495, %63, %509 : vector<128x128xi1>, vector<128x128xf32>
    %511 = vector.shape_cast %510 : vector<128x128xf32> to vector<16x8x128xf32>
    %cst_390 = arith.constant dense<0.000000e+00> : vector<8x128xf32>
    %512 = vector.multi_reduction <add>, %511, %cst_390 [0] : vector<16x8x128xf32> to vector<8x128xf32>
    %513 = arith.addf %508, %512 : vector<8x128xf32>
    %c0_391 = arith.constant 0 : index
    %c16_392 = arith.constant 16 : index
    %c0_393 = arith.constant 0 : index
    %c0_394 = arith.constant 0 : index
    %514 = vector.load %arg11[%c0_391, %c16_392, %c0_393, %c0_394] : memref<1x32x8x128xf32, #tpu.memory_space<vmem>>, vector<1x1x8x128xf32>
    %515 = vector.shape_cast %514 : vector<1x1x8x128xf32> to vector<8x128xf32>
    %516 = vector.shape_cast %513 : vector<8x128xf32> to vector<1x1x8x128xf32>
    tpu.vector_store %arg11[%c0_391, %c16_392, %c0_393, %c0_394], %516 {strides = array<i32>} : memref<1x32x8x128xf32, #tpu.memory_space<vmem>>, vector<1x1x8x128xf32>,
    %cst_395 = arith.constant 0.464158893 : f32
    %517 = vector.broadcast %cst_395 : f32 to vector<128x128xf32>
    %518 = arith.cmpf oge, %63, %517 : vector<128x128xf32>
    %c0_396 = arith.constant 0 : index
    %c17 = arith.constant 17 : index
    %c0_397 = arith.constant 0 : index
    %c0_398 = arith.constant 0 : index
    %519 = vector.load %arg10[%c0_396, %c17, %c0_397, %c0_398] : memref<1x32x8x128xf32, #tpu.memory_space<vmem>>, vector<1x1x8x128xf32>
    %520 = vector.shape_cast %519 : vector<1x1x8x128xf32> to vector<8x128xf32>
    %521 = vector.broadcast %cst : f32 to vector<128x128xf32>
    %522 = vector.broadcast %cst_1 : f32 to vector<128x128xf32>
    %523 = arith.select %518, %521, %522 : vector<128x128xi1>, vector<128x128xf32>
    %524 = vector.shape_cast %523 : vector<128x128xf32> to vector<16x8x128xf32>
    %cst_399 = arith.constant dense<0.000000e+00> : vector<8x128xf32>
    %525 = vector.multi_reduction <add>, %524, %cst_399 [0] : vector<16x8x128xf32> to vector<8x128xf32>
    %526 = arith.addf %520, %525 : vector<8x128xf32>
    %c0_400 = arith.constant 0 : index
    %c17_401 = arith.constant 17 : index
    %c0_402 = arith.constant 0 : index
    %c0_403 = arith.constant 0 : index
    %527 = vector.load %arg10[%c0_400, %c17_401, %c0_402, %c0_403] : memref<1x32x8x128xf32, #tpu.memory_space<vmem>>, vector<1x1x8x128xf32>
    %528 = vector.shape_cast %527 : vector<1x1x8x128xf32> to vector<8x128xf32>
    %529 = vector.shape_cast %526 : vector<8x128xf32> to vector<1x1x8x128xf32>
    tpu.vector_store %arg10[%c0_400, %c17_401, %c0_402, %c0_403], %529 {strides = array<i32>} : memref<1x32x8x128xf32, #tpu.memory_space<vmem>>, vector<1x1x8x128xf32>,
    %c0_404 = arith.constant 0 : index
    %c17_405 = arith.constant 17 : index
    %c0_406 = arith.constant 0 : index
    %c0_407 = arith.constant 0 : index
    %530 = vector.load %arg11[%c0_404, %c17_405, %c0_406, %c0_407] : memref<1x32x8x128xf32, #tpu.memory_space<vmem>>, vector<1x1x8x128xf32>
    %531 = vector.shape_cast %530 : vector<1x1x8x128xf32> to vector<8x128xf32>
    %532 = vector.broadcast %cst_1 : f32 to vector<128x128xf32>
    %533 = arith.select %518, %63, %532 : vector<128x128xi1>, vector<128x128xf32>
    %534 = vector.shape_cast %533 : vector<128x128xf32> to vector<16x8x128xf32>
    %cst_408 = arith.constant dense<0.000000e+00> : vector<8x128xf32>
    %535 = vector.multi_reduction <add>, %534, %cst_408 [0] : vector<16x8x128xf32> to vector<8x128xf32>
    %536 = arith.addf %531, %535 : vector<8x128xf32>
    %c0_409 = arith.constant 0 : index
    %c17_410 = arith.constant 17 : index
    %c0_411 = arith.constant 0 : index
    %c0_412 = arith.constant 0 : index
    %537 = vector.load %arg11[%c0_409, %c17_410, %c0_411, %c0_412] : memref<1x32x8x128xf32, #tpu.memory_space<vmem>>, vector<1x1x8x128xf32>
    %538 = vector.shape_cast %537 : vector<1x1x8x128xf32> to vector<8x128xf32>
    %539 = vector.shape_cast %536 : vector<8x128xf32> to vector<1x1x8x128xf32>
    tpu.vector_store %arg11[%c0_409, %c17_410, %c0_411, %c0_412], %539 {strides = array<i32>} : memref<1x32x8x128xf32, #tpu.memory_space<vmem>>, vector<1x1x8x128xf32>,
    %cst_413 = arith.constant 0.681292057 : f32
    %540 = vector.broadcast %cst_413 : f32 to vector<128x128xf32>
    %541 = arith.cmpf oge, %63, %540 : vector<128x128xf32>
    %c0_414 = arith.constant 0 : index
    %c18 = arith.constant 18 : index
    %c0_415 = arith.constant 0 : index
    %c0_416 = arith.constant 0 : index
    %542 = vector.load %arg10[%c0_414, %c18, %c0_415, %c0_416] : memref<1x32x8x128xf32, #tpu.memory_space<vmem>>, vector<1x1x8x128xf32>
    %543 = vector.shape_cast %542 : vector<1x1x8x128xf32> to vector<8x128xf32>
    %544 = vector.broadcast %cst : f32 to vector<128x128xf32>
    %545 = vector.broadcast %cst_1 : f32 to vector<128x128xf32>
    %546 = arith.select %541, %544, %545 : vector<128x128xi1>, vector<128x128xf32>
    %547 = vector.shape_cast %546 : vector<128x128xf32> to vector<16x8x128xf32>
    %cst_417 = arith.constant dense<0.000000e+00> : vector<8x128xf32>
    %548 = vector.multi_reduction <add>, %547, %cst_417 [0] : vector<16x8x128xf32> to vector<8x128xf32>
    %549 = arith.addf %543, %548 : vector<8x128xf32>
    %c0_418 = arith.constant 0 : index
    %c18_419 = arith.constant 18 : index
    %c0_420 = arith.constant 0 : index
    %c0_421 = arith.constant 0 : index
    %550 = vector.load %arg10[%c0_418, %c18_419, %c0_420, %c0_421] : memref<1x32x8x128xf32, #tpu.memory_space<vmem>>, vector<1x1x8x128xf32>
    %551 = vector.shape_cast %550 : vector<1x1x8x128xf32> to vector<8x128xf32>
    %552 = vector.shape_cast %549 : vector<8x128xf32> to vector<1x1x8x128xf32>
    tpu.vector_store %arg10[%c0_418, %c18_419, %c0_420, %c0_421], %552 {strides = array<i32>} : memref<1x32x8x128xf32, #tpu.memory_space<vmem>>, vector<1x1x8x128xf32>,
    %c0_422 = arith.constant 0 : index
    %c18_423 = arith.constant 18 : index
    %c0_424 = arith.constant 0 : index
    %c0_425 = arith.constant 0 : index
    %553 = vector.load %arg11[%c0_422, %c18_423, %c0_424, %c0_425] : memref<1x32x8x128xf32, #tpu.memory_space<vmem>>, vector<1x1x8x128xf32>
    %554 = vector.shape_cast %553 : vector<1x1x8x128xf32> to vector<8x128xf32>
    %555 = vector.broadcast %cst_1 : f32 to vector<128x128xf32>
    %556 = arith.select %541, %63, %555 : vector<128x128xi1>, vector<128x128xf32>
    %557 = vector.shape_cast %556 : vector<128x128xf32> to vector<16x8x128xf32>
    %cst_426 = arith.constant dense<0.000000e+00> : vector<8x128xf32>
    %558 = vector.multi_reduction <add>, %557, %cst_426 [0] : vector<16x8x128xf32> to vector<8x128xf32>
    %559 = arith.addf %554, %558 : vector<8x128xf32>
    %c0_427 = arith.constant 0 : index
    %c18_428 = arith.constant 18 : index
    %c0_429 = arith.constant 0 : index
    %c0_430 = arith.constant 0 : index
    %560 = vector.load %arg11[%c0_427, %c18_428, %c0_429, %c0_430] : memref<1x32x8x128xf32, #tpu.memory_space<vmem>>, vector<1x1x8x128xf32>
    %561 = vector.shape_cast %560 : vector<1x1x8x128xf32> to vector<8x128xf32>
    %562 = vector.shape_cast %559 : vector<8x128xf32> to vector<1x1x8x128xf32>
    tpu.vector_store %arg11[%c0_427, %c18_428, %c0_429, %c0_430], %562 {strides = array<i32>} : memref<1x32x8x128xf32, #tpu.memory_space<vmem>>, vector<1x1x8x128xf32>,
    %cst_431 = arith.constant 1.000000e+00 : f32
    %563 = vector.broadcast %cst_431 : f32 to vector<128x128xf32>
    %564 = arith.cmpf oge, %63, %563 : vector<128x128xf32>
    %c0_432 = arith.constant 0 : index
    %c19 = arith.constant 19 : index
    %c0_433 = arith.constant 0 : index
    %c0_434 = arith.constant 0 : index
    %565 = vector.load %arg10[%c0_432, %c19, %c0_433, %c0_434] : memref<1x32x8x128xf32, #tpu.memory_space<vmem>>, vector<1x1x8x128xf32>
    %566 = vector.shape_cast %565 : vector<1x1x8x128xf32> to vector<8x128xf32>
    %567 = vector.broadcast %cst : f32 to vector<128x128xf32>
    %568 = vector.broadcast %cst_1 : f32 to vector<128x128xf32>
    %569 = arith.select %564, %567, %568 : vector<128x128xi1>, vector<128x128xf32>
    %570 = vector.shape_cast %569 : vector<128x128xf32> to vector<16x8x128xf32>
    %cst_435 = arith.constant dense<0.000000e+00> : vector<8x128xf32>
    %571 = vector.multi_reduction <add>, %570, %cst_435 [0] : vector<16x8x128xf32> to vector<8x128xf32>
    %572 = arith.addf %566, %571 : vector<8x128xf32>
    %c0_436 = arith.constant 0 : index
    %c19_437 = arith.constant 19 : index
    %c0_438 = arith.constant 0 : index
    %c0_439 = arith.constant 0 : index
    %573 = vector.load %arg10[%c0_436, %c19_437, %c0_438, %c0_439] : memref<1x32x8x128xf32, #tpu.memory_space<vmem>>, vector<1x1x8x128xf32>
    %574 = vector.shape_cast %573 : vector<1x1x8x128xf32> to vector<8x128xf32>
    %575 = vector.shape_cast %572 : vector<8x128xf32> to vector<1x1x8x128xf32>
    tpu.vector_store %arg10[%c0_436, %c19_437, %c0_438, %c0_439], %575 {strides = array<i32>} : memref<1x32x8x128xf32, #tpu.memory_space<vmem>>, vector<1x1x8x128xf32>,
    %c0_440 = arith.constant 0 : index
    %c19_441 = arith.constant 19 : index
    %c0_442 = arith.constant 0 : index
    %c0_443 = arith.constant 0 : index
    %576 = vector.load %arg11[%c0_440, %c19_441, %c0_442, %c0_443] : memref<1x32x8x128xf32, #tpu.memory_space<vmem>>, vector<1x1x8x128xf32>
    %577 = vector.shape_cast %576 : vector<1x1x8x128xf32> to vector<8x128xf32>
    %578 = vector.broadcast %cst_1 : f32 to vector<128x128xf32>
    %579 = arith.select %564, %63, %578 : vector<128x128xi1>, vector<128x128xf32>
    %580 = vector.shape_cast %579 : vector<128x128xf32> to vector<16x8x128xf32>
    %cst_444 = arith.constant dense<0.000000e+00> : vector<8x128xf32>
    %581 = vector.multi_reduction <add>, %580, %cst_444 [0] : vector<16x8x128xf32> to vector<8x128xf32>
    %582 = arith.addf %577, %581 : vector<8x128xf32>
    %c0_445 = arith.constant 0 : index
    %c19_446 = arith.constant 19 : index
    %c0_447 = arith.constant 0 : index
    %c0_448 = arith.constant 0 : index
    %583 = vector.load %arg11[%c0_445, %c19_446, %c0_447, %c0_448] : memref<1x32x8x128xf32, #tpu.memory_space<vmem>>, vector<1x1x8x128xf32>
    %584 = vector.shape_cast %583 : vector<1x1x8x128xf32> to vector<8x128xf32>
    %585 = vector.shape_cast %582 : vector<8x128xf32> to vector<1x1x8x128xf32>
    tpu.vector_store %arg11[%c0_445, %c19_446, %c0_447, %c0_448], %585 {strides = array<i32>} : memref<1x32x8x128xf32, #tpu.memory_space<vmem>>, vector<1x1x8x128xf32>,
    %cst_449 = arith.constant 1.46779931 : f32
    %586 = vector.broadcast %cst_449 : f32 to vector<128x128xf32>
    %587 = arith.cmpf oge, %63, %586 : vector<128x128xf32>
    %c0_450 = arith.constant 0 : index
    %c20 = arith.constant 20 : index
    %c0_451 = arith.constant 0 : index
    %c0_452 = arith.constant 0 : index
    %588 = vector.load %arg10[%c0_450, %c20, %c0_451, %c0_452] : memref<1x32x8x128xf32, #tpu.memory_space<vmem>>, vector<1x1x8x128xf32>
    %589 = vector.shape_cast %588 : vector<1x1x8x128xf32> to vector<8x128xf32>
    %590 = vector.broadcast %cst : f32 to vector<128x128xf32>
    %591 = vector.broadcast %cst_1 : f32 to vector<128x128xf32>
    %592 = arith.select %587, %590, %591 : vector<128x128xi1>, vector<128x128xf32>
    %593 = vector.shape_cast %592 : vector<128x128xf32> to vector<16x8x128xf32>
    %cst_453 = arith.constant dense<0.000000e+00> : vector<8x128xf32>
    %594 = vector.multi_reduction <add>, %593, %cst_453 [0] : vector<16x8x128xf32> to vector<8x128xf32>
    %595 = arith.addf %589, %594 : vector<8x128xf32>
    %c0_454 = arith.constant 0 : index
    %c20_455 = arith.constant 20 : index
    %c0_456 = arith.constant 0 : index
    %c0_457 = arith.constant 0 : index
    %596 = vector.load %arg10[%c0_454, %c20_455, %c0_456, %c0_457] : memref<1x32x8x128xf32, #tpu.memory_space<vmem>>, vector<1x1x8x128xf32>
    %597 = vector.shape_cast %596 : vector<1x1x8x128xf32> to vector<8x128xf32>
    %598 = vector.shape_cast %595 : vector<8x128xf32> to vector<1x1x8x128xf32>
    tpu.vector_store %arg10[%c0_454, %c20_455, %c0_456, %c0_457], %598 {strides = array<i32>} : memref<1x32x8x128xf32, #tpu.memory_space<vmem>>, vector<1x1x8x128xf32>,
    %c0_458 = arith.constant 0 : index
    %c20_459 = arith.constant 20 : index
    %c0_460 = arith.constant 0 : index
    %c0_461 = arith.constant 0 : index
    %599 = vector.load %arg11[%c0_458, %c20_459, %c0_460, %c0_461] : memref<1x32x8x128xf32, #tpu.memory_space<vmem>>, vector<1x1x8x128xf32>
    %600 = vector.shape_cast %599 : vector<1x1x8x128xf32> to vector<8x128xf32>
    %601 = vector.broadcast %cst_1 : f32 to vector<128x128xf32>
    %602 = arith.select %587, %63, %601 : vector<128x128xi1>, vector<128x128xf32>
    %603 = vector.shape_cast %602 : vector<128x128xf32> to vector<16x8x128xf32>
    %cst_462 = arith.constant dense<0.000000e+00> : vector<8x128xf32>
    %604 = vector.multi_reduction <add>, %603, %cst_462 [0] : vector<16x8x128xf32> to vector<8x128xf32>
    %605 = arith.addf %600, %604 : vector<8x128xf32>
    %c0_463 = arith.constant 0 : index
    %c20_464 = arith.constant 20 : index
    %c0_465 = arith.constant 0 : index
    %c0_466 = arith.constant 0 : index
    %606 = vector.load %arg11[%c0_463, %c20_464, %c0_465, %c0_466] : memref<1x32x8x128xf32, #tpu.memory_space<vmem>>, vector<1x1x8x128xf32>
    %607 = vector.shape_cast %606 : vector<1x1x8x128xf32> to vector<8x128xf32>
    %608 = vector.shape_cast %605 : vector<8x128xf32> to vector<1x1x8x128xf32>
    tpu.vector_store %arg11[%c0_463, %c20_464, %c0_465, %c0_466], %608 {strides = array<i32>} : memref<1x32x8x128xf32, #tpu.memory_space<vmem>>, vector<1x1x8x128xf32>,
    %cst_467 = arith.constant 2.15443468 : f32
    %609 = vector.broadcast %cst_467 : f32 to vector<128x128xf32>
    %610 = arith.cmpf oge, %63, %609 : vector<128x128xf32>
    %c0_468 = arith.constant 0 : index
    %c21 = arith.constant 21 : index
    %c0_469 = arith.constant 0 : index
    %c0_470 = arith.constant 0 : index
    %611 = vector.load %arg10[%c0_468, %c21, %c0_469, %c0_470] : memref<1x32x8x128xf32, #tpu.memory_space<vmem>>, vector<1x1x8x128xf32>
    %612 = vector.shape_cast %611 : vector<1x1x8x128xf32> to vector<8x128xf32>
    %613 = vector.broadcast %cst : f32 to vector<128x128xf32>
    %614 = vector.broadcast %cst_1 : f32 to vector<128x128xf32>
    %615 = arith.select %610, %613, %614 : vector<128x128xi1>, vector<128x128xf32>
    %616 = vector.shape_cast %615 : vector<128x128xf32> to vector<16x8x128xf32>
    %cst_471 = arith.constant dense<0.000000e+00> : vector<8x128xf32>
    %617 = vector.multi_reduction <add>, %616, %cst_471 [0] : vector<16x8x128xf32> to vector<8x128xf32>
    %618 = arith.addf %612, %617 : vector<8x128xf32>
    %c0_472 = arith.constant 0 : index
    %c21_473 = arith.constant 21 : index
    %c0_474 = arith.constant 0 : index
    %c0_475 = arith.constant 0 : index
    %619 = vector.load %arg10[%c0_472, %c21_473, %c0_474, %c0_475] : memref<1x32x8x128xf32, #tpu.memory_space<vmem>>, vector<1x1x8x128xf32>
    %620 = vector.shape_cast %619 : vector<1x1x8x128xf32> to vector<8x128xf32>
    %621 = vector.shape_cast %618 : vector<8x128xf32> to vector<1x1x8x128xf32>
    tpu.vector_store %arg10[%c0_472, %c21_473, %c0_474, %c0_475], %621 {strides = array<i32>} : memref<1x32x8x128xf32, #tpu.memory_space<vmem>>, vector<1x1x8x128xf32>,
    %c0_476 = arith.constant 0 : index
    %c21_477 = arith.constant 21 : index
    %c0_478 = arith.constant 0 : index
    %c0_479 = arith.constant 0 : index
    %622 = vector.load %arg11[%c0_476, %c21_477, %c0_478, %c0_479] : memref<1x32x8x128xf32, #tpu.memory_space<vmem>>, vector<1x1x8x128xf32>
    %623 = vector.shape_cast %622 : vector<1x1x8x128xf32> to vector<8x128xf32>
    %624 = vector.broadcast %cst_1 : f32 to vector<128x128xf32>
    %625 = arith.select %610, %63, %624 : vector<128x128xi1>, vector<128x128xf32>
    %626 = vector.shape_cast %625 : vector<128x128xf32> to vector<16x8x128xf32>
    %cst_480 = arith.constant dense<0.000000e+00> : vector<8x128xf32>
    %627 = vector.multi_reduction <add>, %626, %cst_480 [0] : vector<16x8x128xf32> to vector<8x128xf32>
    %628 = arith.addf %623, %627 : vector<8x128xf32>
    %c0_481 = arith.constant 0 : index
    %c21_482 = arith.constant 21 : index
    %c0_483 = arith.constant 0 : index
    %c0_484 = arith.constant 0 : index
    %629 = vector.load %arg11[%c0_481, %c21_482, %c0_483, %c0_484] : memref<1x32x8x128xf32, #tpu.memory_space<vmem>>, vector<1x1x8x128xf32>
    %630 = vector.shape_cast %629 : vector<1x1x8x128xf32> to vector<8x128xf32>
    %631 = vector.shape_cast %628 : vector<8x128xf32> to vector<1x1x8x128xf32>
    tpu.vector_store %arg11[%c0_481, %c21_482, %c0_483, %c0_484], %631 {strides = array<i32>} : memref<1x32x8x128xf32, #tpu.memory_space<vmem>>, vector<1x1x8x128xf32>,
    %cst_485 = arith.constant 3.1622777 : f32
    %632 = vector.broadcast %cst_485 : f32 to vector<128x128xf32>
    %633 = arith.cmpf oge, %63, %632 : vector<128x128xf32>
    %c0_486 = arith.constant 0 : index
    %c22 = arith.constant 22 : index
    %c0_487 = arith.constant 0 : index
    %c0_488 = arith.constant 0 : index
    %634 = vector.load %arg10[%c0_486, %c22, %c0_487, %c0_488] : memref<1x32x8x128xf32, #tpu.memory_space<vmem>>, vector<1x1x8x128xf32>
    %635 = vector.shape_cast %634 : vector<1x1x8x128xf32> to vector<8x128xf32>
    %636 = vector.broadcast %cst : f32 to vector<128x128xf32>
    %637 = vector.broadcast %cst_1 : f32 to vector<128x128xf32>
    %638 = arith.select %633, %636, %637 : vector<128x128xi1>, vector<128x128xf32>
    %639 = vector.shape_cast %638 : vector<128x128xf32> to vector<16x8x128xf32>
    %cst_489 = arith.constant dense<0.000000e+00> : vector<8x128xf32>
    %640 = vector.multi_reduction <add>, %639, %cst_489 [0] : vector<16x8x128xf32> to vector<8x128xf32>
    %641 = arith.addf %635, %640 : vector<8x128xf32>
    %c0_490 = arith.constant 0 : index
    %c22_491 = arith.constant 22 : index
    %c0_492 = arith.constant 0 : index
    %c0_493 = arith.constant 0 : index
    %642 = vector.load %arg10[%c0_490, %c22_491, %c0_492, %c0_493] : memref<1x32x8x128xf32, #tpu.memory_space<vmem>>, vector<1x1x8x128xf32>
    %643 = vector.shape_cast %642 : vector<1x1x8x128xf32> to vector<8x128xf32>
    %644 = vector.shape_cast %641 : vector<8x128xf32> to vector<1x1x8x128xf32>
    tpu.vector_store %arg10[%c0_490, %c22_491, %c0_492, %c0_493], %644 {strides = array<i32>} : memref<1x32x8x128xf32, #tpu.memory_space<vmem>>, vector<1x1x8x128xf32>,
    %c0_494 = arith.constant 0 : index
    %c22_495 = arith.constant 22 : index
    %c0_496 = arith.constant 0 : index
    %c0_497 = arith.constant 0 : index
    %645 = vector.load %arg11[%c0_494, %c22_495, %c0_496, %c0_497] : memref<1x32x8x128xf32, #tpu.memory_space<vmem>>, vector<1x1x8x128xf32>
    %646 = vector.shape_cast %645 : vector<1x1x8x128xf32> to vector<8x128xf32>
    %647 = vector.broadcast %cst_1 : f32 to vector<128x128xf32>
    %648 = arith.select %633, %63, %647 : vector<128x128xi1>, vector<128x128xf32>
    %649 = vector.shape_cast %648 : vector<128x128xf32> to vector<16x8x128xf32>
    %cst_498 = arith.constant dense<0.000000e+00> : vector<8x128xf32>
    %650 = vector.multi_reduction <add>, %649, %cst_498 [0] : vector<16x8x128xf32> to vector<8x128xf32>
    %651 = arith.addf %646, %650 : vector<8x128xf32>
    %c0_499 = arith.constant 0 : index
    %c22_500 = arith.constant 22 : index
    %c0_501 = arith.constant 0 : index
    %c0_502 = arith.constant 0 : index
    %652 = vector.load %arg11[%c0_499, %c22_500, %c0_501, %c0_502] : memref<1x32x8x128xf32, #tpu.memory_space<vmem>>, vector<1x1x8x128xf32>
    %653 = vector.shape_cast %652 : vector<1x1x8x128xf32> to vector<8x128xf32>
    %654 = vector.shape_cast %651 : vector<8x128xf32> to vector<1x1x8x128xf32>
    tpu.vector_store %arg11[%c0_499, %c22_500, %c0_501, %c0_502], %654 {strides = array<i32>} : memref<1x32x8x128xf32, #tpu.memory_space<vmem>>, vector<1x1x8x128xf32>,
    %cst_503 = arith.constant 4.64158869 : f32
    %655 = vector.broadcast %cst_503 : f32 to vector<128x128xf32>
    %656 = arith.cmpf oge, %63, %655 : vector<128x128xf32>
    %c0_504 = arith.constant 0 : index
    %c23 = arith.constant 23 : index
    %c0_505 = arith.constant 0 : index
    %c0_506 = arith.constant 0 : index
    %657 = vector.load %arg10[%c0_504, %c23, %c0_505, %c0_506] : memref<1x32x8x128xf32, #tpu.memory_space<vmem>>, vector<1x1x8x128xf32>
    %658 = vector.shape_cast %657 : vector<1x1x8x128xf32> to vector<8x128xf32>
    %659 = vector.broadcast %cst : f32 to vector<128x128xf32>
    %660 = vector.broadcast %cst_1 : f32 to vector<128x128xf32>
    %661 = arith.select %656, %659, %660 : vector<128x128xi1>, vector<128x128xf32>
    %662 = vector.shape_cast %661 : vector<128x128xf32> to vector<16x8x128xf32>
    %cst_507 = arith.constant dense<0.000000e+00> : vector<8x128xf32>
    %663 = vector.multi_reduction <add>, %662, %cst_507 [0] : vector<16x8x128xf32> to vector<8x128xf32>
    %664 = arith.addf %658, %663 : vector<8x128xf32>
    %c0_508 = arith.constant 0 : index
    %c23_509 = arith.constant 23 : index
    %c0_510 = arith.constant 0 : index
    %c0_511 = arith.constant 0 : index
    %665 = vector.load %arg10[%c0_508, %c23_509, %c0_510, %c0_511] : memref<1x32x8x128xf32, #tpu.memory_space<vmem>>, vector<1x1x8x128xf32>
    %666 = vector.shape_cast %665 : vector<1x1x8x128xf32> to vector<8x128xf32>
    %667 = vector.shape_cast %664 : vector<8x128xf32> to vector<1x1x8x128xf32>
    tpu.vector_store %arg10[%c0_508, %c23_509, %c0_510, %c0_511], %667 {strides = array<i32>} : memref<1x32x8x128xf32, #tpu.memory_space<vmem>>, vector<1x1x8x128xf32>,
    %c0_512 = arith.constant 0 : index
    %c23_513 = arith.constant 23 : index
    %c0_514 = arith.constant 0 : index
    %c0_515 = arith.constant 0 : index
    %668 = vector.load %arg11[%c0_512, %c23_513, %c0_514, %c0_515] : memref<1x32x8x128xf32, #tpu.memory_space<vmem>>, vector<1x1x8x128xf32>
    %669 = vector.shape_cast %668 : vector<1x1x8x128xf32> to vector<8x128xf32>
    %670 = vector.broadcast %cst_1 : f32 to vector<128x128xf32>
    %671 = arith.select %656, %63, %670 : vector<128x128xi1>, vector<128x128xf32>
    %672 = vector.shape_cast %671 : vector<128x128xf32> to vector<16x8x128xf32>
    %cst_516 = arith.constant dense<0.000000e+00> : vector<8x128xf32>
    %673 = vector.multi_reduction <add>, %672, %cst_516 [0] : vector<16x8x128xf32> to vector<8x128xf32>
    %674 = arith.addf %669, %673 : vector<8x128xf32>
    %c0_517 = arith.constant 0 : index
    %c23_518 = arith.constant 23 : index
    %c0_519 = arith.constant 0 : index
    %c0_520 = arith.constant 0 : index
    %675 = vector.load %arg11[%c0_517, %c23_518, %c0_519, %c0_520] : memref<1x32x8x128xf32, #tpu.memory_space<vmem>>, vector<1x1x8x128xf32>
    %676 = vector.shape_cast %675 : vector<1x1x8x128xf32> to vector<8x128xf32>
    %677 = vector.shape_cast %674 : vector<8x128xf32> to vector<1x1x8x128xf32>
    tpu.vector_store %arg11[%c0_517, %c23_518, %c0_519, %c0_520], %677 {strides = array<i32>} : memref<1x32x8x128xf32, #tpu.memory_space<vmem>>, vector<1x1x8x128xf32>,
    %cst_521 = arith.constant 6.81292057 : f32
    %678 = vector.broadcast %cst_521 : f32 to vector<128x128xf32>
    %679 = arith.cmpf oge, %63, %678 : vector<128x128xf32>
    %c0_522 = arith.constant 0 : index
    %c24 = arith.constant 24 : index
    %c0_523 = arith.constant 0 : index
    %c0_524 = arith.constant 0 : index
    %680 = vector.load %arg10[%c0_522, %c24, %c0_523, %c0_524] : memref<1x32x8x128xf32, #tpu.memory_space<vmem>>, vector<1x1x8x128xf32>
    %681 = vector.shape_cast %680 : vector<1x1x8x128xf32> to vector<8x128xf32>
    %682 = vector.broadcast %cst : f32 to vector<128x128xf32>
    %683 = vector.broadcast %cst_1 : f32 to vector<128x128xf32>
    %684 = arith.select %679, %682, %683 : vector<128x128xi1>, vector<128x128xf32>
    %685 = vector.shape_cast %684 : vector<128x128xf32> to vector<16x8x128xf32>
    %cst_525 = arith.constant dense<0.000000e+00> : vector<8x128xf32>
    %686 = vector.multi_reduction <add>, %685, %cst_525 [0] : vector<16x8x128xf32> to vector<8x128xf32>
    %687 = arith.addf %681, %686 : vector<8x128xf32>
    %c0_526 = arith.constant 0 : index
    %c24_527 = arith.constant 24 : index
    %c0_528 = arith.constant 0 : index
    %c0_529 = arith.constant 0 : index
    %688 = vector.load %arg10[%c0_526, %c24_527, %c0_528, %c0_529] : memref<1x32x8x128xf32, #tpu.memory_space<vmem>>, vector<1x1x8x128xf32>
    %689 = vector.shape_cast %688 : vector<1x1x8x128xf32> to vector<8x128xf32>
    %690 = vector.shape_cast %687 : vector<8x128xf32> to vector<1x1x8x128xf32>
    tpu.vector_store %arg10[%c0_526, %c24_527, %c0_528, %c0_529], %690 {strides = array<i32>} : memref<1x32x8x128xf32, #tpu.memory_space<vmem>>, vector<1x1x8x128xf32>,
    %c0_530 = arith.constant 0 : index
    %c24_531 = arith.constant 24 : index
    %c0_532 = arith.constant 0 : index
    %c0_533 = arith.constant 0 : index
    %691 = vector.load %arg11[%c0_530, %c24_531, %c0_532, %c0_533] : memref<1x32x8x128xf32, #tpu.memory_space<vmem>>, vector<1x1x8x128xf32>
    %692 = vector.shape_cast %691 : vector<1x1x8x128xf32> to vector<8x128xf32>
    %693 = vector.broadcast %cst_1 : f32 to vector<128x128xf32>
    %694 = arith.select %679, %63, %693 : vector<128x128xi1>, vector<128x128xf32>
    %695 = vector.shape_cast %694 : vector<128x128xf32> to vector<16x8x128xf32>
    %cst_534 = arith.constant dense<0.000000e+00> : vector<8x128xf32>
    %696 = vector.multi_reduction <add>, %695, %cst_534 [0] : vector<16x8x128xf32> to vector<8x128xf32>
    %697 = arith.addf %692, %696 : vector<8x128xf32>
    %c0_535 = arith.constant 0 : index
    %c24_536 = arith.constant 24 : index
    %c0_537 = arith.constant 0 : index
    %c0_538 = arith.constant 0 : index
    %698 = vector.load %arg11[%c0_535, %c24_536, %c0_537, %c0_538] : memref<1x32x8x128xf32, #tpu.memory_space<vmem>>, vector<1x1x8x128xf32>
    %699 = vector.shape_cast %698 : vector<1x1x8x128xf32> to vector<8x128xf32>
    %700 = vector.shape_cast %697 : vector<8x128xf32> to vector<1x1x8x128xf32>
    tpu.vector_store %arg11[%c0_535, %c24_536, %c0_537, %c0_538], %700 {strides = array<i32>} : memref<1x32x8x128xf32, #tpu.memory_space<vmem>>, vector<1x1x8x128xf32>,
    %cst_539 = arith.constant 1.000000e+01 : f32
    %701 = vector.broadcast %cst_539 : f32 to vector<128x128xf32>
    %702 = arith.cmpf oge, %63, %701 : vector<128x128xf32>
    %c0_540 = arith.constant 0 : index
    %c25 = arith.constant 25 : index
    %c0_541 = arith.constant 0 : index
    %c0_542 = arith.constant 0 : index
    %703 = vector.load %arg10[%c0_540, %c25, %c0_541, %c0_542] : memref<1x32x8x128xf32, #tpu.memory_space<vmem>>, vector<1x1x8x128xf32>
    %704 = vector.shape_cast %703 : vector<1x1x8x128xf32> to vector<8x128xf32>
    %705 = vector.broadcast %cst : f32 to vector<128x128xf32>
    %706 = vector.broadcast %cst_1 : f32 to vector<128x128xf32>
    %707 = arith.select %702, %705, %706 : vector<128x128xi1>, vector<128x128xf32>
    %708 = vector.shape_cast %707 : vector<128x128xf32> to vector<16x8x128xf32>
    %cst_543 = arith.constant dense<0.000000e+00> : vector<8x128xf32>
    %709 = vector.multi_reduction <add>, %708, %cst_543 [0] : vector<16x8x128xf32> to vector<8x128xf32>
    %710 = arith.addf %704, %709 : vector<8x128xf32>
    %c0_544 = arith.constant 0 : index
    %c25_545 = arith.constant 25 : index
    %c0_546 = arith.constant 0 : index
    %c0_547 = arith.constant 0 : index
    %711 = vector.load %arg10[%c0_544, %c25_545, %c0_546, %c0_547] : memref<1x32x8x128xf32, #tpu.memory_space<vmem>>, vector<1x1x8x128xf32>
    %712 = vector.shape_cast %711 : vector<1x1x8x128xf32> to vector<8x128xf32>
    %713 = vector.shape_cast %710 : vector<8x128xf32> to vector<1x1x8x128xf32>
    tpu.vector_store %arg10[%c0_544, %c25_545, %c0_546, %c0_547], %713 {strides = array<i32>} : memref<1x32x8x128xf32, #tpu.memory_space<vmem>>, vector<1x1x8x128xf32>,
    %c0_548 = arith.constant 0 : index
    %c25_549 = arith.constant 25 : index
    %c0_550 = arith.constant 0 : index
    %c0_551 = arith.constant 0 : index
    %714 = vector.load %arg11[%c0_548, %c25_549, %c0_550, %c0_551] : memref<1x32x8x128xf32, #tpu.memory_space<vmem>>, vector<1x1x8x128xf32>
    %715 = vector.shape_cast %714 : vector<1x1x8x128xf32> to vector<8x128xf32>
    %716 = vector.broadcast %cst_1 : f32 to vector<128x128xf32>
    %717 = arith.select %702, %63, %716 : vector<128x128xi1>, vector<128x128xf32>
    %718 = vector.shape_cast %717 : vector<128x128xf32> to vector<16x8x128xf32>
    %cst_552 = arith.constant dense<0.000000e+00> : vector<8x128xf32>
    %719 = vector.multi_reduction <add>, %718, %cst_552 [0] : vector<16x8x128xf32> to vector<8x128xf32>
    %720 = arith.addf %715, %719 : vector<8x128xf32>
    %c0_553 = arith.constant 0 : index
    %c25_554 = arith.constant 25 : index
    %c0_555 = arith.constant 0 : index
    %c0_556 = arith.constant 0 : index
    %721 = vector.load %arg11[%c0_553, %c25_554, %c0_555, %c0_556] : memref<1x32x8x128xf32, #tpu.memory_space<vmem>>, vector<1x1x8x128xf32>
    %722 = vector.shape_cast %721 : vector<1x1x8x128xf32> to vector<8x128xf32>
    %723 = vector.shape_cast %720 : vector<8x128xf32> to vector<1x1x8x128xf32>
    tpu.vector_store %arg11[%c0_553, %c25_554, %c0_555, %c0_556], %723 {strides = array<i32>} : memref<1x32x8x128xf32, #tpu.memory_space<vmem>>, vector<1x1x8x128xf32>,
    %cst_557 = arith.constant 14.6779928 : f32
    %724 = vector.broadcast %cst_557 : f32 to vector<128x128xf32>
    %725 = arith.cmpf oge, %63, %724 : vector<128x128xf32>
    %c0_558 = arith.constant 0 : index
    %c26 = arith.constant 26 : index
    %c0_559 = arith.constant 0 : index
    %c0_560 = arith.constant 0 : index
    %726 = vector.load %arg10[%c0_558, %c26, %c0_559, %c0_560] : memref<1x32x8x128xf32, #tpu.memory_space<vmem>>, vector<1x1x8x128xf32>
    %727 = vector.shape_cast %726 : vector<1x1x8x128xf32> to vector<8x128xf32>
    %728 = vector.broadcast %cst : f32 to vector<128x128xf32>
    %729 = vector.broadcast %cst_1 : f32 to vector<128x128xf32>
    %730 = arith.select %725, %728, %729 : vector<128x128xi1>, vector<128x128xf32>
    %731 = vector.shape_cast %730 : vector<128x128xf32> to vector<16x8x128xf32>
    %cst_561 = arith.constant dense<0.000000e+00> : vector<8x128xf32>
    %732 = vector.multi_reduction <add>, %731, %cst_561 [0] : vector<16x8x128xf32> to vector<8x128xf32>
    %733 = arith.addf %727, %732 : vector<8x128xf32>
    %c0_562 = arith.constant 0 : index
    %c26_563 = arith.constant 26 : index
    %c0_564 = arith.constant 0 : index
    %c0_565 = arith.constant 0 : index
    %734 = vector.load %arg10[%c0_562, %c26_563, %c0_564, %c0_565] : memref<1x32x8x128xf32, #tpu.memory_space<vmem>>, vector<1x1x8x128xf32>
    %735 = vector.shape_cast %734 : vector<1x1x8x128xf32> to vector<8x128xf32>
    %736 = vector.shape_cast %733 : vector<8x128xf32> to vector<1x1x8x128xf32>
    tpu.vector_store %arg10[%c0_562, %c26_563, %c0_564, %c0_565], %736 {strides = array<i32>} : memref<1x32x8x128xf32, #tpu.memory_space<vmem>>, vector<1x1x8x128xf32>,
    %c0_566 = arith.constant 0 : index
    %c26_567 = arith.constant 26 : index
    %c0_568 = arith.constant 0 : index
    %c0_569 = arith.constant 0 : index
    %737 = vector.load %arg11[%c0_566, %c26_567, %c0_568, %c0_569] : memref<1x32x8x128xf32, #tpu.memory_space<vmem>>, vector<1x1x8x128xf32>
    %738 = vector.shape_cast %737 : vector<1x1x8x128xf32> to vector<8x128xf32>
    %739 = vector.broadcast %cst_1 : f32 to vector<128x128xf32>
    %740 = arith.select %725, %63, %739 : vector<128x128xi1>, vector<128x128xf32>
    %741 = vector.shape_cast %740 : vector<128x128xf32> to vector<16x8x128xf32>
    %cst_570 = arith.constant dense<0.000000e+00> : vector<8x128xf32>
    %742 = vector.multi_reduction <add>, %741, %cst_570 [0] : vector<16x8x128xf32> to vector<8x128xf32>
    %743 = arith.addf %738, %742 : vector<8x128xf32>
    %c0_571 = arith.constant 0 : index
    %c26_572 = arith.constant 26 : index
    %c0_573 = arith.constant 0 : index
    %c0_574 = arith.constant 0 : index
    %744 = vector.load %arg11[%c0_571, %c26_572, %c0_573, %c0_574] : memref<1x32x8x128xf32, #tpu.memory_space<vmem>>, vector<1x1x8x128xf32>
    %745 = vector.shape_cast %744 : vector<1x1x8x128xf32> to vector<8x128xf32>
    %746 = vector.shape_cast %743 : vector<8x128xf32> to vector<1x1x8x128xf32>
    tpu.vector_store %arg11[%c0_571, %c26_572, %c0_573, %c0_574], %746 {strides = array<i32>} : memref<1x32x8x128xf32, #tpu.memory_space<vmem>>, vector<1x1x8x128xf32>,
    %cst_575 = arith.constant 21.5443478 : f32
    %747 = vector.broadcast %cst_575 : f32 to vector<128x128xf32>
    %748 = arith.cmpf oge, %63, %747 : vector<128x128xf32>
    %c0_576 = arith.constant 0 : index
    %c27 = arith.constant 27 : index
    %c0_577 = arith.constant 0 : index
    %c0_578 = arith.constant 0 : index
    %749 = vector.load %arg10[%c0_576, %c27, %c0_577, %c0_578] : memref<1x32x8x128xf32, #tpu.memory_space<vmem>>, vector<1x1x8x128xf32>
    %750 = vector.shape_cast %749 : vector<1x1x8x128xf32> to vector<8x128xf32>
    %751 = vector.broadcast %cst : f32 to vector<128x128xf32>
    %752 = vector.broadcast %cst_1 : f32 to vector<128x128xf32>
    %753 = arith.select %748, %751, %752 : vector<128x128xi1>, vector<128x128xf32>
    %754 = vector.shape_cast %753 : vector<128x128xf32> to vector<16x8x128xf32>
    %cst_579 = arith.constant dense<0.000000e+00> : vector<8x128xf32>
    %755 = vector.multi_reduction <add>, %754, %cst_579 [0] : vector<16x8x128xf32> to vector<8x128xf32>
    %756 = arith.addf %750, %755 : vector<8x128xf32>
    %c0_580 = arith.constant 0 : index
    %c27_581 = arith.constant 27 : index
    %c0_582 = arith.constant 0 : index
    %c0_583 = arith.constant 0 : index
    %757 = vector.load %arg10[%c0_580, %c27_581, %c0_582, %c0_583] : memref<1x32x8x128xf32, #tpu.memory_space<vmem>>, vector<1x1x8x128xf32>
    %758 = vector.shape_cast %757 : vector<1x1x8x128xf32> to vector<8x128xf32>
    %759 = vector.shape_cast %756 : vector<8x128xf32> to vector<1x1x8x128xf32>
    tpu.vector_store %arg10[%c0_580, %c27_581, %c0_582, %c0_583], %759 {strides = array<i32>} : memref<1x32x8x128xf32, #tpu.memory_space<vmem>>, vector<1x1x8x128xf32>,
    %c0_584 = arith.constant 0 : index
    %c27_585 = arith.constant 27 : index
    %c0_586 = arith.constant 0 : index
    %c0_587 = arith.constant 0 : index
    %760 = vector.load %arg11[%c0_584, %c27_585, %c0_586, %c0_587] : memref<1x32x8x128xf32, #tpu.memory_space<vmem>>, vector<1x1x8x128xf32>
    %761 = vector.shape_cast %760 : vector<1x1x8x128xf32> to vector<8x128xf32>
    %762 = vector.broadcast %cst_1 : f32 to vector<128x128xf32>
    %763 = arith.select %748, %63, %762 : vector<128x128xi1>, vector<128x128xf32>
    %764 = vector.shape_cast %763 : vector<128x128xf32> to vector<16x8x128xf32>
    %cst_588 = arith.constant dense<0.000000e+00> : vector<8x128xf32>
    %765 = vector.multi_reduction <add>, %764, %cst_588 [0] : vector<16x8x128xf32> to vector<8x128xf32>
    %766 = arith.addf %761, %765 : vector<8x128xf32>
    %c0_589 = arith.constant 0 : index
    %c27_590 = arith.constant 27 : index
    %c0_591 = arith.constant 0 : index
    %c0_592 = arith.constant 0 : index
    %767 = vector.load %arg11[%c0_589, %c27_590, %c0_591, %c0_592] : memref<1x32x8x128xf32, #tpu.memory_space<vmem>>, vector<1x1x8x128xf32>
    %768 = vector.shape_cast %767 : vector<1x1x8x128xf32> to vector<8x128xf32>
    %769 = vector.shape_cast %766 : vector<8x128xf32> to vector<1x1x8x128xf32>
    tpu.vector_store %arg11[%c0_589, %c27_590, %c0_591, %c0_592], %769 {strides = array<i32>} : memref<1x32x8x128xf32, #tpu.memory_space<vmem>>, vector<1x1x8x128xf32>,
    %cst_593 = arith.constant 31.622776 : f32
    %770 = vector.broadcast %cst_593 : f32 to vector<128x128xf32>
    %771 = arith.cmpf oge, %63, %770 : vector<128x128xf32>
    %c0_594 = arith.constant 0 : index
    %c28 = arith.constant 28 : index
    %c0_595 = arith.constant 0 : index
    %c0_596 = arith.constant 0 : index
    %772 = vector.load %arg10[%c0_594, %c28, %c0_595, %c0_596] : memref<1x32x8x128xf32, #tpu.memory_space<vmem>>, vector<1x1x8x128xf32>
    %773 = vector.shape_cast %772 : vector<1x1x8x128xf32> to vector<8x128xf32>
    %774 = vector.broadcast %cst : f32 to vector<128x128xf32>
    %775 = vector.broadcast %cst_1 : f32 to vector<128x128xf32>
    %776 = arith.select %771, %774, %775 : vector<128x128xi1>, vector<128x128xf32>
    %777 = vector.shape_cast %776 : vector<128x128xf32> to vector<16x8x128xf32>
    %cst_597 = arith.constant dense<0.000000e+00> : vector<8x128xf32>
    %778 = vector.multi_reduction <add>, %777, %cst_597 [0] : vector<16x8x128xf32> to vector<8x128xf32>
    %779 = arith.addf %773, %778 : vector<8x128xf32>
    %c0_598 = arith.constant 0 : index
    %c28_599 = arith.constant 28 : index
    %c0_600 = arith.constant 0 : index
    %c0_601 = arith.constant 0 : index
    %780 = vector.load %arg10[%c0_598, %c28_599, %c0_600, %c0_601] : memref<1x32x8x128xf32, #tpu.memory_space<vmem>>, vector<1x1x8x128xf32>
    %781 = vector.shape_cast %780 : vector<1x1x8x128xf32> to vector<8x128xf32>
    %782 = vector.shape_cast %779 : vector<8x128xf32> to vector<1x1x8x128xf32>
    tpu.vector_store %arg10[%c0_598, %c28_599, %c0_600, %c0_601], %782 {strides = array<i32>} : memref<1x32x8x128xf32, #tpu.memory_space<vmem>>, vector<1x1x8x128xf32>,
    %c0_602 = arith.constant 0 : index
    %c28_603 = arith.constant 28 : index
    %c0_604 = arith.constant 0 : index
    %c0_605 = arith.constant 0 : index
    %783 = vector.load %arg11[%c0_602, %c28_603, %c0_604, %c0_605] : memref<1x32x8x128xf32, #tpu.memory_space<vmem>>, vector<1x1x8x128xf32>
    %784 = vector.shape_cast %783 : vector<1x1x8x128xf32> to vector<8x128xf32>
    %785 = vector.broadcast %cst_1 : f32 to vector<128x128xf32>
    %786 = arith.select %771, %63, %785 : vector<128x128xi1>, vector<128x128xf32>
    %787 = vector.shape_cast %786 : vector<128x128xf32> to vector<16x8x128xf32>
    %cst_606 = arith.constant dense<0.000000e+00> : vector<8x128xf32>
    %788 = vector.multi_reduction <add>, %787, %cst_606 [0] : vector<16x8x128xf32> to vector<8x128xf32>
    %789 = arith.addf %784, %788 : vector<8x128xf32>
    %c0_607 = arith.constant 0 : index
    %c28_608 = arith.constant 28 : index
    %c0_609 = arith.constant 0 : index
    %c0_610 = arith.constant 0 : index
    %790 = vector.load %arg11[%c0_607, %c28_608, %c0_609, %c0_610] : memref<1x32x8x128xf32, #tpu.memory_space<vmem>>, vector<1x1x8x128xf32>
    %791 = vector.shape_cast %790 : vector<1x1x8x128xf32> to vector<8x128xf32>
    %792 = vector.shape_cast %789 : vector<8x128xf32> to vector<1x1x8x128xf32>
    tpu.vector_store %arg11[%c0_607, %c28_608, %c0_609, %c0_610], %792 {strides = array<i32>} : memref<1x32x8x128xf32, #tpu.memory_space<vmem>>, vector<1x1x8x128xf32>,
    %cst_611 = arith.constant 46.4158897 : f32
    %793 = vector.broadcast %cst_611 : f32 to vector<128x128xf32>
    %794 = arith.cmpf oge, %63, %793 : vector<128x128xf32>
    %c0_612 = arith.constant 0 : index
    %c29 = arith.constant 29 : index
    %c0_613 = arith.constant 0 : index
    %c0_614 = arith.constant 0 : index
    %795 = vector.load %arg10[%c0_612, %c29, %c0_613, %c0_614] : memref<1x32x8x128xf32, #tpu.memory_space<vmem>>, vector<1x1x8x128xf32>
    %796 = vector.shape_cast %795 : vector<1x1x8x128xf32> to vector<8x128xf32>
    %797 = vector.broadcast %cst : f32 to vector<128x128xf32>
    %798 = vector.broadcast %cst_1 : f32 to vector<128x128xf32>
    %799 = arith.select %794, %797, %798 : vector<128x128xi1>, vector<128x128xf32>
    %800 = vector.shape_cast %799 : vector<128x128xf32> to vector<16x8x128xf32>
    %cst_615 = arith.constant dense<0.000000e+00> : vector<8x128xf32>
    %801 = vector.multi_reduction <add>, %800, %cst_615 [0] : vector<16x8x128xf32> to vector<8x128xf32>
    %802 = arith.addf %796, %801 : vector<8x128xf32>
    %c0_616 = arith.constant 0 : index
    %c29_617 = arith.constant 29 : index
    %c0_618 = arith.constant 0 : index
    %c0_619 = arith.constant 0 : index
    %803 = vector.load %arg10[%c0_616, %c29_617, %c0_618, %c0_619] : memref<1x32x8x128xf32, #tpu.memory_space<vmem>>, vector<1x1x8x128xf32>
    %804 = vector.shape_cast %803 : vector<1x1x8x128xf32> to vector<8x128xf32>
    %805 = vector.shape_cast %802 : vector<8x128xf32> to vector<1x1x8x128xf32>
    tpu.vector_store %arg10[%c0_616, %c29_617, %c0_618, %c0_619], %805 {strides = array<i32>} : memref<1x32x8x128xf32, #tpu.memory_space<vmem>>, vector<1x1x8x128xf32>,
    %c0_620 = arith.constant 0 : index
    %c29_621 = arith.constant 29 : index
    %c0_622 = arith.constant 0 : index
    %c0_623 = arith.constant 0 : index
    %806 = vector.load %arg11[%c0_620, %c29_621, %c0_622, %c0_623] : memref<1x32x8x128xf32, #tpu.memory_space<vmem>>, vector<1x1x8x128xf32>
    %807 = vector.shape_cast %806 : vector<1x1x8x128xf32> to vector<8x128xf32>
    %808 = vector.broadcast %cst_1 : f32 to vector<128x128xf32>
    %809 = arith.select %794, %63, %808 : vector<128x128xi1>, vector<128x128xf32>
    %810 = vector.shape_cast %809 : vector<128x128xf32> to vector<16x8x128xf32>
    %cst_624 = arith.constant dense<0.000000e+00> : vector<8x128xf32>
    %811 = vector.multi_reduction <add>, %810, %cst_624 [0] : vector<16x8x128xf32> to vector<8x128xf32>
    %812 = arith.addf %807, %811 : vector<8x128xf32>
    %c0_625 = arith.constant 0 : index
    %c29_626 = arith.constant 29 : index
    %c0_627 = arith.constant 0 : index
    %c0_628 = arith.constant 0 : index
    %813 = vector.load %arg11[%c0_625, %c29_626, %c0_627, %c0_628] : memref<1x32x8x128xf32, #tpu.memory_space<vmem>>, vector<1x1x8x128xf32>
    %814 = vector.shape_cast %813 : vector<1x1x8x128xf32> to vector<8x128xf32>
    %815 = vector.shape_cast %812 : vector<8x128xf32> to vector<1x1x8x128xf32>
    tpu.vector_store %arg11[%c0_625, %c29_626, %c0_627, %c0_628], %815 {strides = array<i32>} : memref<1x32x8x128xf32, #tpu.memory_space<vmem>>, vector<1x1x8x128xf32>,
    %cst_629 = arith.constant 6.812920e+01 : f32
    %816 = vector.broadcast %cst_629 : f32 to vector<128x128xf32>
    %817 = arith.cmpf oge, %63, %816 : vector<128x128xf32>
    %c0_630 = arith.constant 0 : index
    %c30 = arith.constant 30 : index
    %c0_631 = arith.constant 0 : index
    %c0_632 = arith.constant 0 : index
    %818 = vector.load %arg10[%c0_630, %c30, %c0_631, %c0_632] : memref<1x32x8x128xf32, #tpu.memory_space<vmem>>, vector<1x1x8x128xf32>
    %819 = vector.shape_cast %818 : vector<1x1x8x128xf32> to vector<8x128xf32>
    %820 = vector.broadcast %cst : f32 to vector<128x128xf32>
    %821 = vector.broadcast %cst_1 : f32 to vector<128x128xf32>
    %822 = arith.select %817, %820, %821 : vector<128x128xi1>, vector<128x128xf32>
    %823 = vector.shape_cast %822 : vector<128x128xf32> to vector<16x8x128xf32>
    %cst_633 = arith.constant dense<0.000000e+00> : vector<8x128xf32>
    %824 = vector.multi_reduction <add>, %823, %cst_633 [0] : vector<16x8x128xf32> to vector<8x128xf32>
    %825 = arith.addf %819, %824 : vector<8x128xf32>
    %c0_634 = arith.constant 0 : index
    %c30_635 = arith.constant 30 : index
    %c0_636 = arith.constant 0 : index
    %c0_637 = arith.constant 0 : index
    %826 = vector.load %arg10[%c0_634, %c30_635, %c0_636, %c0_637] : memref<1x32x8x128xf32, #tpu.memory_space<vmem>>, vector<1x1x8x128xf32>
    %827 = vector.shape_cast %826 : vector<1x1x8x128xf32> to vector<8x128xf32>
    %828 = vector.shape_cast %825 : vector<8x128xf32> to vector<1x1x8x128xf32>
    tpu.vector_store %arg10[%c0_634, %c30_635, %c0_636, %c0_637], %828 {strides = array<i32>} : memref<1x32x8x128xf32, #tpu.memory_space<vmem>>, vector<1x1x8x128xf32>,
    %c0_638 = arith.constant 0 : index
    %c30_639 = arith.constant 30 : index
    %c0_640 = arith.constant 0 : index
    %c0_641 = arith.constant 0 : index
    %829 = vector.load %arg11[%c0_638, %c30_639, %c0_640, %c0_641] : memref<1x32x8x128xf32, #tpu.memory_space<vmem>>, vector<1x1x8x128xf32>
    %830 = vector.shape_cast %829 : vector<1x1x8x128xf32> to vector<8x128xf32>
    %831 = vector.broadcast %cst_1 : f32 to vector<128x128xf32>
    %832 = arith.select %817, %63, %831 : vector<128x128xi1>, vector<128x128xf32>
    %833 = vector.shape_cast %832 : vector<128x128xf32> to vector<16x8x128xf32>
    %cst_642 = arith.constant dense<0.000000e+00> : vector<8x128xf32>
    %834 = vector.multi_reduction <add>, %833, %cst_642 [0] : vector<16x8x128xf32> to vector<8x128xf32>
    %835 = arith.addf %830, %834 : vector<8x128xf32>
    %c0_643 = arith.constant 0 : index
    %c30_644 = arith.constant 30 : index
    %c0_645 = arith.constant 0 : index
    %c0_646 = arith.constant 0 : index
    %836 = vector.load %arg11[%c0_643, %c30_644, %c0_645, %c0_646] : memref<1x32x8x128xf32, #tpu.memory_space<vmem>>, vector<1x1x8x128xf32>
    %837 = vector.shape_cast %836 : vector<1x1x8x128xf32> to vector<8x128xf32>
    %838 = vector.shape_cast %835 : vector<8x128xf32> to vector<1x1x8x128xf32>
    tpu.vector_store %arg11[%c0_643, %c30_644, %c0_645, %c0_646], %838 {strides = array<i32>} : memref<1x32x8x128xf32, #tpu.memory_space<vmem>>, vector<1x1x8x128xf32>,
    %cst_647 = arith.constant 1.000000e+02 : f32
    %839 = vector.broadcast %cst_647 : f32 to vector<128x128xf32>
    %840 = arith.cmpf oge, %63, %839 : vector<128x128xf32>
    %c0_648 = arith.constant 0 : index
    %c31 = arith.constant 31 : index
    %c0_649 = arith.constant 0 : index
    %c0_650 = arith.constant 0 : index
    %841 = vector.load %arg10[%c0_648, %c31, %c0_649, %c0_650] : memref<1x32x8x128xf32, #tpu.memory_space<vmem>>, vector<1x1x8x128xf32>
    %842 = vector.shape_cast %841 : vector<1x1x8x128xf32> to vector<8x128xf32>
    %843 = vector.broadcast %cst : f32 to vector<128x128xf32>
    %844 = vector.broadcast %cst_1 : f32 to vector<128x128xf32>
    %845 = arith.select %840, %843, %844 : vector<128x128xi1>, vector<128x128xf32>
    %846 = vector.shape_cast %845 : vector<128x128xf32> to vector<16x8x128xf32>
    %cst_651 = arith.constant dense<0.000000e+00> : vector<8x128xf32>
    %847 = vector.multi_reduction <add>, %846, %cst_651 [0] : vector<16x8x128xf32> to vector<8x128xf32>
    %848 = arith.addf %842, %847 : vector<8x128xf32>
    %c0_652 = arith.constant 0 : index
    %c31_653 = arith.constant 31 : index
    %c0_654 = arith.constant 0 : index
    %c0_655 = arith.constant 0 : index
    %849 = vector.load %arg10[%c0_652, %c31_653, %c0_654, %c0_655] : memref<1x32x8x128xf32, #tpu.memory_space<vmem>>, vector<1x1x8x128xf32>
    %850 = vector.shape_cast %849 : vector<1x1x8x128xf32> to vector<8x128xf32>
    %851 = vector.shape_cast %848 : vector<8x128xf32> to vector<1x1x8x128xf32>
    tpu.vector_store %arg10[%c0_652, %c31_653, %c0_654, %c0_655], %851 {strides = array<i32>} : memref<1x32x8x128xf32, #tpu.memory_space<vmem>>, vector<1x1x8x128xf32>,
    %c0_656 = arith.constant 0 : index
    %c31_657 = arith.constant 31 : index
    %c0_658 = arith.constant 0 : index
    %c0_659 = arith.constant 0 : index
    %852 = vector.load %arg11[%c0_656, %c31_657, %c0_658, %c0_659] : memref<1x32x8x128xf32, #tpu.memory_space<vmem>>, vector<1x1x8x128xf32>
    %853 = vector.shape_cast %852 : vector<1x1x8x128xf32> to vector<8x128xf32>
    %854 = vector.broadcast %cst_1 : f32 to vector<128x128xf32>
    %855 = arith.select %840, %63, %854 : vector<128x128xi1>, vector<128x128xf32>
    %856 = vector.shape_cast %855 : vector<128x128xf32> to vector<16x8x128xf32>
    %cst_660 = arith.constant dense<0.000000e+00> : vector<8x128xf32>
    %857 = vector.multi_reduction <add>, %856, %cst_660 [0] : vector<16x8x128xf32> to vector<8x128xf32>
    %858 = arith.addf %853, %857 : vector<8x128xf32>
    %c0_661 = arith.constant 0 : index
    %c31_662 = arith.constant 31 : index
    %c0_663 = arith.constant 0 : index
    %c0_664 = arith.constant 0 : index
    %859 = vector.load %arg11[%c0_661, %c31_662, %c0_663, %c0_664] : memref<1x32x8x128xf32, #tpu.memory_space<vmem>>, vector<1x1x8x128xf32>
    %860 = vector.shape_cast %859 : vector<1x1x8x128xf32> to vector<8x128xf32>
    %861 = vector.shape_cast %858 : vector<8x128xf32> to vector<1x1x8x128xf32>
    tpu.vector_store %arg11[%c0_661, %c31_662, %c0_663, %c0_664], %861 {strides = array<i32>} : memref<1x32x8x128xf32, #tpu.memory_space<vmem>>, vector<1x1x8x128xf32>,
    %c1_i32_665 = arith.constant 1 : i32
    return
  }
  func.func @transform_0(%arg0: i32, %arg1: i32) -> (i32, i32) {
    %c1_i32 = arith.constant 1 : i32
    %0 = arith.muli %arg0, %c1_i32 : i32
    %1 = arith.addi %0, %arg1 : i32
    %c0_i32 = arith.constant 0 : i32
    %2 = arith.minsi %1, %c0_i32 : i32
    %c0_i32_0 = arith.constant 0 : i32
    %c0_i32_1 = arith.constant 0 : i32
    return %2, %c0_i32_0 : i32, i32
  }
  func.func @transform_1(%arg0: i32, %arg1: i32) -> (i32, i32) {
    %c1_i32 = arith.constant 1 : i32
    %0 = arith.muli %arg0, %c1_i32 : i32
    %1 = arith.addi %0, %arg1 : i32
    %c0_i32 = arith.constant 0 : i32
    %2 = arith.minsi %1, %c0_i32 : i32
    %c0_i32_0 = arith.constant 0 : i32
    %c0_i32_1 = arith.constant 0 : i32
    return %2, %c0_i32_0 : i32, i32
  }
  func.func @transform_2(%arg0: i32, %arg1: i32) -> (i32, i32) {
    %c1_i32 = arith.constant 1 : i32
    %0 = arith.muli %arg0, %c1_i32 : i32
    %1 = arith.addi %0, %arg1 : i32
    %c0_i32 = arith.constant 0 : i32
    %2 = arith.minsi %1, %c0_i32 : i32
    %c0_i32_0 = arith.constant 0 : i32
    %c0_i32_1 = arith.constant 0 : i32
    return %2, %c0_i32_0 : i32, i32
  }
  func.func @transform_3(%arg0: i32, %arg1: i32) -> (i32, i32) {
    %c1_i32 = arith.constant 1 : i32
    %0 = arith.muli %arg0, %c1_i32 : i32
    %1 = arith.addi %0, %arg1 : i32
    %c0_i32 = arith.constant 0 : i32
    %2 = arith.minsi %1, %c0_i32 : i32
    %c0_i32_0 = arith.constant 0 : i32
    %c0_i32_1 = arith.constant 0 : i32
    return %2, %c0_i32_0 : i32, i32
  }
  func.func @transform_4(%arg0: i32, %arg1: i32) -> (i32, i32) {
    %c1_i32 = arith.constant 1 : i32
    %0 = arith.muli %arg0, %c1_i32 : i32
    %1 = arith.addi %0, %arg1 : i32
    %c0_i32 = arith.constant 0 : i32
    %2 = arith.minsi %1, %c0_i32 : i32
    %c0_i32_0 = arith.constant 0 : i32
    %c0_i32_1 = arith.constant 0 : i32
    return %2, %c0_i32_0 : i32, i32
  }
  func.func @transform_5(%arg0: i32, %arg1: i32) -> (i32, i32) {
    %c1_i32 = arith.constant 1 : i32
    %0 = arith.muli %arg0, %c1_i32 : i32
    %1 = arith.addi %0, %arg1 : i32
    %c0_i32 = arith.constant 0 : i32
    %2 = arith.minsi %1, %c0_i32 : i32
    %c0_i32_0 = arith.constant 0 : i32
    %c0_i32_1 = arith.constant 0 : i32
    return %2, %c0_i32_0 : i32, i32
  }
  func.func @transform_6(%arg0: i32, %arg1: i32) -> (i32, i32) {
    %c1_i32 = arith.constant 1 : i32
    %0 = arith.muli %arg0, %c1_i32 : i32
    %1 = arith.addi %0, %arg1 : i32
    %c0_i32 = arith.constant 0 : i32
    %2 = arith.minsi %1, %c0_i32 : i32
    %c0_i32_0 = arith.constant 0 : i32
    %c0_i32_1 = arith.constant 0 : i32
    return %2, %c0_i32_0 : i32, i32
  }
  func.func @transform_7(%arg0: i32, %arg1: i32) -> (i32, i32, i32, i32) {
    %c0_i32 = arith.constant 0 : i32
    %c0_i32_0 = arith.constant 0 : i32
    %c0_i32_1 = arith.constant 0 : i32
    %c0_i32_2 = arith.constant 0 : i32
    return %arg0, %c0_i32, %c0_i32_0, %c0_i32_1 : i32, i32, i32, i32
  }
  func.func @transform_8(%arg0: i32, %arg1: i32) -> (i32, i32, i32, i32) {
    %c0_i32 = arith.constant 0 : i32
    %c0_i32_0 = arith.constant 0 : i32
    %c0_i32_1 = arith.constant 0 : i32
    %c0_i32_2 = arith.constant 0 : i32
    return %arg0, %c0_i32, %c0_i32_0, %c0_i32_1 : i32, i32, i32, i32
  }
  func.func @transform_9(%arg0: i32, %arg1: i32) -> (i32, i32, i32, i32) {
    %c0_i32 = arith.constant 0 : i32
    %c0_i32_0 = arith.constant 0 : i32
    %c0_i32_1 = arith.constant 0 : i32
    %c0_i32_2 = arith.constant 0 : i32
    return %arg0, %c0_i32, %c0_i32_0, %c0_i32_1 : i32, i32, i32, i32
  }
}

</mosaic_0001>

<bundles_post_ra>
// kernel: tpu_custom_call.1
= control target key start
LH: loop header
LB: loop body
LE: loop exit
PB: predicated region body
PF: predicated region fallthrough
CT: control target
= control target key end

     0   :  { %15 = vsyncpa [#allocation3], 0  ;;  %s4797_s0 = inlined_call_operand.hbm [shape: f32[16,128], index: 0, kind: input, shape index: {}]   ;;  %s4798_s1 = inlined_call_operand.hbm [shape: f32[16,128], index: 1, kind: input, shape index: {}]   ;;  %s4799_s2 = inlined_call_operand.hbm [shape: f32[16,128], index: 2, kind: input, shape index: {}]   ;;  %s4800_s3 = inlined_call_operand.hbm [shape: f32[16,128], index: 3, kind: input, shape index: {}]   ;;  %s4801_s4 = inlined_call_operand.hbm [shape: f32[16,128], index: 4, kind: input, shape index: {}]   ;;  %s4802_s5 = inlined_call_operand.vmem [shape: f32[16,128], index: 5, kind: input, shape index: {}]   ;;  %s4803_s6 = inlined_call_operand.hbm [shape: f32[16,128], index: 6, kind: input, shape index: {}]   ;;  %s4804_s7 = inlined_call_operand.hbm [shape: f32[1,8,8,128], index: 7, kind: output, shape index: {0}]   ;;  %s4805_s8 = inlined_call_operand.hbm [shape: f32[1,32,8,128], index: 8, kind: output, shape index: {1}]   ;;  %s4806_s9 = inlined_call_operand.hbm [shape: f32[1,32,8,128], index: 9, kind: output, shape index: {2}]  }
   0x1   :  { %16 = vsyncpa [#allocation6], 0 }
   0x2   :  { %17 = vsyncpa [#allocation9], 0 }
   0x3   :  { %18 = vsyncpa [#allocation12], 0 }
   0x4   :  { %19 = vsyncpa [#allocation4], 0 }
   0x5   :  { %20 = vsyncpa [#allocation15], 0 }
   0x6   :  { %31 = vsyncadd [#allocation3], 1792  ;;  %s4121_s30 = smov [#allocation2]   ;;  %s3911_s13 = scalar_lea.hbm %s4797_s0, 256 }
   0x7   :  { %s36_s10 = sshll.u32 %s4121_s30, 4  ;;  %p3912_p0 = scmp.ne.s32.totalorder %s4797_s0, %s3911_s13  ;;  %s37_s10 = int_to_ptr.vmem [resolvable:$true] %s36_s10 }
   0x8   :  { %p3915_p1 = scmp.lt.u32.totalorder %s3911_s13, %s4797_s0 }
   0xa   :  { %p3917_p2 = pnand %p3915_p1, %p3912_p0 }
   0xc   :  { %3920 = shalt.err (!%p3917_p2)
}
   0xd   :  { %s3921_s18 = scalar_lea.vmem %s37_s10, 256  ;;  %s3925_s19 = scalar_lea.vmem %s37_s10, 2048 }
   0xe   :  { %p3922_p3 = scmp.ne.s32.totalorder %s37_s10, %s3921_s18  ;;  %p3926_p4 = scmp.lt.s32.totalorder %s37_s10, %s37_s10 }
   0xf   :  { %p3927_p5 = scmp.lt.s32.totalorder %s3925_s19, %s3921_s18 }
  0x11   :  { %p3928_p6 = por %p3927_p5, %p3926_p4 }
  0x13   :  { %p3929_p7 = pnand %p3928_p6, %p3922_p3 }
  0x15   :  { %3932 = shalt.err (!%p3929_p7)
}
  0x16   :  { %s4122_s20 = smov 128   ;;  %s4123_s21 = smov 8  }
  0x17   :  { %42 = dma.hbm_to_vmem [thread:$0]  %s4797_s0, 256, %s37_s10, [#allocation3], %s4122_s20, %s4122_s20, %s4123_s21  }
  0x18   :  { %53 = vsyncadd [#allocation6], 1792  ;;  %s4124_s24 = smov [#allocation5]   ;;  %s3933_s28 = scalar_lea.hbm %s4798_s1, 256 }
  0x19   :  { %s58_s25 = sshll.u32 %s4124_s24, 4  ;;  %p3934_p8 = scmp.ne.s32.totalorder %s4798_s1, %s3933_s28  ;;  %s59_s25 = int_to_ptr.vmem [resolvable:$true] %s58_s25 }
  0x1a   :  { %p3937_p9 = scmp.lt.u32.totalorder %s3933_s28, %s4798_s1 }
  0x1c   :  { %p3939_p10 = pnand %p3937_p9, %p3934_p8 }
  0x1e   :  { %3942 = shalt.err (!%p3939_p10)
}
  0x1f   :  { %s3943_s13 = scalar_lea.vmem %s59_s25, 256  ;;  %s3947_s0 = scalar_lea.vmem %s59_s25, 2048 }
  0x20   :  { %p3944_p11 = scmp.ne.s32.totalorder %s59_s25, %s3943_s13  ;;  %p3948_p12 = scmp.lt.s32.totalorder %s59_s25, %s59_s25 }
  0x21   :  { %p3949_p13 = scmp.lt.s32.totalorder %s3947_s0, %s3943_s13 }
  0x23   :  { %p3950_p0 = por %p3949_p13, %p3948_p12 }
  0x25   :  { %p3951_p1 = pnand %p3950_p0, %p3944_p11 }
  0x27   :  { %3954 = shalt.err (!%p3951_p1)
}
  0x28   :  { %64 = dma.hbm_to_vmem [thread:$0]  %s4798_s1, 256, %s59_s25, [#allocation6], %s4122_s20, %s4122_s20, %s4123_s21  }
  0x29   :  { %75 = vsyncadd [#allocation6], 1792  ;;  %s4125_s15 = smov [#allocation7]   ;;  %s3955_s19 = scalar_lea.hbm %s4799_s2, 256 }
  0x2a   :  { %s80_s16 = sshll.u32 %s4125_s15, 4  ;;  %p3956_p2 = scmp.ne.s32.totalorder %s4799_s2, %s3955_s19  ;;  %s81_s16 = int_to_ptr.vmem [resolvable:$true] %s80_s16 }
  0x2b   :  { %p3959_p3 = scmp.lt.u32.totalorder %s3955_s19, %s4799_s2 }
  0x2d   :  { %p3961_p4 = pnand %p3959_p3, %p3956_p2 }
  0x2f   :  { %3964 = shalt.err (!%p3961_p4)
}
  0x30   :  { %s3965_s27 = scalar_lea.vmem %s81_s16, 256  ;;  %s3969_s1 = scalar_lea.vmem %s81_s16, 2048 }
  0x31   :  { %p3966_p5 = scmp.ne.s32.totalorder %s81_s16, %s3965_s27  ;;  %p3970_p6 = scmp.lt.s32.totalorder %s81_s16, %s81_s16 }
  0x32   :  { %p3971_p7 = scmp.lt.s32.totalorder %s3969_s1, %s3965_s27 }
  0x34   :  { %p3972_p8 = por %p3971_p7, %p3970_p6 }
  0x36   :  { %p3973_p9 = pnand %p3972_p8, %p3966_p5 }
  0x38   :  { %3976 = shalt.err (!%p3973_p9)
}
  0x39   :  { %86 = dma.hbm_to_vmem [thread:$0]  %s4799_s2, 256, %s81_s16, [#allocation6], %s4122_s20, %s4122_s20, %s4123_s21  }
  0x3a   :  { %97 = vsyncadd [#allocation9], 1792  ;;  %s4126_s29 = smov [#allocation8]   ;;  %s3977_s13 = scalar_lea.hbm %s4800_s3, 256 }
  0x3b   :  { %s102_s30 = sshll.u32 %s4126_s29, 4  ;;  %p3978_p10 = scmp.ne.s32.totalorder %s4800_s3, %s3977_s13  ;;  %s103_s30 = int_to_ptr.vmem [resolvable:$true] %s102_s30 }
  0x3c   :  { %p3981_p11 = scmp.lt.u32.totalorder %s3977_s13, %s4800_s3 }
  0x3e   :  { %p3983_p12 = pnand %p3981_p11, %p3978_p10 }
  0x40   :  { %3986 = shalt.err (!%p3983_p12)
}
  0x41   :  { %s3987_s17 = scalar_lea.vmem %s103_s30, 256  ;;  %s3991_s2 = scalar_lea.vmem %s103_s30, 2048 }
  0x42   :  { %p3988_p13 = scmp.ne.s32.totalorder %s103_s30, %s3987_s17  ;;  %p3992_p0 = scmp.lt.s32.totalorder %s103_s30, %s103_s30 }
  0x43   :  { %p3993_p1 = scmp.lt.s32.totalorder %s3991_s2, %s3987_s17 }
  0x45   :  { %p3994_p2 = por %p3993_p1, %p3992_p0 }
  0x47   :  { %p3995_p3 = pnand %p3994_p2, %p3988_p13 }
  0x49   :  { %3998 = shalt.err (!%p3995_p3)
}
  0x4a   :  { %108 = dma.hbm_to_vmem [thread:$0]  %s4800_s3, 256, %s103_s30, [#allocation9], %s4122_s20, %s4122_s20, %s4123_s21  }
  0x4b   :  { %119 = vsyncadd [#allocation9], 1792  ;;  %s4127_s19 = smov [#allocation10]   ;;  %s3999_s26 = scalar_lea.hbm %s4801_s4, 256 }
  0x4c   :  { %s124_s22 = sshll.u32 %s4127_s19, 4  ;;  %p4000_p4 = scmp.ne.s32.totalorder %s4801_s4, %s3999_s26  ;;  %s125_s22 = int_to_ptr.vmem [resolvable:$true] %s124_s22 }
  0x4d   :  { %p4003_p5 = scmp.lt.u32.totalorder %s3999_s26, %s4801_s4 }
  0x4f   :  { %p4005_p6 = pnand %p4003_p5, %p4000_p4 }
  0x51   :  { %4008 = shalt.err (!%p4005_p6)
}
  0x52   :  { %s4009_s29 = scalar_lea.vmem %s125_s22, 256  ;;  %s4013_s3 = scalar_lea.vmem %s125_s22, 2048 }
  0x53   :  { %p4010_p7 = scmp.ne.s32.totalorder %s125_s22, %s4009_s29  ;;  %p4014_p8 = scmp.lt.s32.totalorder %s125_s22, %s125_s22 }
  0x54   :  { %p4015_p9 = scmp.lt.s32.totalorder %s4013_s3, %s4009_s29 }
  0x56   :  { %p4016_p10 = por %p4015_p9, %p4014_p8 }
  0x58   :  { %p4017_p11 = pnand %p4016_p10, %p4010_p7 }
  0x5a   :  { %4020 = shalt.err (!%p4017_p11)
}
  0x5b   :  { %130 = dma.hbm_to_vmem [thread:$0]  %s4801_s4, 256, %s125_s22, [#allocation9], %s4122_s20, %s4122_s20, %s4123_s21  }
  0x5c   :  { %159 = vsyncadd [#allocation12], 1792  ;;  %s4128_s12 = smov [#allocation11]   ;;  %s4021_s14 = scalar_lea.hbm %s4803_s6, 256 }
  0x5d   :  { %s164_s13 = sshll.u32 %s4128_s12, 4  ;;  %p4022_p12 = scmp.ne.s32.totalorder %s4803_s6, %s4021_s14  ;;  %s165_s13 = int_to_ptr.vmem [resolvable:$true] %s164_s13 }
  0x5e   :  { %p4025_p13 = scmp.lt.u32.totalorder %s4021_s14, %s4803_s6 }
  0x60   :  { %p4027_p0 = pnand %p4025_p13, %p4022_p12 }
  0x62   :  { %4030 = shalt.err (!%p4027_p0)
}
  0x63   :  { %s4031_s18 = scalar_lea.vmem %s165_s13, 256  ;;  %s4035_s4 = scalar_lea.vmem %s165_s13, 2048 }
  0x64   :  { %p4032_p1 = scmp.ne.s32.totalorder %s165_s13, %s4031_s18  ;;  %p4036_p2 = scmp.lt.s32.totalorder %s165_s13, %s165_s13 }
  0x65   :  { %p4037_p3 = scmp.lt.s32.totalorder %s4035_s4, %s4031_s18 }
  0x67   :  { %p4038_p4 = por %p4037_p3, %p4036_p2 }
  0x69   :  { %p4039_p5 = pnand %p4038_p4, %p4032_p1 }
  0x6b   :  { %4042 = shalt.err (!%p4039_p5)
}
  0x6c   :  { %170 = dma.hbm_to_vmem [thread:$0]  %s4803_s6, 256, %s165_s13, [#allocation12], %s4122_s20, %s4122_s20, %s4123_s21  }
  0x6d   :  { %4109 = dma.done.wait [#allocation3], 2048  }
  0x6e   :  { %4110 = vsyncadd [#allocation3], 4294965248 }
  0x6f   :  { %4111 = dma.done.wait [#allocation6], 4096  }
  0x70   :  { %4112 = vsyncadd [#allocation6], 4294963200 }
  0x71   :  { %4113 = dma.done.wait [#allocation9], 4096  }
  0x72   :  { %4114 = vsyncadd [#allocation9], 4294963200 }
  0x73   :  { %4115 = dma.done.wait [#allocation12], 2048  }
  0x74   :  { %4116 = vsyncadd [#allocation12], 4294965248  ;;  %v4129_v0 = vmov 0.0   ;;  %v346_v1 = vld [vmem:[#allocation2] sm:$0xff]  ;;  %v347_v2 = vld [vmem:[#allocation2 + $0x8] sm:$0xff]  ;;  %s4131_s1 = smov [#allocation14]  }
  0x75   :  { %262 = vst [vmem:[#allocation13 + $0x38] sm:$0xff] %v4129_v0  ;;  %v394_v3 = vld [vmem:[#allocation8] sm:$0xff]  ;;  %v395_v4 = vld [vmem:[#allocation8 + $0x8] sm:$0xff]  ;;  %3903 = vlog2.f32 %v346_v1  ;;  %v652_v7 = vsub.f32 1.0, %v346_v1  ;;  %v653_v8 = vsub.f32 1.0, %v347_v2  ;;  %s3839_s25 = sshll.u32 %s4131_s1, 4  ;;  %s4569_s25 = int_to_ptr.vmem [resolvable:$true] %s3839_s25 }
  0x76   :  { %v410_v5 = vld [vmem:[#allocation10] sm:$0xff]  ;;  %v411_v6 = vld [vmem:[#allocation10 + $0x8] sm:$0xff]  ;;  %v732_v9 = vsub.f32 1.0, %v394_v3  ;;  %3905 = vlog2.f32 %v347_v2  ;;  %v733_v10 = vsub.f32 1.0, %v395_v4 }
  0x77   :  { %v796_v11 = vmul.f32 %v410_v5, %v394_v3  ;;  %v797_v12 = vmul.f32 %v411_v6, %v395_v4  ;;  %v362_v13 = vld [vmem:[#allocation5] sm:$0xff]  ;;  %v363_v14 = vld [vmem:[#allocation5 + $0x8] sm:$0xff]  ;;  %3907 = vlog2.f32 %v652_v7 }
  0x78   :  { %v378_v15 = vld [vmem:[#allocation7] sm:$0xff]  ;;  %v812_v16 = vmul.f32 %v732_v9, %v410_v5  ;;  %v953_v17 = vmul.f32 %v410_v5, %v362_v13  ;;  %v954_v18 = vmul.f32 %v411_v6, %v363_v14  ;;  %v379_v19 = vld [vmem:[#allocation7 + $0x8] sm:$0xff]  ;;  %3909 = vlog2.f32 %v653_v8 }
  0x79   :  { %v426_v20 = vld [vmem:[%s4802_s5] sm:$0xff]  ;;  %v427_v21 = vld [vmem:[%s4802_s5 + $0x8] sm:$0xff]  ;;  %v813_v22 = vmul.f32 %v733_v10, %v411_v6  ;;  %v845_v23 = vadd.f32 %v797_v12, %v796_v11  ;;  %v918_v24 = vmul.f32 %v796_v11, %v362_v13  ;;  %v919_v25 = vmul.f32 %v797_v12, %v363_v14  ;;  %s4130_s5 = smov [#allocation13]  }
  0x7a   :  { %v969_v26 = vadd.f32 %v954_v18, %v953_v17  ;;  %v442_v27 = vld [vmem:[#allocation11] sm:$0xff]  ;;  %v443_v28 = vld [vmem:[#allocation11 + $0x8] sm:$0xff]  ;;  %v988_v29 = vsub.f32 %v378_v15, %v426_v20  ;;  %v989_v30 = vsub.f32 %v379_v19, %v427_v21  ;;  %s3827_s27 = sshll.u32 %s4130_s5, 4  ;;  %s4552_s27 = int_to_ptr.vmem [resolvable:$true] %s3827_s27 }
  0x7b   :  { %v864_v31 = vadd.f32 %v813_v22, %v812_v16  ;;  %v1055_v32 = vadd.f32 %v443_v28, %v442_v27  ;;  %v934_v33 = vadd.f32 %v919_v25, %v918_v24  ;;  %861 = vst [vmem:[#allocation13] sm:$0xff] %v845_v23  ;;  %s4043_s28 = scalar_lea.vmem %s4552_s27, 1024  ;;  %p4048_p7 = scmp.lt.s32.totalorder %s4552_s27, %s4552_s27 }
  0x7c   :  { %v1004_v34 = vand.u32 2147483647, %v988_v29  ;;  %v1005_v35 = vand.u32 2147483647, %v989_v30  ;;  %985 = vst [vmem:[#allocation13 + $0x20] sm:$0xff] %v969_v26  ;;  %p4044_p6 = scmp.ne.s32.totalorder %s4552_s27, %s4043_s28  ;;  %p4049_p8 = scmp.lt.s32.totalorder %s4043_s28, %s4043_s28 }
  0x7d   :  { %880 = vst [vmem:[#allocation13 + $0x8] sm:$0xff] %v864_v31  ;;  %1071 = vst [vmem:[#allocation13 + $0x30] sm:$0xff] %v1055_v32 }
  0x7e   :  { %v1020_v36 = vmul.f32 %v1004_v34, %v442_v27  ;;  %v1021_v37 = vmul.f32 %v1005_v35, %v443_v28  ;;  %950 = vst [vmem:[#allocation13 + $0x18] sm:$0xff] %v934_v33  ;;  %p4050_p9 = por %p4049_p8, %p4048_p7 }
  0x7f   :  { %v3904_v38 = vpop.eup %3903 }
  0x80   :  { %v1036_v39 = vadd.f32 %v1021_v37, %v1020_v36  ;;  %v3906_v40 = vpop.eup %3905  ;;  %v605_v41 = vmul.f32 0.6931472, %v3904_v38  ;;  %p4051_p10 = pnand %p4050_p9, %p4044_p6 }
  0x81   :  { %v3908_v42 = vpop.eup %3907  ;;  %v607_v43 = vmul.f32 0.6931472, %v3906_v40 }
  0x82   :  { %v3910_v44 = vpop.eup %3909  ;;  %v636_v45 = vmax.f32 %v605_v41, -100.0  ;;  %v669_v46 = vmul.f32 0.6931472, %v3908_v42  ;;  %1052 = vst [vmem:[#allocation13 + $0x28] sm:$0xff] %v1036_v39 }
  0x83   :  { %v637_v47 = vmax.f32 %v607_v43, -100.0  ;;  %v671_v48 = vmul.f32 0.6931472, %v3910_v44 }
  0x84   :  { %v700_v49 = vmax.f32 %v669_v46, -100.0  ;;  %v716_v50 = vmul.f32 %v636_v45, %v394_v3 }
  0x85   :  { %v701_v51 = vmax.f32 %v671_v48, -100.0  ;;  %v717_v52 = vmul.f32 %v637_v47, %v395_v4 }
  0x86   :  { %v748_v53 = vmul.f32 %v732_v9, %v700_v49 }
  0x87   :  { %v749_v54 = vmul.f32 %v733_v10, %v701_v51 }
  0x88   :  { %v764_v55 = vadd.f32 %v748_v53, %v716_v50 }
  0x89   :  { %v765_v56 = vadd.f32 %v749_v54, %v717_v52 }
  0x8a   :  { %v780_v57 = vsub.f32 0.0, %v764_v55 }
  0x8b   :  { %v781_v58 = vsub.f32 0.0, %v765_v56 }
  0x8c   :  { %v4280_v59 = vmul.f32 %v812_v16, %v780_v57  ;;  %v4284_v61 = vmul.f32 %v796_v11, %v780_v57 }
  0x8d   :  { %v4282_v60 = vmul.f32 %v813_v22, %v781_v58  ;;  %v4289_v62 = vmul.f32 %v797_v12, %v781_v58 }
  0x8e   :  { %vm1072_vm0 = vcmp.ge.f32.partialorder %v4280_v59, 1e-12  ;;  %vm1156_vm1 = vcmp.ge.f32.partialorder %v4280_v59, 0.001  ;;  %vm1242_vm2 = vcmp.ge.f32.partialorder %v4280_v59, 0.0014677993 }
  0x8f   :  { %vm1073_vm3 = vcmp.ge.f32.partialorder %v4282_v60, 1e-12  ;;  %v1089_v63 = vsel %vm1072_vm0, 1.0, %v4129_v0  ;;  %vm1157_vm4 = vcmp.ge.f32.partialorder %v4282_v60, 0.001  ;;  %v1174_v1 = vsel %vm1156_vm1, 1.0, %v4129_v0 }
  0x90   :  { %v1090_v2 = vsel %vm1073_vm3, 1.0, %v4129_v0  ;;  %v1175_v3 = vsel %vm1157_vm4, 1.0, %v4129_v0  ;;  %vm1243_vm5 = vcmp.ge.f32.partialorder %v4282_v60, 0.0014677993  ;;  %v1260_v4 = vsel %vm1242_vm2, 1.0, %v4129_v0 }
  0x91   :  { %v1105_v5 = vadd.f32 %v1090_v2, %v1089_v63  ;;  %v1190_v6 = vadd.f32 %v1175_v3, %v1174_v1  ;;  %v1261_v7 = vsel %vm1243_vm5, 1.0, %v4129_v0  ;;  %vm1328_vm6 = vcmp.ge.f32.partialorder %v4280_v59, 0.0021544348 }
  0x92   :  { %v1276_v8 = vadd.f32 %v1261_v7, %v1260_v4  ;;  %vm1329_vm7 = vcmp.ge.f32.partialorder %v4282_v60, 0.0021544348  ;;  %v1346_v9 = vsel %vm1328_vm6, 1.0, %v4129_v0  ;;  %vm1414_vm8 = vcmp.ge.f32.partialorder %v4280_v59, 0.0031622776 }
  0x93   :  { %v1347_v10 = vsel %vm1329_vm7, 1.0, %v4129_v0  ;;  %vm1415_vm9 = vcmp.ge.f32.partialorder %v4282_v60, 0.0031622776  ;;  %v1432_v12 = vsel %vm1414_vm8, 1.0, %v4129_v0  ;;  %1121 = vst [vmem:[#allocation14] sm:$0xff] %v1105_v5  ;;  %1206 = vst [vmem:[#allocation14 + $0x8] sm:$0xff] %v1190_v6 }
  0x94   :  { %v1362_v11 = vadd.f32 %v1347_v10, %v1346_v9  ;;  %v1433_v13 = vsel %vm1415_vm9, 1.0, %v4129_v0  ;;  %vm4807_vm10 = vcmp.ge.f32.partialorder %v4280_v59, 0.004641589  ;;  %vm4811_vm11 = vcmp.ge.f32.partialorder %v4282_v60, 0.004641589  ;;  %1292 = vst [vmem:[#allocation14 + $0x10] sm:$0xff] %v1276_v8 }
  0x95   :  { %v1448_v14 = vadd.f32 %v1433_v13, %v1432_v12  ;;  %vm4808_vm12 = vcmp.ge.f32.partialorder %v4280_v59, 0.006812921  ;;  %v1518_v15 = vsel %vm4807_vm10, 1.0, %v4129_v0  ;;  %v1519_v16 = vsel %vm4811_vm11, 1.0, %v4129_v0 }
  0x96   :  { %vm4809_vm13 = vcmp.ge.f32.partialorder %v4282_v60, 0.006812921  ;;  %v1534_v17 = vadd.f32 %v1519_v16, %v1518_v15  ;;  %v1604_v18 = vsel %vm4808_vm12, 1.0, %v4129_v0  ;;  %1378 = vst [vmem:[#allocation14 + $0x18] sm:$0xff] %v1362_v11  ;;  %vm4810_vm14 = vcmp.ge.f32.partialorder %v4280_v59, 0.01 }
  0x97   :  { %v1605_v19 = vsel %vm4809_vm13, 1.0, %v4129_v0  ;;  %vm4815_vm15 = vcmp.ge.f32.partialorder %v4282_v60, 0.01  ;;  %vm4812_vm10 = vcmp.ge.f32.partialorder %v4280_v59, 0.014677993  ;;  %1464 = vst [vmem:[#allocation14 + $0x20] sm:$0xff] %v1448_v14 }
  0x98   :  { %v1620_v20 = vadd.f32 %v1605_v19, %v1604_v18  ;;  %v1690_v21 = vsel %vm4810_vm14, 1.0, %v4129_v0  ;;  %v1691_v22 = vsel %vm4815_vm15, 1.0, %v4129_v0  ;;  %vm4813_vm12 = vcmp.ge.f32.partialorder %v4282_v60, 0.014677993  ;;  %1550 = vst [vmem:[#allocation14 + $0x28] sm:$0xff] %v1534_v17 }
  0x99   :  { %v1706_v23 = vadd.f32 %v1691_v22, %v1690_v21  ;;  %v1776_v24 = vsel %vm4812_vm10, 1.0, %v4129_v0  ;;  %v1777_v25 = vsel %vm4813_vm12, 1.0, %v4129_v0  ;;  %vm4814_vm13 = vcmp.ge.f32.partialorder %v4280_v59, 0.021544347 }
  0x9a   :  { %v1792_v26 = vadd.f32 %v1777_v25, %v1776_v24  ;;  %vm4819_vm14 = vcmp.ge.f32.partialorder %v4282_v60, 0.021544347  ;;  %vm4816_vm11 = vcmp.ge.f32.partialorder %v4280_v59, 0.031622775  ;;  %1636 = vst [vmem:[#allocation14 + $0x30] sm:$0xff] %v1620_v20  ;;  %v1862_v27 = vsel %vm4814_vm13, 1.0, %v4129_v0 }
  0x9b   :  { %v1863_v28 = vsel %vm4819_vm14, 1.0, %v4129_v0  ;;  %vm4817_vm10 = vcmp.ge.f32.partialorder %v4282_v60, 0.031622775  ;;  %v1948_v30 = vsel %vm4816_vm11, 1.0, %v4129_v0  ;;  %1722 = vst [vmem:[#allocation14 + $0x38] sm:$0xff] %v1706_v23 }
  0x9c   :  { %v1878_v29 = vadd.f32 %v1863_v28, %v1862_v27  ;;  %v1949_v31 = vsel %vm4817_vm10, 1.0, %v4129_v0  ;;  %vm4818_vm12 = vcmp.ge.f32.partialorder %v4280_v59, 0.046415888  ;;  %vm4823_vm13 = vcmp.ge.f32.partialorder %v4282_v60, 0.046415888  ;;  %1808 = vst [vmem:[#allocation14 + $0x40] sm:$0xff] %v1792_v26 }
  0x9d   :  { %v1964_v32 = vadd.f32 %v1949_v31, %v1948_v30  ;;  %vm4820_vm15 = vcmp.ge.f32.partialorder %v4280_v59, 0.068129204  ;;  %v2034_v33 = vsel %vm4818_vm12, 1.0, %v4129_v0  ;;  %v2035_v34 = vsel %vm4823_vm13, 1.0, %v4129_v0 }
  0x9e   :  { %vm4821_vm11 = vcmp.ge.f32.partialorder %v4282_v60, 0.068129204  ;;  %v2050_v35 = vadd.f32 %v2035_v34, %v2034_v33  ;;  %v2120_v36 = vsel %vm4820_vm15, 1.0, %v4129_v0  ;;  %1894 = vst [vmem:[#allocation14 + $0x48] sm:$0xff] %v1878_v29  ;;  %vm4822_vm10 = vcmp.ge.f32.partialorder %v4280_v59, 0.1 }
  0x9f   :  { %v2121_v37 = vsel %vm4821_vm11, 1.0, %v4129_v0  ;;  %vm4827_vm12 = vcmp.ge.f32.partialorder %v4282_v60, 0.1  ;;  %vm4824_vm14 = vcmp.ge.f32.partialorder %v4280_v59, 0.14677992  ;;  %1980 = vst [vmem:[#allocation14 + $0x50] sm:$0xff] %v1964_v32  ;;  %v899_v34 = vadd.f32 %v4289_v62, %v4284_v61 }
  0xa0   :  { %v2136_v38 = vadd.f32 %v2121_v37, %v2120_v36  ;;  %v2206_v39 = vsel %vm4822_vm10, 1.0, %v4129_v0  ;;  %v2207_v40 = vsel %vm4827_vm12, 1.0, %v4129_v0  ;;  %vm4825_vm15 = vcmp.ge.f32.partialorder %v4282_v60, 0.14677992  ;;  %2066 = vst [vmem:[#allocation14 + $0x58] sm:$0xff] %v2050_v35 }
  0xa1   :  { %v2222_v41 = vadd.f32 %v2207_v40, %v2206_v39  ;;  %v2292_v42 = vsel %vm4824_vm14, 1.0, %v4129_v0  ;;  %v2293_v43 = vsel %vm4825_vm15, 1.0, %v4129_v0  ;;  %vm4826_vm11 = vcmp.ge.f32.partialorder %v4280_v59, 0.21544346  ;;  %915 = vst [vmem:[#allocation13 + $0x10] sm:$0xff] %v899_v34 }
  0xa2   :  { %v2308_v44 = vadd.f32 %v2293_v43, %v2292_v42  ;;  %vm4831_vm10 = vcmp.ge.f32.partialorder %v4282_v60, 0.21544346  ;;  %vm4828_vm13 = vcmp.ge.f32.partialorder %v4280_v59, 0.31622776  ;;  %2152 = vst [vmem:[#allocation14 + $0x60] sm:$0xff] %v2136_v38  ;;  %v2378_v45 = vsel %vm4826_vm11, 1.0, %v4129_v0 }
  0xa3   :  { %v2379_v46 = vsel %vm4831_vm10, 1.0, %v4129_v0  ;;  %vm4829_vm14 = vcmp.ge.f32.partialorder %v4282_v60, 0.31622776  ;;  %v2464_v48 = vsel %vm4828_vm13, 1.0, %v4129_v0  ;;  %2238 = vst [vmem:[#allocation14 + $0x68] sm:$0xff] %v2222_v41  ;;  %v1123_v37 = vsel %vm1072_vm0, %v4280_v59, 0.0 }
  0xa4   :  { %v2394_v47 = vadd.f32 %v2379_v46, %v2378_v45  ;;  %v2465_v49 = vsel %vm4829_vm14, 1.0, %v4129_v0  ;;  %vm4830_vm15 = vcmp.ge.f32.partialorder %v4280_v59, 0.4641589  ;;  %vm4835_vm11 = vcmp.ge.f32.partialorder %v4282_v60, 0.4641589  ;;  %2324 = vst [vmem:[#allocation14 + $0x70] sm:$0xff] %v2308_v44 }
  0xa5   :  { %v2480_v50 = vadd.f32 %v2465_v49, %v2464_v48  ;;  %vm4832_vm12 = vcmp.ge.f32.partialorder %v4280_v59, 0.68129206  ;;  %v2550_v51 = vsel %vm4830_vm15, 1.0, %v4129_v0  ;;  %v2551_v52 = vsel %vm4835_vm11, 1.0, %v4129_v0 }
  0xa6   :  { %vm4833_vm13 = vcmp.ge.f32.partialorder %v4282_v60, 0.68129206  ;;  %v2566_v53 = vadd.f32 %v2551_v52, %v2550_v51  ;;  %v2636_v54 = vsel %vm4832_vm12, 1.0, %v4129_v0  ;;  %2410 = vst [vmem:[#allocation14 + $0x78] sm:$0xff] %v2394_v47  ;;  %vm4834_vm14 = vcmp.ge.f32.partialorder %v4280_v59, 1.0 }
  0xa7   :  { %v2637_v55 = vsel %vm4833_vm13, 1.0, %v4129_v0  ;;  %vm4839_vm15 = vcmp.ge.f32.partialorder %v4282_v60, 1.0  ;;  %vm4836_vm10 = vcmp.ge.f32.partialorder %v4280_v59, 1.4677993  ;;  %2496 = vst [vmem:[#allocation14 + $0x80] sm:$0xff] %v2480_v50  ;;  %v2722_v57 = vsel %vm4834_vm14, 1.0, %v4129_v0 }
  0xa8   :  { %v2652_v56 = vadd.f32 %v2637_v55, %v2636_v54  ;;  %v2723_v58 = vsel %vm4839_vm15, 1.0, %v4129_v0  ;;  %vm4837_vm12 = vcmp.ge.f32.partialorder %v4282_v60, 1.4677993  ;;  %v2808_v1 = vsel %vm4836_vm10, 1.0, %v4129_v0  ;;  %2582 = vst [vmem:[#allocation14 + $0x88] sm:$0xff] %v2566_v53 }
  0xa9   :  { %v2738_v63 = vadd.f32 %v2723_v58, %v2722_v57  ;;  %v2809_v2 = vsel %vm4837_vm12, 1.0, %v4129_v0  ;;  %vm4838_vm13 = vcmp.ge.f32.partialorder %v4280_v59, 2.1544347  ;;  %vm4843_vm14 = vcmp.ge.f32.partialorder %v4282_v60, 2.1544347 }
  0xaa   :  { %v2824_v3 = vadd.f32 %v2809_v2, %v2808_v1  ;;  %vm4840_vm11 = vcmp.ge.f32.partialorder %v4280_v59, 3.1622777  ;;  %2668 = vst [vmem:[#allocation14 + $0x90] sm:$0xff] %v2652_v56  ;;  %v2894_v4 = vsel %vm4838_vm13, 1.0, %v4129_v0  ;;  %v2895_v5 = vsel %vm4843_vm14, 1.0, %v4129_v0 }
  0xab   :  { %vm4841_vm10 = vcmp.ge.f32.partialorder %v4282_v60, 3.1622777  ;;  %v2910_v6 = vadd.f32 %v2895_v5, %v2894_v4  ;;  %v2980_v7 = vsel %vm4840_vm11, 1.0, %v4129_v0  ;;  %2754 = vst [vmem:[#allocation14 + $0x98] sm:$0xff] %v2738_v63  ;;  %vm4842_vm12 = vcmp.ge.f32.partialorder %v4280_v59, 4.6415887 }
  0xac   :  { %v2981_v8 = vsel %vm4841_vm10, 1.0, %v4129_v0  ;;  %vm4847_vm13 = vcmp.ge.f32.partialorder %v4282_v60, 4.6415887  ;;  %vm4844_vm15 = vcmp.ge.f32.partialorder %v4280_v59, 6.8129206  ;;  %2840 = vst [vmem:[#allocation14 + $0xa0] sm:$0xff] %v2824_v3 }
  0xad   :  { %v2996_v9 = vadd.f32 %v2981_v8, %v2980_v7  ;;  %v3066_v10 = vsel %vm4842_vm12, 1.0, %v4129_v0  ;;  %v3067_v11 = vsel %vm4847_vm13, 1.0, %v4129_v0  ;;  %vm4845_vm11 = vcmp.ge.f32.partialorder %v4282_v60, 6.8129206  ;;  %2926 = vst [vmem:[#allocation14 + $0xa8] sm:$0xff] %v2910_v6 }
  0xae   :  { %v3082_v12 = vadd.f32 %v3067_v11, %v3066_v10  ;;  %v3152_v13 = vsel %vm4844_vm15, 1.0, %v4129_v0  ;;  %v3153_v14 = vsel %vm4845_vm11, 1.0, %v4129_v0  ;;  %vm4846_vm10 = vcmp.ge.f32.partialorder %v4280_v59, 10.0 }
  0xaf   :  { %v3168_v15 = vadd.f32 %v3153_v14, %v3152_v13  ;;  %vm4851_vm12 = vcmp.ge.f32.partialorder %v4282_v60, 10.0  ;;  %vm4848_vm14 = vcmp.ge.f32.partialorder %v4280_v59, 14.677993  ;;  %3012 = vst [vmem:[#allocation14 + $0xb0] sm:$0xff] %v2996_v9  ;;  %v3238_v16 = vsel %vm4846_vm10, 1.0, %v4129_v0 }
  0xb0   :  { %v3239_v17 = vsel %vm4851_vm12, 1.0, %v4129_v0  ;;  %vm4849_vm15 = vcmp.ge.f32.partialorder %v4282_v60, 14.677993  ;;  %v3324_v19 = vsel %vm4848_vm14, 1.0, %v4129_v0  ;;  %3098 = vst [vmem:[#allocation14 + $0xb8] sm:$0xff] %v3082_v12  ;;  %v1124_v61 = vsel %vm1073_vm3, %v4282_v60, 0.0 }
  0xb1   :  { %v3254_v18 = vadd.f32 %v3239_v17, %v3238_v16  ;;  %v3325_v20 = vsel %vm4849_vm15, 1.0, %v4129_v0  ;;  %vm4850_vm11 = vcmp.ge.f32.partialorder %v4280_v59, 21.544348  ;;  %vm3393_vm10 = vcmp.ge.f32.partialorder %v4282_v60, 21.544348  ;;  %3184 = vst [vmem:[#allocation14 + $0xc0] sm:$0xff] %v3168_v15 }
  0xb2   :  { %v3340_v21 = vadd.f32 %v3325_v20, %v3324_v19  ;;  %vm4852_vm13 = vcmp.ge.f32.partialorder %v4280_v59, 31.622776  ;;  %v3410_v22 = vsel %vm4850_vm11, 1.0, %v4129_v0  ;;  %v3411_v23 = vsel %vm3393_vm10, 1.0, %v4129_v0 }
  0xb3   :  { %vm4854_vm14 = vcmp.ge.f32.partialorder %v4282_v60, 31.622776  ;;  %v3426_v24 = vadd.f32 %v3411_v23, %v3410_v22  ;;  %v3496_v25 = vsel %vm4852_vm13, 1.0, %v4129_v0  ;;  %3270 = vst [vmem:[#allocation14 + $0xc8] sm:$0xff] %v3254_v18  ;;  %vm4853_vm15 = vcmp.ge.f32.partialorder %v4280_v59, 46.41589 }
  0xb4   :  { %v3497_v26 = vsel %vm4854_vm14, 1.0, %v4129_v0  ;;  %vm3565_vm11 = vcmp.ge.f32.partialorder %v4282_v60, 46.41589  ;;  %vm3650_vm12 = vcmp.ge.f32.partialorder %v4280_v59, 68.1292  ;;  %3356 = vst [vmem:[#allocation14 + $0xd0] sm:$0xff] %v3340_v21  ;;  %v1139_v62 = vadd.f32 %v1124_v61, %v1123_v37 }
  0xb5   :  { %v3512_v27 = vadd.f32 %v3497_v26, %v3496_v25  ;;  %v3582_v28 = vsel %vm4853_vm15, 1.0, %v4129_v0  ;;  %v3583_v29 = vsel %vm3565_vm11, 1.0, %v4129_v0  ;;  %vm3651_vm13 = vcmp.ge.f32.partialorder %v4282_v60, 68.1292  ;;  %3442 = vst [vmem:[#allocation14 + $0xd8] sm:$0xff] %v3426_v24 }
  0xb6   :  { %v3598_v30 = vadd.f32 %v3583_v29, %v3582_v28  ;;  %v3668_v31 = vsel %vm3650_vm12, 1.0, %v4129_v0  ;;  %v3669_v32 = vsel %vm3651_vm13, 1.0, %v4129_v0  ;;  %vm3736_vm15 = vcmp.ge.f32.partialorder %v4280_v59, 100.0 }
  0xb7   :  { %v3684_v33 = vadd.f32 %v3669_v32, %v3668_v31  ;;  %vm3737_vm14 = vcmp.ge.f32.partialorder %v4282_v60, 100.0  ;;  %3528 = vst [vmem:[#allocation14 + $0xe0] sm:$0xff] %v3512_v27  ;;  %v3754_v35 = vsel %vm3736_vm15, 1.0, %v4129_v0  ;;  %v1210_v39 = vsel %vm1157_vm4, %v4282_v60, 0.0 }
  0xb8   :  { %v3755_v36 = vsel %vm3737_vm14, 1.0, %v4129_v0  ;;  %3614 = vst [vmem:[#allocation14 + $0xe8] sm:$0xff] %v3598_v30  ;;  %v1209_v0 = vsel %vm1156_vm1, %v4280_v59, 0.0  ;;  %v1295_v40 = vsel %vm1242_vm2, %v4280_v59, 0.0  ;;  %v1296_v42 = vsel %vm1243_vm5, %v4282_v60, 0.0 }
  0xb9   :  { %v3770_v38 = vadd.f32 %v3755_v36, %v3754_v35  ;;  %3700 = vst [vmem:[#allocation14 + $0xf0] sm:$0xff] %v3684_v33  ;;  %v1225_v41 = vadd.f32 %v1210_v39, %v1209_v0  ;;  %v1381_v43 = vsel %vm1328_vm6, %v4280_v59, 0.0  ;;  %v1311_v44 = vadd.f32 %v1296_v42, %v1295_v40 }
  0xba   :  { %v1382_v45 = vsel %vm1329_vm7, %v4282_v60, 0.0  ;;  %v1467_v46 = vsel %vm1414_vm8, %v4280_v59, 0.0 }
  0xbb   :  { %4054 = shalt.err (!%p4051_p10)
}
  0xbc   :  { %s4055_s30 = scalar_lea.hbm %s4804_s7, 1024 }
  0xbd   :  { %p4056_p11 = scmp.ne.s32.totalorder %s4804_s7, %s4055_s30  ;;  %p4059_p12 = scmp.lt.u32.totalorder %s4055_s30, %s4804_s7 }
  0xbf   :  { %p4061_p13 = pnand %p4059_p12, %p4056_p11 }
  0xc1   :  { %4064 = shalt.err (!%p4061_p13)
}
  0xc2   :  { %3833 = dma.vmem_to_hbm [thread:$0]  %s4552_s27, 1024, %s4804_s7, [#allocation4], %s4122_s20, %s4122_s20, %s4123_s21   ;;  %3786 = vst [vmem:[#allocation14 + $0xf8] sm:$0xff] %v3770_v38  ;;  %v1397_v47 = vadd.f32 %v1382_v45, %v1381_v43  ;;  %v1468_v48 = vsel %vm1415_vm9, %v4282_v60, 0.0  ;;  %vm4855_vm0 = vcmp.ge.f32.partialorder %v4280_v59, 0.004641589 }
  0xc3   :  { %v1553_v49 = vsel %vm4855_vm0, %v4280_v59, 0.0  ;;  %1155 = vst [vmem:[#allocation16] sm:$0xff] %v1139_v62  ;;  %v1483_v50 = vadd.f32 %v1468_v48, %v1467_v46  ;;  %vm4856_vm1 = vcmp.ge.f32.partialorder %v4282_v60, 0.004641589  ;;  %vm4857_vm2 = vcmp.ge.f32.partialorder %v4280_v59, 0.006812921  ;;  %p4070_p1 = scmp.lt.s32.totalorder %s4569_s25, %s4569_s25 }
  0xc4   :  { %v1554_v51 = vsel %vm4856_vm1, %v4282_v60, 0.0  ;;  %v1639_v52 = vsel %vm4857_vm2, %v4280_v59, 0.0  ;;  %s4065_s7 = scalar_lea.vmem %s4569_s25, 4096 }
  0xc5   :  { %p4066_p0 = scmp.ne.s32.totalorder %s4569_s25, %s4065_s7  ;;  %p4071_p2 = scmp.lt.s32.totalorder %s4065_s7, %s4065_s7 }
  0xc7   :  { %p4072_p3 = por %p4071_p2, %p4070_p1 }
  0xc9   :  { %p4073_p4 = pnand %p4072_p3, %p4066_p0 }
  0xcb   :  { %4076 = shalt.err (!%p4073_p4)
}
  0xcc   :  { %s4077_s2 = scalar_lea.hbm %s4805_s8, 4096 }
  0xcd   :  { %p4078_p5 = scmp.ne.s32.totalorder %s4805_s8, %s4077_s2  ;;  %p4081_p6 = scmp.lt.u32.totalorder %s4077_s2, %s4805_s8 }
  0xcf   :  { %p4083_p7 = pnand %p4081_p6, %p4078_p5 }
  0xd1   :  { %4086 = shalt.err (!%p4083_p7)
}
  0xd2   :  { %3845 = dma.vmem_to_hbm [thread:$0]  %s4569_s25, 4096, %s4805_s8, [#allocation15], %s4122_s20, %s4122_s20, %s4123_s21   ;;  %1241 = vst [vmem:[#allocation16 + $0x8] sm:$0xff] %v1225_v41  ;;  %v1569_v53 = vadd.f32 %v1554_v51, %v1553_v49  ;;  %vm4858_vm3 = vcmp.ge.f32.partialorder %v4282_v60, 0.006812921  ;;  %1327 = vst [vmem:[#allocation16 + $0x10] sm:$0xff] %v1311_v44 }
  0xd3   :  { %v1640_v54 = vsel %vm4858_vm3, %v4282_v60, 0.0  ;;  %vm4859_vm4 = vcmp.ge.f32.partialorder %v4280_v59, 0.01  ;;  %vm4860_vm5 = vcmp.ge.f32.partialorder %v4282_v60, 0.01  ;;  %1413 = vst [vmem:[#allocation16 + $0x18] sm:$0xff] %v1397_v47 }
  0xd4   :  { %v1725_v55 = vsel %vm4859_vm4, %v4280_v59, 0.0  ;;  %v1655_v56 = vadd.f32 %v1640_v54, %v1639_v52  ;;  %v1726_v57 = vsel %vm4860_vm5, %v4282_v60, 0.0  ;;  %vm4861_vm6 = vcmp.ge.f32.partialorder %v4280_v59, 0.014677993  ;;  %1499 = vst [vmem:[#allocation16 + $0x20] sm:$0xff] %v1483_v50  ;;  %1585 = vst [vmem:[#allocation16 + $0x28] sm:$0xff] %v1569_v53 }
  0xd5   :  { %v1811_v58 = vsel %vm4861_vm6, %v4280_v59, 0.0  ;;  %v1741_v63 = vadd.f32 %v1726_v57, %v1725_v55  ;;  %vm4862_vm7 = vcmp.ge.f32.partialorder %v4282_v60, 0.014677993  ;;  %vm4863_vm8 = vcmp.ge.f32.partialorder %v4280_v59, 0.021544347  ;;  %s4132_s8 = smov [#allocation16]  }
  0xd6   :  { %v1812_v1 = vsel %vm4862_vm7, %v4282_v60, 0.0  ;;  %v1897_v2 = vsel %vm4863_vm8, %v4280_v59, 0.0  ;;  %vm4864_vm9 = vcmp.ge.f32.partialorder %v4282_v60, 0.021544347  ;;  %vm4865_vm0 = vcmp.ge.f32.partialorder %v4280_v59, 0.031622775 }
  0xd7   :  { %v1827_v3 = vadd.f32 %v1812_v1, %v1811_v58  ;;  %v1898_v4 = vsel %vm4864_vm9, %v4282_v60, 0.0  ;;  %v1983_v5 = vsel %vm4865_vm0, %v4280_v59, 0.0  ;;  %vm4866_vm1 = vcmp.ge.f32.partialorder %v4282_v60, 0.031622775  ;;  %1671 = vst [vmem:[#allocation16 + $0x30] sm:$0xff] %v1655_v56  ;;  %1757 = vst [vmem:[#allocation16 + $0x38] sm:$0xff] %v1741_v63 }
  0xd8   :  { %v1913_v6 = vadd.f32 %v1898_v4, %v1897_v2  ;;  %v1984_v7 = vsel %vm4866_vm1, %v4282_v60, 0.0  ;;  %vm4867_vm2 = vcmp.ge.f32.partialorder %v4280_v59, 0.046415888  ;;  %vm4868_vm3 = vcmp.ge.f32.partialorder %v4282_v60, 0.046415888  ;;  %s3851_s23 = sshll.u32 %s4132_s8, 4  ;;  %s3852_s23 = int_to_ptr.vmem [resolvable:$true] %s3851_s23 }
  0xd9   :  { %v2069_v8 = vsel %vm4867_vm2, %v4280_v59, 0.0  ;;  %v1999_v9 = vadd.f32 %v1984_v7, %v1983_v5  ;;  %v2070_v10 = vsel %vm4868_vm3, %v4282_v60, 0.0  ;;  %vm4869_vm4 = vcmp.ge.f32.partialorder %v4280_v59, 0.068129204  ;;  %1843 = vst [vmem:[#allocation16 + $0x40] sm:$0xff] %v1827_v3  ;;  %s4087_s24 = scalar_lea.vmem %s3852_s23, 4096  ;;  %p4092_p9 = scmp.lt.s32.totalorder %s3852_s23, %s3852_s23 }
  0xda   :  { %v2155_v11 = vsel %vm4869_vm4, %v4280_v59, 0.0  ;;  %v2085_v12 = vadd.f32 %v2070_v10, %v2069_v8  ;;  %vm4870_vm5 = vcmp.ge.f32.partialorder %v4282_v60, 0.068129204  ;;  %vm4871_vm6 = vcmp.ge.f32.partialorder %v4280_v59, 0.1  ;;  %1929 = vst [vmem:[#allocation16 + $0x48] sm:$0xff] %v1913_v6  ;;  %p4088_p8 = scmp.ne.s32.totalorder %s3852_s23, %s4087_s24  ;;  %p4093_p10 = scmp.lt.s32.totalorder %s4087_s24, %s4087_s24 }
  0xdb   :  { %v2156_v13 = vsel %vm4870_vm5, %v4282_v60, 0.0  ;;  %v2241_v14 = vsel %vm4871_vm6, %v4280_v59, 0.0  ;;  %vm4872_vm7 = vcmp.ge.f32.partialorder %v4282_v60, 0.1  ;;  %vm4873_vm8 = vcmp.ge.f32.partialorder %v4280_v59, 0.14677992 }
  0xdc   :  { %v2171_v15 = vadd.f32 %v2156_v13, %v2155_v11  ;;  %v2242_v16 = vsel %vm4872_vm7, %v4282_v60, 0.0  ;;  %v2327_v17 = vsel %vm4873_vm8, %v4280_v59, 0.0  ;;  %vm4874_vm9 = vcmp.ge.f32.partialorder %v4282_v60, 0.14677992  ;;  %2015 = vst [vmem:[#allocation16 + $0x50] sm:$0xff] %v1999_v9  ;;  %2101 = vst [vmem:[#allocation16 + $0x58] sm:$0xff] %v2085_v12  ;;  %p4094_p11 = por %p4093_p10, %p4092_p9 }
  0xdd   :  { %v2257_v18 = vadd.f32 %v2242_v16, %v2241_v14  ;;  %v2328_v19 = vsel %vm4874_vm9, %v4282_v60, 0.0  ;;  %vm4875_vm0 = vcmp.ge.f32.partialorder %v4280_v59, 0.21544346  ;;  %vm4876_vm1 = vcmp.ge.f32.partialorder %v4282_v60, 0.21544346 }
  0xde   :  { %v2413_v20 = vsel %vm4875_vm0, %v4280_v59, 0.0  ;;  %v2343_v21 = vadd.f32 %v2328_v19, %v2327_v17  ;;  %v2414_v22 = vsel %vm4876_vm1, %v4282_v60, 0.0  ;;  %vm4877_vm2 = vcmp.ge.f32.partialorder %v4280_v59, 0.31622776  ;;  %2187 = vst [vmem:[#allocation16 + $0x60] sm:$0xff] %v2171_v15  ;;  %p4095_p12 = pnand %p4094_p11, %p4088_p8 }
  0xdf   :  { %v2499_v23 = vsel %vm4877_vm2, %v4280_v59, 0.0  ;;  %v2429_v24 = vadd.f32 %v2414_v22, %v2413_v20  ;;  %vm4878_vm3 = vcmp.ge.f32.partialorder %v4282_v60, 0.31622776  ;;  %vm4879_vm4 = vcmp.ge.f32.partialorder %v4280_v59, 0.4641589  ;;  %2273 = vst [vmem:[#allocation16 + $0x68] sm:$0xff] %v2257_v18 }
  0xe0   :  { %v2500_v25 = vsel %vm4878_vm3, %v4282_v60, 0.0  ;;  %v2585_v26 = vsel %vm4879_vm4, %v4280_v59, 0.0  ;;  %vm4880_vm5 = vcmp.ge.f32.partialorder %v4282_v60, 0.4641589  ;;  %vm4881_vm6 = vcmp.ge.f32.partialorder %v4280_v59, 0.68129206 }
  0xe1   :  { %v2515_v27 = vadd.f32 %v2500_v25, %v2499_v23  ;;  %v2586_v28 = vsel %vm4880_vm5, %v4282_v60, 0.0  ;;  %v2671_v29 = vsel %vm4881_vm6, %v4280_v59, 0.0  ;;  %vm4882_vm7 = vcmp.ge.f32.partialorder %v4282_v60, 0.68129206  ;;  %2359 = vst [vmem:[#allocation16 + $0x70] sm:$0xff] %v2343_v21  ;;  %2445 = vst [vmem:[#allocation16 + $0x78] sm:$0xff] %v2429_v24 }
  0xe2   :  { %v2601_v30 = vadd.f32 %v2586_v28, %v2585_v26  ;;  %v2672_v31 = vsel %vm4882_vm7, %v4282_v60, 0.0  ;;  %vm4883_vm8 = vcmp.ge.f32.partialorder %v4280_v59, 1.0  ;;  %vm4884_vm9 = vcmp.ge.f32.partialorder %v4282_v60, 1.0 }
  0xe3   :  { %v2757_v32 = vsel %vm4883_vm8, %v4280_v59, 0.0  ;;  %v2687_v33 = vadd.f32 %v2672_v31, %v2671_v29  ;;  %v2758_v34 = vsel %vm4884_vm9, %v4282_v60, 0.0  ;;  %vm4885_vm0 = vcmp.ge.f32.partialorder %v4280_v59, 1.4677993  ;;  %2531 = vst [vmem:[#allocation16 + $0x80] sm:$0xff] %v2515_v27 }
  0xe4   :  { %v2843_v35 = vsel %vm4885_vm0, %v4280_v59, 0.0  ;;  %v2773_v36 = vadd.f32 %v2758_v34, %v2757_v32  ;;  %vm4886_vm1 = vcmp.ge.f32.partialorder %v4282_v60, 1.4677993  ;;  %vm4887_vm2 = vcmp.ge.f32.partialorder %v4280_v59, 2.1544347  ;;  %2617 = vst [vmem:[#allocation16 + $0x88] sm:$0xff] %v2601_v30 }
  0xe5   :  { %v2844_v37 = vsel %vm4886_vm1, %v4282_v60, 0.0  ;;  %v2929_v38 = vsel %vm4887_vm2, %v4280_v59, 0.0  ;;  %vm4888_vm3 = vcmp.ge.f32.partialorder %v4282_v60, 2.1544347  ;;  %vm4889_vm4 = vcmp.ge.f32.partialorder %v4280_v59, 3.1622777 }
  0xe6   :  { %v2859_v61 = vadd.f32 %v2844_v37, %v2843_v35  ;;  %v2930_v62 = vsel %vm4888_vm3, %v4282_v60, 0.0  ;;  %v3015_v0 = vsel %vm4889_vm4, %v4280_v59, 0.0  ;;  %vm4890_vm5 = vcmp.ge.f32.partialorder %v4282_v60, 3.1622777  ;;  %2703 = vst [vmem:[#allocation16 + $0x90] sm:$0xff] %v2687_v33  ;;  %2789 = vst [vmem:[#allocation16 + $0x98] sm:$0xff] %v2773_v36 }
  0xe7   :  { %v2945_v39 = vadd.f32 %v2930_v62, %v2929_v38  ;;  %v3016_v40 = vsel %vm4890_vm5, %v4282_v60, 0.0  ;;  %vm4891_vm6 = vcmp.ge.f32.partialorder %v4280_v59, 4.6415887  ;;  %vm4892_vm7 = vcmp.ge.f32.partialorder %v4282_v60, 4.6415887 }
  0xe8   :  { %v3101_v41 = vsel %vm4891_vm6, %v4280_v59, 0.0  ;;  %v3031_v42 = vadd.f32 %v3016_v40, %v3015_v0  ;;  %v3102_v43 = vsel %vm4892_vm7, %v4282_v60, 0.0  ;;  %vm4893_vm8 = vcmp.ge.f32.partialorder %v4280_v59, 6.8129206  ;;  %2875 = vst [vmem:[#allocation16 + $0xa0] sm:$0xff] %v2859_v61 }
  0xe9   :  { %v3187_v44 = vsel %vm4893_vm8, %v4280_v59, 0.0  ;;  %v3117_v45 = vadd.f32 %v3102_v43, %v3101_v41  ;;  %vm4894_vm9 = vcmp.ge.f32.partialorder %v4282_v60, 6.8129206  ;;  %vm4895_vm0 = vcmp.ge.f32.partialorder %v4280_v59, 10.0  ;;  %2961 = vst [vmem:[#allocation16 + $0xa8] sm:$0xff] %v2945_v39 }
  0xea   :  { %v3188_v46 = vsel %vm4894_vm9, %v4282_v60, 0.0  ;;  %v3273_v47 = vsel %vm4895_vm0, %v4280_v59, 0.0  ;;  %vm4896_vm1 = vcmp.ge.f32.partialorder %v4282_v60, 10.0  ;;  %vm4897_vm2 = vcmp.ge.f32.partialorder %v4280_v59, 14.677993  ;;  %3047 = vst [vmem:[#allocation16 + $0xb0] sm:$0xff] %v3031_v42 }
  0xeb   :  { %v3203_v48 = vadd.f32 %v3188_v46, %v3187_v44  ;;  %v3274_v49 = vsel %vm4896_vm1, %v4282_v60, 0.0  ;;  %v3359_v50 = vsel %vm4897_vm2, %v4280_v59, 0.0  ;;  %vm4898_vm3 = vcmp.ge.f32.partialorder %v4282_v60, 14.677993  ;;  %3133 = vst [vmem:[#allocation16 + $0xb8] sm:$0xff] %v3117_v45 }
  0xec   :  { %v3289_v51 = vadd.f32 %v3274_v49, %v3273_v47  ;;  %v3360_v52 = vsel %vm4898_vm3, %v4282_v60, 0.0  ;;  %vm4899_vm4 = vcmp.ge.f32.partialorder %v4280_v59, 21.544348  ;;  %v3446_v55 = vsel %vm3393_vm10, %v4282_v60, 0.0 }
  0xed   :  { %v3445_v53 = vsel %vm4899_vm4, %v4280_v59, 0.0  ;;  %v3375_v54 = vadd.f32 %v3360_v52, %v3359_v50  ;;  %vm4900_vm5 = vcmp.ge.f32.partialorder %v4280_v59, 31.622776  ;;  %vm4901_vm6 = vcmp.ge.f32.partialorder %v4282_v60, 31.622776  ;;  %3219 = vst [vmem:[#allocation16 + $0xc0] sm:$0xff] %v3203_v48 }
  0xee   :  { %v3531_v56 = vsel %vm4900_vm5, %v4280_v59, 0.0  ;;  %v3461_v57 = vadd.f32 %v3446_v55, %v3445_v53  ;;  %v3532_v58 = vsel %vm4901_vm6, %v4282_v60, 0.0  ;;  %vm4902_vm7 = vcmp.ge.f32.partialorder %v4280_v59, 46.41589  ;;  %3305 = vst [vmem:[#allocation16 + $0xc8] sm:$0xff] %v3289_v51 }
  0xef   :  { %v3617_v63 = vsel %vm4902_vm7, %v4280_v59, 0.0  ;;  %v3547_v1 = vadd.f32 %v3532_v58, %v3531_v56  ;;  %v3618_v2 = vsel %vm3565_vm11, %v4282_v60, 0.0  ;;  %v3703_v3 = vsel %vm3650_vm12, %v4280_v59, 0.0  ;;  %3391 = vst [vmem:[#allocation16 + $0xd0] sm:$0xff] %v3375_v54 }
  0xf0   :  { %v3633_v4 = vadd.f32 %v3618_v2, %v3617_v63  ;;  %v3704_v5 = vsel %vm3651_vm13, %v4282_v60, 0.0  ;;  %v3789_v6 = vsel %vm3736_vm15, %v4280_v59, 0.0  ;;  %v3790_v8 = vsel %vm3737_vm14, %v4282_v60, 0.0  ;;  %3477 = vst [vmem:[#allocation16 + $0xd8] sm:$0xff] %v3461_v57 }
  0xf1   :  { %v3719_v7 = vadd.f32 %v3704_v5, %v3703_v3  ;;  %v3805_v9 = vadd.f32 %v3790_v8, %v3789_v6  ;;  %3563 = vst [vmem:[#allocation16 + $0xe0] sm:$0xff] %v3547_v1 }
  0xf2   :  { %3649 = vst [vmem:[#allocation16 + $0xe8] sm:$0xff] %v3633_v4 }
  0xf3   :  { %3735 = vst [vmem:[#allocation16 + $0xf0] sm:$0xff] %v3719_v7  ;;  %3821 = vst [vmem:[#allocation16 + $0xf8] sm:$0xff] %v3805_v9 }
  0xf4   :  { %4098 = shalt.err (!%p4095_p12)
}
  0xf5   :  { %s4099_s27 = scalar_lea.hbm %s4806_s9, 4096 }
  0xf6   :  { %p4100_p13 = scmp.ne.s32.totalorder %s4806_s9, %s4099_s27  ;;  %p4103_p0 = scmp.lt.u32.totalorder %s4099_s27, %s4806_s9 }
  0xf8   :  { %p4105_p1 = pnand %p4103_p0, %p4100_p13 }
  0xfa   :  { %4108 = shalt.err (!%p4105_p1)
}
  0xfb   :  { %3857 = dma.vmem_to_hbm [thread:$0]  %s3852_s23, 4096, %s4806_s9, [#allocation15], %s4122_s20, %s4122_s20, %s4123_s21  }
  0xfc   :  { %4117 = dma.done.wait [#allocation4], 1024  }
  0xfd   :  { %4118 = vsyncadd [#allocation4], 4294966272 }
  0xfe   :  { %4119 = dma.done.wait [#allocation15], 8192  }
  0xff   :  { %4120 = vsyncadd [#allocation15], 4294959104 }
 0x100   :  { %3867 = vsyncpa [#allocation3], 1 }
 0x101   :  { %3868 = vsyncpa [#allocation6], 1 }
 0x102   :  { %3869 = vsyncpa [#allocation9], 1 }
 0x103   :  { %3870 = vsyncpa [#allocation12], 1 }
 0x104   :  { %3871 = vsyncpa [#allocation4], 1 }
 0x105   :  { %3872 = vsyncpa [#allocation15], 1 }

</bundles_post_ra>
